<compile_context>
chip_gen: v5e
topology: v5e:2x2
jax: 0.10.0
libtpu: 0.0.40
codegen_flags: <defaults>
</compile_context>

<pallas_src>
import functools

import jax
import jax.numpy as jnp
from jax.experimental import pallas as pl
from jax.experimental.pallas import tpu as pltpu

_NEG_LARGE = -1e30   # "minus infinity" (finite, f32-safe) for masking / init
_BIG_IDX = 1e9       # "plus infinity" for min-based argmax index selection


def _round_up(x, m):
    return (x + m - 1) // m * m


def srknn_topk_kernel(u_ref, p_ref, qT_ref, val_ref, idx_ref,
                      *, n_valid, k, mask_pad):
    """One (TI, TJ) tile of -d2, folded into per-row running top-K accumulators.

    u_ref  : (C2, C2) SMEM  upper-triangular symmetric-folded coefficients of
                            A = M^T M  (U[c,c]=A[c,c]; U[c,d]=A[c,d]+A[d,c], c<d)
    p_ref  : (1, TI, C2)    minuend projections for this i-tile (i on sublanes)
    qT_ref : (1, C2, TJ)    subtrahend projections for this j-tile (j on lanes)
    val_ref: (1, TI, K)     running top-K of -d2 per row (resident over j axis)
    idx_ref: (1, TI, K)     running top-K column indices (resident over j axis)
    """
    j_step = pl.program_id(2)
    tj = qT_ref.shape[2]

    @pl.when(j_step == 0)
    def _():
        val_ref[...] = jnp.full(val_ref.shape, _NEG_LARGE, dtype=val_ref.dtype)
        idx_ref[...] = jnp.zeros(idx_ref.shape, dtype=idx_ref.dtype)

    p = p_ref[0]                       # (TI, C2)
    qT = qT_ref[0]                     # (C2, TJ)
    c2 = p.shape[1]

    # Per-channel pairwise sigmoid tiles: s_c[i, j] = sigmoid(p[i, c] - q[j, c])
    # written as 0.5*tanh(0.5*x)+0.5 (single EUP transcendental + VALU mul/add).
    # Lane-dense (TI, TJ) tiles -> full vreg occupancy on the VPU/EUP.
    s = [0.5 * jnp.tanh(0.5 * (p[:, c:c + 1] - qT[c:c + 1, :])) + 0.5
         for c in range(c2)]

    # Horner-form quadratic (symmetry folded into U); accumulated on the VPU.
    acc = None
    for c in range(c2):
        inner = u_ref[c, c] * s[c]
        for d in range(c + 1, c2):
            inner = inner + u_ref[c, d] * s[d]
        term = s[c] * inner
        acc = term if acc is None else acc + term
    neg_d2 = -acc                                            # (TI, TJ)

    # Global column index of every lane; mask padded columns (static skip when
    # the j extent is not padded).
    lane_g = jax.lax.broadcasted_iota(jnp.int32, neg_d2.shape, 1) + j_step * tj
    if mask_pad:
        neg_d2 = jnp.where(lane_g < n_valid, neg_d2, _NEG_LARGE)
    glane = lane_g.astype(jnp.float32)

    # --- per-row top-K of this tile: K masked max / argmax passes ------------
    tile_v, tile_i = [], []
    for _ in range(k):
        m = jnp.max(neg_d2, axis=1, keepdims=True)                     # (TI, 1)
        hit = neg_d2 == m
        sel = jnp.min(jnp.where(hit, glane, _BIG_IDX), axis=1, keepdims=True)
        tile_v.append(m)
        tile_i.append(sel)
        neg_d2 = jnp.where(glane == sel, _NEG_LARGE, neg_d2)

    # --- merge with the running top-K: 2K candidate columns of width 1 -------
    run_v = val_ref[0]                                        # (TI, K)
    run_i = idx_ref[0].astype(jnp.float32)                    # (TI, K)
    cand_v = [run_v[:, c:c + 1] for c in range(k)] + tile_v
    cand_i = [run_i[:, c:c + 1] for c in range(k)] + tile_i

    colk = jax.lax.broadcasted_iota(jnp.int32, run_v.shape, 1)  # (TI, K)
    out_v = jnp.full(run_v.shape, _NEG_LARGE, dtype=jnp.float32)
    out_i = jnp.full(run_v.shape, -1.0, dtype=jnp.float32)
    for kk in range(k):
        m = cand_v[0]
        for c in range(1, 2 * k):
            m = jnp.maximum(m, cand_v[c])
        taken = jnp.zeros(m.shape, dtype=jnp.bool_)
        sel_i = jnp.full(m.shape, -1.0, dtype=jnp.float32)
        for c in range(2 * k):
            is_sel = jnp.logical_and(cand_v[c] == m, jnp.logical_not(taken))
            sel_i = jnp.where(is_sel, cand_i[c], sel_i)
            cand_v[c] = jnp.where(is_sel, _NEG_LARGE, cand_v[c])
            taken = jnp.logical_or(taken, is_sel)
        out_v = jnp.where(colk == kk, m, out_v)
        out_i = jnp.where(colk == kk, sel_i, out_i)

    val_ref[0] = out_v
    idx_ref[0] = out_i.astype(jnp.int32)


def srknn_pairwise_topk(p, qT, U, *, n_valid, k, ti, tj):
    """Streaming per-row top-K of -d2: returns (values, indices), each (B, Ni, K)."""
    B, Ni, C2 = p.shape
    _, _, Nj = qT.shape
    grid = (B, Ni // ti, Nj // tj)

    kernel = functools.partial(
        srknn_topk_kernel, n_valid=n_valid, k=k, mask_pad=(Nj != n_valid))

    grid_spec = pltpu.PrefetchScalarGridSpec(
        num_scalar_prefetch=0,
        grid=grid,
        in_specs=[
            pl.BlockSpec(memory_space=pltpu.MemorySpace.SMEM),      # U scalars
            pl.BlockSpec((1, ti, C2), lambda b, i, j: (b, i, 0)),   # p tile
            pl.BlockSpec((1, C2, tj), lambda b, i, j: (b, 0, j)),   # qT tile
        ],
        out_specs=[
            pl.BlockSpec((1, ti, k), lambda b, i, j: (b, i, 0)),    # top-K vals
            pl.BlockSpec((1, ti, k), lambda b, i, j: (b, i, 0)),    # top-K idx
        ],
    )

    return pl.pallas_call(
        kernel,
        out_shape=(jax.ShapeDtypeStruct((B, Ni, k), jnp.float32),
                   jax.ShapeDtypeStruct((B, Ni, k), jnp.int32)),
        grid_spec=grid_spec,
        compiler_params=pltpu.CompilerParams(
            dimension_semantics=("parallel", "parallel", "arbitrary")),
    )(U, p, qT)


def srknn_forward(x, w_minuend, w_subtrahend, M, K):
    """SRKNN.forward, Ktype='F'.

    x           : (B, C, H, W)  NCHW feature map (torch convention)
    w_minuend   : (C//2, C)     minuendW.weight
    w_subtrahend: (C//2, C)     subtrahendW.weight
    M           : (C//2, C//2)
    returns     : (index, value) with index (B, N*K) int32, value (B, N*K, 1) f32
    """
    B, C, H, W = x.shape
    N = H * W

    # X.permute(0, 2, 3, 1).reshape(B, -1, C)
    xv = jnp.transpose(x, (0, 2, 3, 1)).reshape(B, N, C).astype(jnp.float32)

    # Projections hoisted out of the kernel (tiny (N,C)x(C,C2) matmuls in XLA).
    # log_map treated as identity (see TODO above).
    p = jnp.einsum('bnc,kc->bnk', xv, w_minuend)      # (B, N, C2)  minuend proj
    qT = jnp.einsum('bnc,kc->bkn', xv, w_subtrahend)  # (B, C2, N)  subtrahend, j lane-major

    # Symmetric-fold coefficients of A = M^T M for the in-kernel quadratic form.
    A = M.T @ M                                       # (C2, C2)
    U = jnp.triu(A + A.T) - jnp.diag(jnp.diag(A))

    # Tile selection: TJ = 128 (lane-dense), TI = 64 so the c2+1 live (TI, TJ)
    # f32 intermediates fit in the register file.  j is padded to a multiple of
    # TJ and masked in-kernel; i is padded to a multiple of TI and the padded
    # rows are dropped by a cheap (B, Ni, K) slice afterwards.
    TJ = 128
    TI = 64
    if N <= TI:
        TI = _round_up(N, 8)
    Ni = _round_up(N, TI)
    Nj = _round_up(N, TJ)

    p_pad = jnp.pad(p, ((0, 0), (0, Ni - N), (0, 0)))
    qT_pad = jnp.pad(qT, ((0, 0), (0, 0), (0, Nj - N)))

    top_neg_d2, index = srknn_pairwise_topk(
        p_pad, qT_pad, U, n_valid=N, k=K, ti=TI, tj=TJ)
    top_neg_d2 = top_neg_d2[:, :N, :]                  # (B, N, K)
    index = index[:, :N, :]

    # diff = sigmoid(-sqrt(d2)) is monotone decreasing in d2, so the top-K set
    # of torch.topk(diff) equals top-K of -d2; the transcendental transform is
    # applied only to the B*N*K selected entries.
    d2_sel = jnp.maximum(-top_neg_d2, 0.0)             # clamp PSD rounding noise
    value = -jax.nn.sigmoid(-jnp.sqrt(d2_sel))         # == -diff_topk
    value = value.reshape(B, N * K, 1)
    index = index.reshape(B, N * K)
    return index, value


def _reference_forward(x, w_minuend, w_subtrahend, M, K):
    """Plain-XLA reference of the same math (for the in-script sanity check)."""
    B, C, H, W = x.shape
    N = H * W
    xv = jnp.transpose(x, (0, 2, 3, 1)).reshape(B, N, C).astype(jnp.float32)
    p = jnp.einsum('bnc,kc->bnk', xv, w_minuend)
    q = jnp.einsum('bnc,kc->bnk', xv, w_subtrahend)
    s = jax.nn.sigmoid(p[:, :, None, :] - q[:, None, :, :])      # (B, N, N, C2)
    A = M.T @ M
    d2 = jnp.einsum('bijc,cd,bijd->bij', s, A, s)
    diff = jax.nn.sigmoid(-jnp.sqrt(d2))
    val, idx = jax.lax.top_k(diff, K)
    return idx.reshape(B, N * K), (-val).reshape(B, N * K, 1)


if __name__ == "__main__":
    # Small shapes consistent with the module: B=2, C=8 (C//2=4), 8x8 spatial
    # -> N = 64 nodes, K = 3 neighbours.
    B, C, H, W = 2, 8, 8, 8
    K = 3

    key = jax.random.PRNGKey(0)
    kx, kwm, kws, km = jax.random.split(key, 4)
    x = jax.random.normal(kx, (B, C, H, W), dtype=jnp.float32)
    # Deterministic synthetic parameters (shapes from SRKNN.build()).
    w_minuend = 0.1 * jax.random.normal(kwm, (C // 2, C), dtype=jnp.float32)
    w_subtrahend = 0.1 * jax.random.normal(kws, (C // 2, C), dtype=jnp.float32)
    M = jax.random.normal(km, (C // 2, C // 2), dtype=jnp.float32)

    fwd = jax.jit(srknn_forward, static_argnums=(4,))
    index, value = fwd(x, w_minuend, w_subtrahend, M, K)
    jax.block_until_ready((index, value))

    assert index.shape == (B, H * W * K)
    assert value.shape == (B, H * W * K, 1)

    # Values-only sanity check against a plain-XLA reference (index tie-breaking
    # may legitimately differ, matching torch.topk(sorted=False) semantics).
    ref_idx, ref_val = _reference_forward(x, w_minuend, w_subtrahend, M, K)
    got = jnp.sort(value.reshape(B, -1, K), axis=-1)
    want = jnp.sort(ref_val.reshape(B, -1, K), axis=-1)
    assert jnp.allclose(got, want, atol=1e-4), float(jnp.max(jnp.abs(got - want)))

    print("KERNEL_OK")
</pallas_src>

<mosaic_0001>
module attributes {stable_mosaic.version = 11 : i64} {
  func.func @srknn_topk_kernel(%arg0: i32, %arg1: i32, %arg2: i32, %arg3: memref<4x4xf32, #tpu.memory_space<smem>>, %arg4: memref<1x64x4xf32, #tpu.memory_space<vmem>>, %arg5: memref<1x4x128xf32, #tpu.memory_space<vmem>>, %arg6: memref<1x64x3xf32, #tpu.memory_space<vmem>>, %arg7: memref<1x64x3xi32, #tpu.memory_space<vmem>>) attributes {dimension_semantics = [#tpu.dimension_semantics<parallel>, #tpu.dimension_semantics<parallel>, #tpu.dimension_semantics<arbitrary>], iteration_bounds = array<i64: 2, 1, 1>, scalar_prefetch = 0 : i64, scratch_operands = 0 : i64, tpu.core_type = #tpu.core_type<tc>, window_params = [{transform_indices = @transform_0, window_bounds = array<i64: 4, 4>}, {transform_indices = @transform_1, window_bounds = array<i64: 1, 64, 4>}, {transform_indices = @transform_2, window_bounds = array<i64: 1, 4, 128>}, {transform_indices = @transform_3, window_bounds = array<i64: 1, 64, 3>}, {transform_indices = @transform_4, window_bounds = array<i64: 1, 64, 3>}]} {
    %c0_i32 = arith.constant 0 : i32
    %0 = arith.cmpi eq, %arg2, %c0_i32 : i32
    %1 = arith.extui %0 : i1 to i32
    %c0_i32_0 = arith.constant 0 : i32
    %2 = arith.cmpi ne, %1, %c0_i32_0 : i32
    scf.if %2 {
      %cst_100 = arith.constant -1.000000e+30 : f32
      %324 = vector.broadcast %cst_100 : f32 to vector<1x64x3xf32>
      %c0_101 = arith.constant 0 : index
      %c0_102 = arith.constant 0 : index
      %c0_103 = arith.constant 0 : index
      %325 = vector.load %arg6[%c0_101, %c0_102, %c0_103] : memref<1x64x3xf32, #tpu.memory_space<vmem>>, vector<1x64x3xf32>
      tpu.vector_store %arg6[%c0_101, %c0_102, %c0_103], %324 {strides = array<i32>} : memref<1x64x3xf32, #tpu.memory_space<vmem>>, vector<1x64x3xf32>,
      %c0_i32_104 = arith.constant 0 : i32
      %326 = vector.broadcast %c0_i32_104 : i32 to vector<1x64x3xi32>
      %c0_105 = arith.constant 0 : index
      %c0_106 = arith.constant 0 : index
      %c0_107 = arith.constant 0 : index
      %327 = vector.load %arg7[%c0_105, %c0_106, %c0_107] : memref<1x64x3xi32, #tpu.memory_space<vmem>>, vector<1x64x3xi32>
      tpu.vector_store %arg7[%c0_105, %c0_106, %c0_107], %326 {strides = array<i32>} : memref<1x64x3xi32, #tpu.memory_space<vmem>>, vector<1x64x3xi32>,
    } else {
    }
    %c0 = arith.constant 0 : index
    %c0_1 = arith.constant 0 : index
    %c0_2 = arith.constant 0 : index
    %3 = vector.load %arg4[%c0, %c0_1, %c0_2] : memref<1x64x4xf32, #tpu.memory_space<vmem>>, vector<1x64x4xf32>
    %4 = vector.shape_cast %3 : vector<1x64x4xf32> to vector<64x4xf32>
    %c0_3 = arith.constant 0 : index
    %c0_4 = arith.constant 0 : index
    %c0_5 = arith.constant 0 : index
    %5 = vector.load %arg5[%c0_3, %c0_4, %c0_5] : memref<1x4x128xf32, #tpu.memory_space<vmem>>, vector<1x4x128xf32>
    %6 = vector.shape_cast %5 : vector<1x4x128xf32> to vector<4x128xf32>
    %7 = vector.extract_strided_slice %4 {offsets = [0, 0], sizes = [64, 1], strides = [1, 1]} : vector<64x4xf32> to vector<64x1xf32>
    %8 = vector.extract_strided_slice %6 {offsets = [0, 0], sizes = [1, 128], strides = [1, 1]} : vector<4x128xf32> to vector<1x128xf32>
    %9 = vector.broadcast %7 : vector<64x1xf32> to vector<64x128xf32>
    %10 = vector.broadcast %8 : vector<1x128xf32> to vector<64x128xf32>
    %11 = arith.subf %9, %10 : vector<64x128xf32>
    %cst = arith.constant 5.000000e-01 : f32
    %12 = vector.broadcast %cst : f32 to vector<64x128xf32>
    %13 = arith.mulf %12, %11 : vector<64x128xf32>
    %14 = math.tanh %13 : vector<64x128xf32>
    %cst_6 = arith.constant 5.000000e-01 : f32
    %15 = vector.broadcast %cst_6 : f32 to vector<64x128xf32>
    %16 = arith.mulf %15, %14 : vector<64x128xf32>
    %cst_7 = arith.constant 5.000000e-01 : f32
    %17 = vector.broadcast %cst_7 : f32 to vector<64x128xf32>
    %18 = arith.addf %16, %17 : vector<64x128xf32>
    %19 = vector.extract_strided_slice %4 {offsets = [0, 1], sizes = [64, 1], strides = [1, 1]} : vector<64x4xf32> to vector<64x1xf32>
    %20 = vector.extract_strided_slice %6 {offsets = [1, 0], sizes = [1, 128], strides = [1, 1]} : vector<4x128xf32> to vector<1x128xf32>
    %21 = vector.broadcast %19 : vector<64x1xf32> to vector<64x128xf32>
    %22 = vector.broadcast %20 : vector<1x128xf32> to vector<64x128xf32>
    %23 = arith.subf %21, %22 : vector<64x128xf32>
    %cst_8 = arith.constant 5.000000e-01 : f32
    %24 = vector.broadcast %cst_8 : f32 to vector<64x128xf32>
    %25 = arith.mulf %24, %23 : vector<64x128xf32>
    %26 = math.tanh %25 : vector<64x128xf32>
    %cst_9 = arith.constant 5.000000e-01 : f32
    %27 = vector.broadcast %cst_9 : f32 to vector<64x128xf32>
    %28 = arith.mulf %27, %26 : vector<64x128xf32>
    %cst_10 = arith.constant 5.000000e-01 : f32
    %29 = vector.broadcast %cst_10 : f32 to vector<64x128xf32>
    %30 = arith.addf %28, %29 : vector<64x128xf32>
    %31 = vector.extract_strided_slice %4 {offsets = [0, 2], sizes = [64, 1], strides = [1, 1]} : vector<64x4xf32> to vector<64x1xf32>
    %32 = vector.extract_strided_slice %6 {offsets = [2, 0], sizes = [1, 128], strides = [1, 1]} : vector<4x128xf32> to vector<1x128xf32>
    %33 = vector.broadcast %31 : vector<64x1xf32> to vector<64x128xf32>
    %34 = vector.broadcast %32 : vector<1x128xf32> to vector<64x128xf32>
    %35 = arith.subf %33, %34 : vector<64x128xf32>
    %cst_11 = arith.constant 5.000000e-01 : f32
    %36 = vector.broadcast %cst_11 : f32 to vector<64x128xf32>
    %37 = arith.mulf %36, %35 : vector<64x128xf32>
    %38 = math.tanh %37 : vector<64x128xf32>
    %cst_12 = arith.constant 5.000000e-01 : f32
    %39 = vector.broadcast %cst_12 : f32 to vector<64x128xf32>
    %40 = arith.mulf %39, %38 : vector<64x128xf32>
    %cst_13 = arith.constant 5.000000e-01 : f32
    %41 = vector.broadcast %cst_13 : f32 to vector<64x128xf32>
    %42 = arith.addf %40, %41 : vector<64x128xf32>
    %43 = vector.extract_strided_slice %4 {offsets = [0, 3], sizes = [64, 1], strides = [1, 1]} : vector<64x4xf32> to vector<64x1xf32>
    %44 = vector.extract_strided_slice %6 {offsets = [3, 0], sizes = [1, 128], strides = [1, 1]} : vector<4x128xf32> to vector<1x128xf32>
    %45 = vector.broadcast %43 : vector<64x1xf32> to vector<64x128xf32>
    %46 = vector.broadcast %44 : vector<1x128xf32> to vector<64x128xf32>
    %47 = arith.subf %45, %46 : vector<64x128xf32>
    %cst_14 = arith.constant 5.000000e-01 : f32
    %48 = vector.broadcast %cst_14 : f32 to vector<64x128xf32>
    %49 = arith.mulf %48, %47 : vector<64x128xf32>
    %50 = math.tanh %49 : vector<64x128xf32>
    %cst_15 = arith.constant 5.000000e-01 : f32
    %51 = vector.broadcast %cst_15 : f32 to vector<64x128xf32>
    %52 = arith.mulf %51, %50 : vector<64x128xf32>
    %cst_16 = arith.constant 5.000000e-01 : f32
    %53 = vector.broadcast %cst_16 : f32 to vector<64x128xf32>
    %54 = arith.addf %52, %53 : vector<64x128xf32>
    %c0_17 = arith.constant 0 : index
    %c0_18 = arith.constant 0 : index
    %55 = memref.load %arg3[%c0_17, %c0_18] : memref<4x4xf32, #tpu.memory_space<smem>>
    %56 = vector.broadcast %55 : f32 to vector<64x128xf32>
    %57 = arith.mulf %56, %18 : vector<64x128xf32>
    %c0_19 = arith.constant 0 : index
    %c1 = arith.constant 1 : index
    %58 = memref.load %arg3[%c0_19, %c1] : memref<4x4xf32, #tpu.memory_space<smem>>
    %59 = vector.broadcast %58 : f32 to vector<64x128xf32>
    %60 = arith.mulf %59, %30 : vector<64x128xf32>
    %61 = arith.addf %57, %60 : vector<64x128xf32>
    %c0_20 = arith.constant 0 : index
    %c2 = arith.constant 2 : index
    %62 = memref.load %arg3[%c0_20, %c2] : memref<4x4xf32, #tpu.memory_space<smem>>
    %63 = vector.broadcast %62 : f32 to vector<64x128xf32>
    %64 = arith.mulf %63, %42 : vector<64x128xf32>
    %65 = arith.addf %61, %64 : vector<64x128xf32>
    %c0_21 = arith.constant 0 : index
    %c3 = arith.constant 3 : index
    %66 = memref.load %arg3[%c0_21, %c3] : memref<4x4xf32, #tpu.memory_space<smem>>
    %67 = vector.broadcast %66 : f32 to vector<64x128xf32>
    %68 = arith.mulf %67, %54 : vector<64x128xf32>
    %69 = arith.addf %65, %68 : vector<64x128xf32>
    %70 = arith.mulf %18, %69 : vector<64x128xf32>
    %c1_22 = arith.constant 1 : index
    %c1_23 = arith.constant 1 : index
    %71 = memref.load %arg3[%c1_22, %c1_23] : memref<4x4xf32, #tpu.memory_space<smem>>
    %72 = vector.broadcast %71 : f32 to vector<64x128xf32>
    %73 = arith.mulf %72, %30 : vector<64x128xf32>
    %c1_24 = arith.constant 1 : index
    %c2_25 = arith.constant 2 : index
    %74 = memref.load %arg3[%c1_24, %c2_25] : memref<4x4xf32, #tpu.memory_space<smem>>
    %75 = vector.broadcast %74 : f32 to vector<64x128xf32>
    %76 = arith.mulf %75, %42 : vector<64x128xf32>
    %77 = arith.addf %73, %76 : vector<64x128xf32>
    %c1_26 = arith.constant 1 : index
    %c3_27 = arith.constant 3 : index
    %78 = memref.load %arg3[%c1_26, %c3_27] : memref<4x4xf32, #tpu.memory_space<smem>>
    %79 = vector.broadcast %78 : f32 to vector<64x128xf32>
    %80 = arith.mulf %79, %54 : vector<64x128xf32>
    %81 = arith.addf %77, %80 : vector<64x128xf32>
    %82 = arith.mulf %30, %81 : vector<64x128xf32>
    %83 = arith.addf %70, %82 : vector<64x128xf32>
    %c2_28 = arith.constant 2 : index
    %c2_29 = arith.constant 2 : index
    %84 = memref.load %arg3[%c2_28, %c2_29] : memref<4x4xf32, #tpu.memory_space<smem>>
    %85 = vector.broadcast %84 : f32 to vector<64x128xf32>
    %86 = arith.mulf %85, %42 : vector<64x128xf32>
    %c2_30 = arith.constant 2 : index
    %c3_31 = arith.constant 3 : index
    %87 = memref.load %arg3[%c2_30, %c3_31] : memref<4x4xf32, #tpu.memory_space<smem>>
    %88 = vector.broadcast %87 : f32 to vector<64x128xf32>
    %89 = arith.mulf %88, %54 : vector<64x128xf32>
    %90 = arith.addf %86, %89 : vector<64x128xf32>
    %91 = arith.mulf %42, %90 : vector<64x128xf32>
    %92 = arith.addf %83, %91 : vector<64x128xf32>
    %c3_32 = arith.constant 3 : index
    %c3_33 = arith.constant 3 : index
    %93 = memref.load %arg3[%c3_32, %c3_33] : memref<4x4xf32, #tpu.memory_space<smem>>
    %94 = vector.broadcast %93 : f32 to vector<64x128xf32>
    %95 = arith.mulf %94, %54 : vector<64x128xf32>
    %96 = arith.mulf %54, %95 : vector<64x128xf32>
    %97 = arith.addf %92, %96 : vector<64x128xf32>
    %cst_34 = arith.constant 0.000000e+00 : f32
    %98 = vector.broadcast %cst_34 : f32 to vector<64x128xf32>
    %99 = arith.subf %98, %97 : vector<64x128xf32>
    %100 = tpu.iota {dimensions = array<i32: 1>} : vector<64x128xi32>
    %c128_i32 = arith.constant 128 : i32
    %101 = arith.muli %arg2, %c128_i32 : i32
    %102 = vector.broadcast %101 : i32 to vector<64x128xi32>
    %103 = arith.addi %100, %102 : vector<64x128xi32>
    %c64_i32 = arith.constant 64 : i32
    %104 = vector.broadcast %c64_i32 : i32 to vector<64x128xi32>
    %105 = arith.cmpi slt, %103, %104 : vector<64x128xi32>
    %cst_35 = arith.constant -1.000000e+30 : f32
    %106 = vector.broadcast %cst_35 : f32 to vector<64x128xf32>
    %107 = arith.select %105, %99, %106 : vector<64x128xi1>, vector<64x128xf32>
    %108 = arith.sitofp %103 : vector<64x128xi32> to vector<64x128xf32>
    %cst_36 = arith.constant dense<0xFF800000> : vector<64xf32>
    %109 = vector.multi_reduction <maximumf>, %107, %cst_36 [1] : vector<64x128xf32> to vector<64xf32>
    %110 = vector.shape_cast %109 : vector<64xf32> to vector<64x1xf32>
    %111 = vector.broadcast %110 : vector<64x1xf32> to vector<64x128xf32>
    %112 = arith.cmpf oeq, %107, %111 : vector<64x128xf32>
    %cst_37 = arith.constant 1.000000e+09 : f32
    %113 = vector.broadcast %cst_37 : f32 to vector<64x128xf32>
    %114 = arith.select %112, %108, %113 : vector<64x128xi1>, vector<64x128xf32>
    %cst_38 = arith.constant dense<0x7F800000> : vector<64xf32>
    %115 = vector.multi_reduction <minimumf>, %114, %cst_38 [1] : vector<64x128xf32> to vector<64xf32>
    %116 = vector.shape_cast %115 : vector<64xf32> to vector<64x1xf32>
    %117 = vector.broadcast %116 : vector<64x1xf32> to vector<64x128xf32>
    %118 = arith.cmpf oeq, %108, %117 : vector<64x128xf32>
    %cst_39 = arith.constant -1.000000e+30 : f32
    %119 = vector.broadcast %cst_39 : f32 to vector<64x128xf32>
    %120 = arith.select %118, %119, %107 : vector<64x128xi1>, vector<64x128xf32>
    %cst_40 = arith.constant dense<0xFF800000> : vector<64xf32>
    %121 = vector.multi_reduction <maximumf>, %120, %cst_40 [1] : vector<64x128xf32> to vector<64xf32>
    %122 = vector.shape_cast %121 : vector<64xf32> to vector<64x1xf32>
    %123 = vector.broadcast %122 : vector<64x1xf32> to vector<64x128xf32>
    %124 = arith.cmpf oeq, %120, %123 : vector<64x128xf32>
    %cst_41 = arith.constant 1.000000e+09 : f32
    %125 = vector.broadcast %cst_41 : f32 to vector<64x128xf32>
    %126 = arith.select %124, %108, %125 : vector<64x128xi1>, vector<64x128xf32>
    %cst_42 = arith.constant dense<0x7F800000> : vector<64xf32>
    %127 = vector.multi_reduction <minimumf>, %126, %cst_42 [1] : vector<64x128xf32> to vector<64xf32>
    %128 = vector.shape_cast %127 : vector<64xf32> to vector<64x1xf32>
    %129 = vector.broadcast %128 : vector<64x1xf32> to vector<64x128xf32>
    %130 = arith.cmpf oeq, %108, %129 : vector<64x128xf32>
    %cst_43 = arith.constant -1.000000e+30 : f32
    %131 = vector.broadcast %cst_43 : f32 to vector<64x128xf32>
    %132 = arith.select %130, %131, %120 : vector<64x128xi1>, vector<64x128xf32>
    %cst_44 = arith.constant dense<0xFF800000> : vector<64xf32>
    %133 = vector.multi_reduction <maximumf>, %132, %cst_44 [1] : vector<64x128xf32> to vector<64xf32>
    %134 = vector.shape_cast %133 : vector<64xf32> to vector<64x1xf32>
    %135 = vector.broadcast %134 : vector<64x1xf32> to vector<64x128xf32>
    %136 = arith.cmpf oeq, %132, %135 : vector<64x128xf32>
    %cst_45 = arith.constant 1.000000e+09 : f32
    %137 = vector.broadcast %cst_45 : f32 to vector<64x128xf32>
    %138 = arith.select %136, %108, %137 : vector<64x128xi1>, vector<64x128xf32>
    %cst_46 = arith.constant dense<0x7F800000> : vector<64xf32>
    %139 = vector.multi_reduction <minimumf>, %138, %cst_46 [1] : vector<64x128xf32> to vector<64xf32>
    %140 = vector.shape_cast %139 : vector<64xf32> to vector<64x1xf32>
    %c0_47 = arith.constant 0 : index
    %c0_48 = arith.constant 0 : index
    %c0_49 = arith.constant 0 : index
    %141 = vector.load %arg6[%c0_47, %c0_48, %c0_49] : memref<1x64x3xf32, #tpu.memory_space<vmem>>, vector<1x64x3xf32>
    %142 = vector.shape_cast %141 : vector<1x64x3xf32> to vector<64x3xf32>
    %c0_50 = arith.constant 0 : index
    %c0_51 = arith.constant 0 : index
    %c0_52 = arith.constant 0 : index
    %143 = vector.load %arg7[%c0_50, %c0_51, %c0_52] : memref<1x64x3xi32, #tpu.memory_space<vmem>>, vector<1x64x3xi32>
    %144 = vector.shape_cast %143 : vector<1x64x3xi32> to vector<64x3xi32>
    %145 = arith.sitofp %144 : vector<64x3xi32> to vector<64x3xf32>
    %146 = vector.extract_strided_slice %142 {offsets = [0, 0], sizes = [64, 1], strides = [1, 1]} : vector<64x3xf32> to vector<64x1xf32>
    %147 = vector.extract_strided_slice %142 {offsets = [0, 1], sizes = [64, 1], strides = [1, 1]} : vector<64x3xf32> to vector<64x1xf32>
    %148 = vector.extract_strided_slice %142 {offsets = [0, 2], sizes = [64, 1], strides = [1, 1]} : vector<64x3xf32> to vector<64x1xf32>
    %149 = vector.extract_strided_slice %145 {offsets = [0, 0], sizes = [64, 1], strides = [1, 1]} : vector<64x3xf32> to vector<64x1xf32>
    %150 = vector.extract_strided_slice %145 {offsets = [0, 1], sizes = [64, 1], strides = [1, 1]} : vector<64x3xf32> to vector<64x1xf32>
    %151 = vector.extract_strided_slice %145 {offsets = [0, 2], sizes = [64, 1], strides = [1, 1]} : vector<64x3xf32> to vector<64x1xf32>
    %152 = tpu.iota {dimensions = array<i32: 1>} : vector<64x3xi32>
    %cst_53 = arith.constant -1.000000e+30 : f32
    %153 = vector.broadcast %cst_53 : f32 to vector<64x3xf32>
    %cst_54 = arith.constant -1.000000e+00 : f32
    %154 = vector.broadcast %cst_54 : f32 to vector<64x3xf32>
    %155 = arith.maximumf %146, %147 : vector<64x1xf32>
    %156 = arith.maximumf %155, %148 : vector<64x1xf32>
    %157 = arith.maximumf %156, %110 : vector<64x1xf32>
    %158 = arith.maximumf %157, %122 : vector<64x1xf32>
    %159 = arith.maximumf %158, %134 : vector<64x1xf32>
    %false = arith.constant false
    %160 = vector.broadcast %false : i1 to vector<64x1xi1>
    %cst_55 = arith.constant -1.000000e+00 : f32
    %161 = vector.broadcast %cst_55 : f32 to vector<64x1xf32>
    %162 = arith.cmpf oeq, %146, %159 : vector<64x1xf32>
    %cst_56 = arith.constant dense<true> : vector<64x1xi1>
    %163 = arith.xori %160, %cst_56 : vector<64x1xi1>
    %164 = arith.andi %162, %163 : vector<64x1xi1>
    %165 = arith.select %164, %149, %161 : vector<64x1xi1>, vector<64x1xf32>
    %cst_57 = arith.constant -1.000000e+30 : f32
    %166 = vector.broadcast %cst_57 : f32 to vector<64x1xf32>
    %167 = arith.select %164, %166, %146 : vector<64x1xi1>, vector<64x1xf32>
    %168 = arith.ori %160, %164 : vector<64x1xi1>
    %169 = arith.cmpf oeq, %147, %159 : vector<64x1xf32>
    %cst_58 = arith.constant dense<true> : vector<64x1xi1>
    %170 = arith.xori %168, %cst_58 : vector<64x1xi1>
    %171 = arith.andi %169, %170 : vector<64x1xi1>
    %172 = arith.select %171, %150, %165 : vector<64x1xi1>, vector<64x1xf32>
    %cst_59 = arith.constant -1.000000e+30 : f32
    %173 = vector.broadcast %cst_59 : f32 to vector<64x1xf32>
    %174 = arith.select %171, %173, %147 : vector<64x1xi1>, vector<64x1xf32>
    %175 = arith.ori %168, %171 : vector<64x1xi1>
    %176 = arith.cmpf oeq, %148, %159 : vector<64x1xf32>
    %cst_60 = arith.constant dense<true> : vector<64x1xi1>
    %177 = arith.xori %175, %cst_60 : vector<64x1xi1>
    %178 = arith.andi %176, %177 : vector<64x1xi1>
    %179 = arith.select %178, %151, %172 : vector<64x1xi1>, vector<64x1xf32>
    %cst_61 = arith.constant -1.000000e+30 : f32
    %180 = vector.broadcast %cst_61 : f32 to vector<64x1xf32>
    %181 = arith.select %178, %180, %148 : vector<64x1xi1>, vector<64x1xf32>
    %182 = arith.ori %175, %178 : vector<64x1xi1>
    %183 = arith.cmpf oeq, %110, %159 : vector<64x1xf32>
    %cst_62 = arith.constant dense<true> : vector<64x1xi1>
    %184 = arith.xori %182, %cst_62 : vector<64x1xi1>
    %185 = arith.andi %183, %184 : vector<64x1xi1>
    %186 = arith.select %185, %116, %179 : vector<64x1xi1>, vector<64x1xf32>
    %cst_63 = arith.constant -1.000000e+30 : f32
    %187 = vector.broadcast %cst_63 : f32 to vector<64x1xf32>
    %188 = arith.select %185, %187, %110 : vector<64x1xi1>, vector<64x1xf32>
    %189 = arith.ori %182, %185 : vector<64x1xi1>
    %190 = arith.cmpf oeq, %122, %159 : vector<64x1xf32>
    %cst_64 = arith.constant dense<true> : vector<64x1xi1>
    %191 = arith.xori %189, %cst_64 : vector<64x1xi1>
    %192 = arith.andi %190, %191 : vector<64x1xi1>
    %193 = arith.select %192, %128, %186 : vector<64x1xi1>, vector<64x1xf32>
    %cst_65 = arith.constant -1.000000e+30 : f32
    %194 = vector.broadcast %cst_65 : f32 to vector<64x1xf32>
    %195 = arith.select %192, %194, %122 : vector<64x1xi1>, vector<64x1xf32>
    %196 = arith.ori %189, %192 : vector<64x1xi1>
    %197 = arith.cmpf oeq, %134, %159 : vector<64x1xf32>
    %cst_66 = arith.constant dense<true> : vector<64x1xi1>
    %198 = arith.xori %196, %cst_66 : vector<64x1xi1>
    %199 = arith.andi %197, %198 : vector<64x1xi1>
    %200 = arith.select %199, %140, %193 : vector<64x1xi1>, vector<64x1xf32>
    %cst_67 = arith.constant -1.000000e+30 : f32
    %201 = vector.broadcast %cst_67 : f32 to vector<64x1xf32>
    %202 = arith.select %199, %201, %134 : vector<64x1xi1>, vector<64x1xf32>
    %c0_i32_68 = arith.constant 0 : i32
    %203 = vector.broadcast %c0_i32_68 : i32 to vector<64x3xi32>
    %204 = arith.cmpi eq, %152, %203 : vector<64x3xi32>
    %205 = vector.shape_cast %159 : vector<64x1xf32> to vector<64x1xf32>
    %206 = vector.broadcast %205 : vector<64x1xf32> to vector<64x3xf32>
    %207 = arith.select %204, %206, %153 : vector<64x3xi1>, vector<64x3xf32>
    %c0_i32_69 = arith.constant 0 : i32
    %208 = vector.broadcast %c0_i32_69 : i32 to vector<64x3xi32>
    %209 = arith.cmpi eq, %152, %208 : vector<64x3xi32>
    %210 = vector.shape_cast %200 : vector<64x1xf32> to vector<64x1xf32>
    %211 = vector.broadcast %210 : vector<64x1xf32> to vector<64x3xf32>
    %212 = arith.select %209, %211, %154 : vector<64x3xi1>, vector<64x3xf32>
    %213 = arith.maximumf %167, %174 : vector<64x1xf32>
    %214 = arith.maximumf %213, %181 : vector<64x1xf32>
    %215 = arith.maximumf %214, %188 : vector<64x1xf32>
    %216 = arith.maximumf %215, %195 : vector<64x1xf32>
    %217 = arith.maximumf %216, %202 : vector<64x1xf32>
    %false_70 = arith.constant false
    %218 = vector.broadcast %false_70 : i1 to vector<64x1xi1>
    %cst_71 = arith.constant -1.000000e+00 : f32
    %219 = vector.broadcast %cst_71 : f32 to vector<64x1xf32>
    %220 = arith.cmpf oeq, %167, %217 : vector<64x1xf32>
    %cst_72 = arith.constant dense<true> : vector<64x1xi1>
    %221 = arith.xori %218, %cst_72 : vector<64x1xi1>
    %222 = arith.andi %220, %221 : vector<64x1xi1>
    %223 = arith.select %222, %149, %219 : vector<64x1xi1>, vector<64x1xf32>
    %cst_73 = arith.constant -1.000000e+30 : f32
    %224 = vector.broadcast %cst_73 : f32 to vector<64x1xf32>
    %225 = arith.select %222, %224, %167 : vector<64x1xi1>, vector<64x1xf32>
    %226 = arith.ori %218, %222 : vector<64x1xi1>
    %227 = arith.cmpf oeq, %174, %217 : vector<64x1xf32>
    %cst_74 = arith.constant dense<true> : vector<64x1xi1>
    %228 = arith.xori %226, %cst_74 : vector<64x1xi1>
    %229 = arith.andi %227, %228 : vector<64x1xi1>
    %230 = arith.select %229, %150, %223 : vector<64x1xi1>, vector<64x1xf32>
    %cst_75 = arith.constant -1.000000e+30 : f32
    %231 = vector.broadcast %cst_75 : f32 to vector<64x1xf32>
    %232 = arith.select %229, %231, %174 : vector<64x1xi1>, vector<64x1xf32>
    %233 = arith.ori %226, %229 : vector<64x1xi1>
    %234 = arith.cmpf oeq, %181, %217 : vector<64x1xf32>
    %cst_76 = arith.constant dense<true> : vector<64x1xi1>
    %235 = arith.xori %233, %cst_76 : vector<64x1xi1>
    %236 = arith.andi %234, %235 : vector<64x1xi1>
    %237 = arith.select %236, %151, %230 : vector<64x1xi1>, vector<64x1xf32>
    %cst_77 = arith.constant -1.000000e+30 : f32
    %238 = vector.broadcast %cst_77 : f32 to vector<64x1xf32>
    %239 = arith.select %236, %238, %181 : vector<64x1xi1>, vector<64x1xf32>
    %240 = arith.ori %233, %236 : vector<64x1xi1>
    %241 = arith.cmpf oeq, %188, %217 : vector<64x1xf32>
    %cst_78 = arith.constant dense<true> : vector<64x1xi1>
    %242 = arith.xori %240, %cst_78 : vector<64x1xi1>
    %243 = arith.andi %241, %242 : vector<64x1xi1>
    %244 = arith.select %243, %116, %237 : vector<64x1xi1>, vector<64x1xf32>
    %cst_79 = arith.constant -1.000000e+30 : f32
    %245 = vector.broadcast %cst_79 : f32 to vector<64x1xf32>
    %246 = arith.select %243, %245, %188 : vector<64x1xi1>, vector<64x1xf32>
    %247 = arith.ori %240, %243 : vector<64x1xi1>
    %248 = arith.cmpf oeq, %195, %217 : vector<64x1xf32>
    %cst_80 = arith.constant dense<true> : vector<64x1xi1>
    %249 = arith.xori %247, %cst_80 : vector<64x1xi1>
    %250 = arith.andi %248, %249 : vector<64x1xi1>
    %251 = arith.select %250, %128, %244 : vector<64x1xi1>, vector<64x1xf32>
    %cst_81 = arith.constant -1.000000e+30 : f32
    %252 = vector.broadcast %cst_81 : f32 to vector<64x1xf32>
    %253 = arith.select %250, %252, %195 : vector<64x1xi1>, vector<64x1xf32>
    %254 = arith.ori %247, %250 : vector<64x1xi1>
    %255 = arith.cmpf oeq, %202, %217 : vector<64x1xf32>
    %cst_82 = arith.constant dense<true> : vector<64x1xi1>
    %256 = arith.xori %254, %cst_82 : vector<64x1xi1>
    %257 = arith.andi %255, %256 : vector<64x1xi1>
    %258 = arith.select %257, %140, %251 : vector<64x1xi1>, vector<64x1xf32>
    %cst_83 = arith.constant -1.000000e+30 : f32
    %259 = vector.broadcast %cst_83 : f32 to vector<64x1xf32>
    %260 = arith.select %257, %259, %202 : vector<64x1xi1>, vector<64x1xf32>
    %c1_i32 = arith.constant 1 : i32
    %261 = vector.broadcast %c1_i32 : i32 to vector<64x3xi32>
    %262 = arith.cmpi eq, %152, %261 : vector<64x3xi32>
    %263 = vector.shape_cast %217 : vector<64x1xf32> to vector<64x1xf32>
    %264 = vector.broadcast %263 : vector<64x1xf32> to vector<64x3xf32>
    %265 = arith.select %262, %264, %207 : vector<64x3xi1>, vector<64x3xf32>
    %c1_i32_84 = arith.constant 1 : i32
    %266 = vector.broadcast %c1_i32_84 : i32 to vector<64x3xi32>
    %267 = arith.cmpi eq, %152, %266 : vector<64x3xi32>
    %268 = vector.shape_cast %258 : vector<64x1xf32> to vector<64x1xf32>
    %269 = vector.broadcast %268 : vector<64x1xf32> to vector<64x3xf32>
    %270 = arith.select %267, %269, %212 : vector<64x3xi1>, vector<64x3xf32>
    %271 = arith.maximumf %225, %232 : vector<64x1xf32>
    %272 = arith.maximumf %271, %239 : vector<64x1xf32>
    %273 = arith.maximumf %272, %246 : vector<64x1xf32>
    %274 = arith.maximumf %273, %253 : vector<64x1xf32>
    %275 = arith.maximumf %274, %260 : vector<64x1xf32>
    %false_85 = arith.constant false
    %276 = vector.broadcast %false_85 : i1 to vector<64x1xi1>
    %cst_86 = arith.constant -1.000000e+00 : f32
    %277 = vector.broadcast %cst_86 : f32 to vector<64x1xf32>
    %278 = arith.cmpf oeq, %225, %275 : vector<64x1xf32>
    %cst_87 = arith.constant dense<true> : vector<64x1xi1>
    %279 = arith.xori %276, %cst_87 : vector<64x1xi1>
    %280 = arith.andi %278, %279 : vector<64x1xi1>
    %281 = arith.select %280, %149, %277 : vector<64x1xi1>, vector<64x1xf32>
    %282 = arith.ori %276, %280 : vector<64x1xi1>
    %283 = arith.cmpf oeq, %232, %275 : vector<64x1xf32>
    %cst_88 = arith.constant dense<true> : vector<64x1xi1>
    %284 = arith.xori %282, %cst_88 : vector<64x1xi1>
    %285 = arith.andi %283, %284 : vector<64x1xi1>
    %286 = arith.select %285, %150, %281 : vector<64x1xi1>, vector<64x1xf32>
    %287 = arith.ori %282, %285 : vector<64x1xi1>
    %288 = arith.cmpf oeq, %239, %275 : vector<64x1xf32>
    %cst_89 = arith.constant dense<true> : vector<64x1xi1>
    %289 = arith.xori %287, %cst_89 : vector<64x1xi1>
    %290 = arith.andi %288, %289 : vector<64x1xi1>
    %291 = arith.select %290, %151, %286 : vector<64x1xi1>, vector<64x1xf32>
    %292 = arith.ori %287, %290 : vector<64x1xi1>
    %293 = arith.cmpf oeq, %246, %275 : vector<64x1xf32>
    %cst_90 = arith.constant dense<true> : vector<64x1xi1>
    %294 = arith.xori %292, %cst_90 : vector<64x1xi1>
    %295 = arith.andi %293, %294 : vector<64x1xi1>
    %296 = arith.select %295, %116, %291 : vector<64x1xi1>, vector<64x1xf32>
    %297 = arith.ori %292, %295 : vector<64x1xi1>
    %298 = arith.cmpf oeq, %253, %275 : vector<64x1xf32>
    %cst_91 = arith.constant dense<true> : vector<64x1xi1>
    %299 = arith.xori %297, %cst_91 : vector<64x1xi1>
    %300 = arith.andi %298, %299 : vector<64x1xi1>
    %301 = arith.select %300, %128, %296 : vector<64x1xi1>, vector<64x1xf32>
    %302 = arith.ori %297, %300 : vector<64x1xi1>
    %303 = arith.cmpf oeq, %260, %275 : vector<64x1xf32>
    %cst_92 = arith.constant dense<true> : vector<64x1xi1>
    %304 = arith.xori %302, %cst_92 : vector<64x1xi1>
    %305 = arith.andi %303, %304 : vector<64x1xi1>
    %306 = arith.select %305, %140, %301 : vector<64x1xi1>, vector<64x1xf32>
    %c2_i32 = arith.constant 2 : i32
    %307 = vector.broadcast %c2_i32 : i32 to vector<64x3xi32>
    %308 = arith.cmpi eq, %152, %307 : vector<64x3xi32>
    %309 = vector.shape_cast %275 : vector<64x1xf32> to vector<64x1xf32>
    %310 = vector.broadcast %309 : vector<64x1xf32> to vector<64x3xf32>
    %311 = arith.select %308, %310, %265 : vector<64x3xi1>, vector<64x3xf32>
    %c2_i32_93 = arith.constant 2 : i32
    %312 = vector.broadcast %c2_i32_93 : i32 to vector<64x3xi32>
    %313 = arith.cmpi eq, %152, %312 : vector<64x3xi32>
    %314 = vector.shape_cast %306 : vector<64x1xf32> to vector<64x1xf32>
    %315 = vector.broadcast %314 : vector<64x1xf32> to vector<64x3xf32>
    %316 = arith.select %313, %315, %270 : vector<64x3xi1>, vector<64x3xf32>
    %c0_94 = arith.constant 0 : index
    %c0_95 = arith.constant 0 : index
    %c0_96 = arith.constant 0 : index
    %317 = vector.load %arg6[%c0_94, %c0_95, %c0_96] : memref<1x64x3xf32, #tpu.memory_space<vmem>>, vector<1x64x3xf32>
    %318 = vector.shape_cast %317 : vector<1x64x3xf32> to vector<64x3xf32>
    %319 = vector.shape_cast %311 : vector<64x3xf32> to vector<1x64x3xf32>
    tpu.vector_store %arg6[%c0_94, %c0_95, %c0_96], %319 {strides = array<i32>} : memref<1x64x3xf32, #tpu.memory_space<vmem>>, vector<1x64x3xf32>,
    %320 = arith.fptosi %316 : vector<64x3xf32> to vector<64x3xi32>
    %c0_97 = arith.constant 0 : index
    %c0_98 = arith.constant 0 : index
    %c0_99 = arith.constant 0 : index
    %321 = vector.load %arg7[%c0_97, %c0_98, %c0_99] : memref<1x64x3xi32, #tpu.memory_space<vmem>>, vector<1x64x3xi32>
    %322 = vector.shape_cast %321 : vector<1x64x3xi32> to vector<64x3xi32>
    %323 = vector.shape_cast %320 : vector<64x3xi32> to vector<1x64x3xi32>
    tpu.vector_store %arg7[%c0_97, %c0_98, %c0_99], %323 {strides = array<i32>} : memref<1x64x3xi32, #tpu.memory_space<vmem>>, vector<1x64x3xi32>,
    return
  }
  func.func @transform_0(%arg0: i32, %arg1: i32, %arg2: i32) -> (i32, i32) {
    %c0_i32 = arith.constant 0 : i32
    %c0_i32_0 = arith.constant 0 : i32
    %c0_i32_1 = arith.constant 0 : i32
    return %c0_i32, %c0_i32_0 : i32, i32
  }
  func.func @transform_1(%arg0: i32, %arg1: i32, %arg2: i32) -> (i32, i32, i32) {
    %c0_i32 = arith.constant 0 : i32
    %c0_i32_0 = arith.constant 0 : i32
    return %arg0, %arg1, %c0_i32 : i32, i32, i32
  }
  func.func @transform_2(%arg0: i32, %arg1: i32, %arg2: i32) -> (i32, i32, i32) {
    %c0_i32 = arith.constant 0 : i32
    %c0_i32_0 = arith.constant 0 : i32
    return %arg0, %c0_i32, %arg2 : i32, i32, i32
  }
  func.func @transform_3(%arg0: i32, %arg1: i32, %arg2: i32) -> (i32, i32, i32) {
    %c0_i32 = arith.constant 0 : i32
    %c0_i32_0 = arith.constant 0 : i32
    return %arg0, %arg1, %c0_i32 : i32, i32, i32
  }
  func.func @transform_4(%arg0: i32, %arg1: i32, %arg2: i32) -> (i32, i32, i32) {
    %c0_i32 = arith.constant 0 : i32
    %c0_i32_0 = arith.constant 0 : i32
    return %arg0, %arg1, %c0_i32 : i32, i32, i32
  }
}

</mosaic_0001>

<bundles_post_ra>
// kernel: srknn_forward.1
= control target key start
LH: loop header
LB: loop body
LE: loop exit
PB: predicated region body
PF: predicated region fallthrough
CT: control target
= control target key end

     0   :  { %10 = vsyncpa [#allocation3], 0  ;;  %s3668_s15 = smov 0   ;;  %s3670_s16 = smov 0   ;;  %s8226_s0 = inlined_call_operand.vmem [shape: f32[4,4], index: 0, kind: input, shape index: {}]   ;;  %s8227_s1 = inlined_call_operand.vmem [shape: f32[2,64,4], index: 1, kind: input, shape index: {}]   ;;  %s8228_s2 = inlined_call_operand.vmem [shape: f32[2,4,128], index: 2, kind: input, shape index: {}]   ;;  %s8229_s3 = inlined_call_operand.vmem [shape: f32[2,64,3], index: 3, kind: output, shape index: {0}]   ;;  %s8230_s4 = inlined_call_operand.vmem [shape: s32[2,64,3], index: 4, kind: output, shape index: {1}]  }
   0x1   :  { %s3672_s17 = smov 0  }
   0x2 LB: > { %s3390_s18 = sadd.s32 4294967295, %s3630_s17   ;;  %s35_s19 = sadd.s32 1, %s3626_s16  ;;  %s3630_s17 = sphi %s3672_s17, %s16_s17   ;;  %s3626_s16 = sphi %s3670_s16, %s9445_s16   ;;  %s3622_s15 = sphi %s3668_s15, %s9444_s15  }
   0x3   : > { %p37_p0 = scmp.ge.s32.totalorder %s35_s19, 2  ;;  %p3392_p1 = scmp.ge.s32.totalorder %s3630_s17, 1 }
   0x4   : > { %p173_p2 = scmp.lt.s32.totalorder %s3630_s17, 3  ;;  %p3466_p4 = scmp.eq.s32.totalorder %s3390_s18, 0 }
   0x5   : > { %s9447_s19 = smov (%p37_p0, %s35_s19), 0  ;;  %s185_s22 = sshll.u32 %s8226_s0, 4  ;;  %s186_s22 = int_to_ptr.vmem [resolvable:$true] %s185_s22 }
   0x6   : > { %p174_p3 = pnand %p3392_p1, %p173_p2  ;;  %s3632_s23 = smov [#allocation2]  }
   0x8   : > { %p3462_p5 = pneg %p174_p3  ;;  %221 = sbr.rel (%p174_p3) target bundleno = 2729 (0xaa9), region = 32 }
   0xa   : > { %p3463_p6 = pnand %p3466_p4, %p3462_p5 }
   0xc   : > { %3465 = dma.vmem_to_smem (!%p3463_p6), %s186_s22, 64, %s3632_s23, [#allocation3]  }
   0xd   : > { %3617 = dma.done.wait (%p3466_p4), [#allocation3], 64  }
   0xe   : > { %3619 = vsyncadd (%p3466_p4), [#allocation3], 4294967232 }
   0xf   : > { %228 = sfence }
  0x10   : > { %p274_p7 = scmp.lt.s32.totalorder %s3622_s15, 1  ;;  %v3633_v0 = vmov 1   ;;  %v8231_v1 = vmov 0   ;;  %v3635_v10 = vmov 2   ;;  %v3636_v11 = vmov 3   ;;  %s3728_s6 = sld [smem:[#allocation2]] }
  0x11   : > { %3506 = vset.pattern.permute.xlu0 %v3633_v0  ;;  %3504 = vset.pattern.permute.xlu2 %v8231_v1  ;;  %s3732_s7 = sld [smem:[#allocation2 + $0x1]]  ;;  %vm8313_vm1 = vcmask 23552   ;;  %s3639_s26 = smov 126  }
  0x12   : > { %3503 = vset.pattern.permute.xlu1 %v8231_v1  ;;  %s9449_s15 = smov (!%p274_p7, %s3622_s15), 1  ;;  %s3735_s8 = sld [smem:[#allocation2 + $0x81]] }
  0x13   : > { %s3695_s24 = sshll.u32 %s9449_s15, 6  ;;  %s3399_s28 = sshll.u32 %s9449_s15, 2 }
  0x14   : > { %s281_s27 = scalar_lea.vmem %s8227_s1, %s3695_s24  ;;  %s289_s5 = scalar_lea.vmem %s8228_s2, %s3399_s28 }
  0x15   : > { %v335_v2 = vld [vmem:[%s281_s27 + $0x20] sm:$0xff]  ;;  %v333_v3 = vld [vmem:[%s281_s27 + $0x10] sm:$0xff]  ;;  %v332_v4 = vld [vmem:[%s281_s27 + $0x8] sm:$0xff]  ;;  %s3737_s9 = sld [smem:[#allocation2 + $0x82]]  ;;  %s4076_s21 = scalar_lea.vmem %s8230_s4, %s3695_s24 }
  0x16   : > { %362 = vperm.xlu2 %3504, %v335_v2   ;;  %352 = vperm.xlu1 %3503, %v333_v3   ;;  %v336_v5 = vld [vmem:[%s281_s27 + $0x28] sm:$0xff]  ;;  %v334_v6 = vld [vmem:[%s281_s27 + $0x18] sm:$0xff]  ;;  %v337_v7 = vld [vmem:[%s281_s27 + $0x30] sm:$0xff]  ;;  %s3744_s10 = sld [smem:[#allocation2 + $0x2]]  ;;  %s4087_s25 = scalar_lea.vmem %s8229_s3, %s3695_s24 }
  0x17   : > { %426 = vperm.xlu0 %3506, %v332_v4   ;;  %v338_v8 = vld [vmem:[%s281_s27 + $0x38] sm:$0xff]  ;;  %v331_v9 = vld [vmem:[%s281_s27] sm:$0xff]  ;;  %s3751_s11 = sld [smem:[#allocation2 + $0x102]]  ;;  %s3638_s24 = smov 127  }
  0x18   : > { %v3708_v15 = vld [vmem:[%s289_s5] sm:$0xf]  ;;  %s3775_s12 = sld [smem:[#allocation2 + $0x83]]  ;;  %s3640_s27 = smov 1  }
  0x19   : > { %v3711_v19 = vperm.slane %v3708_v15, 0  ;;  %v3714_v20 = vperm.slane %v3708_v15, 1  ;;  %v3725_v38 = vperm.slane %v3708_v15, 2  ;;  %s3785_s13 = sld [smem:[#allocation2 + $0x103]]  ;;  %s3641_s28 = smov 2  }
  0x1a   : > { %s3814_s14 = sld [smem:[#allocation2 + $0x183]] }
  0x1b   : > { %s3820_s15 = sld [smem:[#allocation2 + $0x3]] }
  0x1e   : > { %367 = vperm.xlu2 %3504, %v336_v5   ;;  %357 = vperm.xlu1 %3503, %v334_v6  }
  0x1f   : > { %446 = vperm.xlu0 %3506, %v337_v7  }
  0x26   : > { %3505 = vset.pattern.permute.xlu2 %v3633_v0  ;;  %377 = vperm.xlu1 %3503, %v338_v8  }
  0x27   : > { %3509 = vset.pattern.permute.xlu0 %v3635_v10  ;;  %422 = vperm.xlu2 %3505, %v331_v9  }
  0x28   : > { %499 = vperm.xlu0 %3509, %v332_v4  }
  0x2e   : > { %3507 = vset.pattern.permute.xlu1 %v3633_v0 }
  0x2f   : > { %430 = vperm.xlu1 %3507, %v333_v3   ;;  %434 = vperm.xlu2 %3505, %v334_v6  }
  0x30   : > { %519 = vperm.xlu0 %3509, %v337_v7  }
  0x37   : > { %438 = vperm.xlu1 %3507, %v335_v2   ;;  %442 = vperm.xlu2 %3505, %v336_v5  }
  0x38   : > { %3512 = vset.pattern.permute.xlu0 %v3636_v11 }
  0x39   : > { %572 = vperm.xlu0 %3512, %v332_v4  }
  0x3f   : > { %450 = vperm.xlu1 %3507, %v338_v8   ;;  %3508 = vset.pattern.permute.xlu2 %v3635_v10 }
  0x40   : > { %495 = vperm.xlu2 %3508, %v331_v9  }
  0x41   : > { %592 = vperm.xlu0 %3512, %v337_v7  }
  0x47   : > { %3510 = vset.pattern.permute.xlu1 %v3635_v10 }
  0x48   : > { %503 = vperm.xlu1 %3510, %v333_v3   ;;  %507 = vperm.xlu2 %3508, %v334_v6  }
  0x49   : > { %3514 = vset.pattern.permute.xlu0 %v8231_v1 }
  0x4a   : > { %342 = vperm.xlu0 %3514, %v331_v9  }
  0x50   : > { %511 = vperm.xlu1 %3510, %v335_v2   ;;  %515 = vperm.xlu2 %3508, %v336_v5  }
  0x52   : > { %347 = vperm.xlu0 %3514, %v332_v4  }
  0x58   : > { %523 = vperm.xlu1 %3510, %v338_v8   ;;  %3511 = vset.pattern.permute.xlu2 %v3636_v11 }
  0x59   : > { %568 = vperm.xlu2 %3511, %v331_v9  }
  0x5a   : > { %372 = vperm.xlu0 %3514, %v337_v7  }
  0x60   : > { %3513 = vset.pattern.permute.xlu1 %v3636_v11 }
  0x61   : > { %576 = vperm.xlu1 %3513, %v333_v3   ;;  %580 = vperm.xlu2 %3511, %v334_v6  }
  0x69   : > { %584 = vperm.xlu1 %3513, %v335_v2   ;;  %588 = vperm.xlu2 %3511, %v336_v5   ;;  %v3741_v2 = vstv %s3728_s6 }
  0x70   : > { %v363_v12 = vpop.permute.xlu2 %362 }
  0x71   : > { %596 = vperm.xlu1 %3513, %v338_v8   ;;  %3515 = vset.pattern.permute.xlu2 %v8231_v1  ;;  %v385_v21 = vsub.f32 %v363_v12, %v3711_v19 }
  0x73   : > { %v393_v27 = vmul.f32 0.5, %v385_v21  ;;  %v3762_v21 = vstv %s3735_s8 }
  0x74   : > { %8547 = vst [vmem:[#allocation6_spill] sm:$0xff] %v3762_v21 }
  0x75   : > { %3517 = vtanh.f32 %v393_v27 }
  0x78   : > { %v368_v13 = vpop.permute.xlu2 %367 }
  0x79   : > { %3516 = vset.pattern.permute.xlu1 %v8231_v1  ;;  %v386_v22 = vsub.f32 %v368_v13, %v3711_v19  ;;  %v3756_v13 = vperm.slane %v3708_v15, 3  ;;  %v3773_v15 = vstv %s3737_s9 }
  0x7b   : > { %v394_v28 = vmul.f32 0.5, %v386_v22  ;;  %v3518_v44 = vpop.eup %3517 }
  0x7c   : > { %v409_v52 = vmul.f32 0.5, %v3518_v44 }
  0x7d   : > { %3519 = vtanh.f32 %v394_v28 }
  0x7e   : > { %v3747_v6 = vadd.f32 0.5, %v409_v52 }
  0x80   : > { %8546 = vst [vmem:[#allocation5_spill] sm:$0xff] %v3747_v6 }
  0x81   : > { %v423_v14 = vpop.permute.xlu2 %422 }
  0x82   : > { %v454_v23 = vsub.f32 %v423_v14, %v3714_v20 }
  0x83   : > { %v3520_v47 = vpop.eup %3519 }
  0x84   : > { %v462_v30 = vmul.f32 0.5, %v454_v23  ;;  %v410_v53 = vmul.f32 0.5, %v3520_v47 }
  0x86   : > { %3521 = vtanh.f32 %v462_v30  ;;  %v3749_v7 = vadd.f32 0.5, %v410_v53 }
  0x88   : > { %v353_v16 = vpop.permute.xlu1 %352 }
  0x89   : > { %v427_v17 = vpop.permute.xlu0 %426  ;;  %v435_v18 = vpop.permute.xlu2 %434  ;;  %v383_v29 = vsub.f32 %v353_v16, %v3711_v19 }
  0x8a   : > { %v455_v31 = vsub.f32 %v427_v17, %v3714_v20  ;;  %v457_v32 = vsub.f32 %v435_v18, %v3714_v20  ;;  %v3759_v18 = vstv %s3732_s7 }
  0x8b   : > { %v391_v34 = vmul.f32 0.5, %v383_v29 }
  0x8c   : > { %v463_v35 = vmul.f32 0.5, %v455_v31  ;;  %v465_v39 = vmul.f32 0.5, %v457_v32  ;;  %v3522_v50 = vpop.eup %3521 }
  0x8d   : > { %3523 = vtanh.f32 %v391_v34  ;;  %v478_v56 = vmul.f32 0.5, %v3522_v50 }
  0x8e   : > { %3525 = vtanh.f32 %v463_v35 }
  0x8f   : > { %3527 = vtanh.f32 %v465_v39  ;;  %v3753_v9 = vadd.f32 0.5, %v478_v56 }
  0x90   : > { %v358_v24 = vpop.permute.xlu1 %357 }
  0x91   : > { %v447_v25 = vpop.permute.xlu0 %446  ;;  %v443_v26 = vpop.permute.xlu2 %442  ;;  %v384_v33 = vsub.f32 %v358_v24, %v3711_v19  ;;  %v3766_v24 = vmul.f32 %v3741_v2, %v3747_v6 }
  0x92   : > { %v459_v36 = vsub.f32 %v443_v26, %v3714_v20  ;;  %v460_v40 = vsub.f32 %v447_v25, %v3714_v20  ;;  %v3770_v25 = vmul.f32 %v3741_v2, %v3749_v7  ;;  %v3779_v26 = vmul.f32 %v3759_v18, %v3753_v9 }
  0x93   : > { %v392_v41 = vmul.f32 0.5, %v384_v33  ;;  %v3524_v55 = vpop.eup %3523 }
  0x94   : > { %v467_v45 = vmul.f32 0.5, %v459_v36  ;;  %v468_v48 = vmul.f32 0.5, %v460_v40  ;;  %v3526_v59 = vpop.eup %3525  ;;  %v407_v10 = vmul.f32 0.5, %v3524_v55 }
  0x95   : > { %3529 = vtanh.f32 %v392_v41  ;;  %v3528_v0 = vpop.eup %3527  ;;  %v479_v11 = vmul.f32 0.5, %v3526_v59 }
  0x96   : > { %3531 = vtanh.f32 %v467_v45  ;;  %v481_v14 = vmul.f32 0.5, %v3528_v0  ;;  %v3781_v27 = vadd.f32 0.5, %v407_v10 }
  0x97   : > { %3533 = vtanh.f32 %v468_v48  ;;  %v3783_v28 = vadd.f32 0.5, %v479_v11 }
  0x98   : > { %v378_v37 = vpop.permute.xlu1 %377  ;;  %8548 = vst [vmem:[#allocation7_spill] sm:$0xff] %v3781_v27  ;;  %v3787_v32 = vadd.f32 0.5, %v481_v14  ;;  %v3806_v47 = vmul.f32 %v3741_v2, %v3781_v27 }
  0x99   : > { %v388_v46 = vsub.f32 %v378_v37, %v3711_v19  ;;  %v3792_v37 = vmul.f32 %v3762_v21, %v3753_v9  ;;  %v3810_v48 = vmul.f32 %v3759_v18, %v3783_v28 }
  0x9a   : > { %v500_v42 = vpop.permute.xlu0 %499  ;;  %v496_v43 = vpop.permute.xlu2 %495  ;;  %v655_v52 = vmul.f32 %v3759_v18, %v3787_v32 }
  0x9b   : > { %v528_v49 = vsub.f32 %v500_v42, %v3725_v38  ;;  %v527_v51 = vsub.f32 %v496_v43, %v3725_v38  ;;  %v396_v54 = vmul.f32 0.5, %v388_v46  ;;  %v3530_v5 = vpop.eup %3529  ;;  %v3798_v43 = vstv %s3744_s10 }
  0x9c   : > { %v3532_v12 = vpop.eup %3531  ;;  %v408_v22 = vmul.f32 0.5, %v3530_v5  ;;  %v3802_v46 = vstv %s3751_s11  ;;  %v3836_v5 = vstv %s3785_s13 }
  0x9d   : > { %v536_v57 = vmul.f32 0.5, %v528_v49  ;;  %v535_v60 = vmul.f32 0.5, %v527_v51  ;;  %3535 = vtanh.f32 %v396_v54  ;;  %v3534_v17 = vpop.eup %3533  ;;  %v483_v29 = vmul.f32 0.5, %v3532_v12 }
  0x9e   : > { %v484_v33 = vmul.f32 0.5, %v3534_v17  ;;  %v3794_v39 = vadd.f32 0.5, %v408_v22 }
  0x9f   : > { %3537 = vtanh.f32 %v536_v57  ;;  %v3812_v49 = vadd.f32 0.5, %v483_v29 }
  0xa0   : > { %3539 = vtanh.f32 %v535_v60  ;;  %v3818_v53 = vadd.f32 0.5, %v484_v33  ;;  %v645_v56 = vmul.f32 %v3741_v2, %v3794_v39  ;;  %v715_v60 = vmul.f32 %v3762_v21, %v3783_v28 }
  0xa1   : > { %v431_v58 = vpop.permute.xlu1 %430  ;;  %v657_v0 = vmul.f32 %v3759_v18, %v3812_v49 }
  0xa2   : > { %v456_v61 = vsub.f32 %v431_v58, %v3714_v20  ;;  %v520_v62 = vpop.permute.xlu0 %519  ;;  %v508_v63 = vpop.permute.xlu2 %507  ;;  %v3844_v10 = vmul.f32 %v3762_v21, %v3818_v53  ;;  %v3849_v14 = vadd.f32 %v655_v52, %v645_v56 }
  0xa3   : > { %v533_v3 = vsub.f32 %v520_v62, %v3725_v38  ;;  %v530_v4 = vsub.f32 %v508_v63, %v3725_v38  ;;  %v3536_v31 = vpop.eup %3535  ;;  %v3831_v62 = vstv %s3775_s12 }
  0xa4   : > { %v464_v8 = vmul.f32 0.5, %v456_v61  ;;  %v412_v57 = vmul.f32 0.5, %v3536_v31  ;;  %v3828_v61 = vmul.f32 %v3762_v21, %v3787_v32 }
  0xa5   : > { %v541_v16 = vmul.f32 0.5, %v533_v3  ;;  %v538_v23 = vmul.f32 0.5, %v530_v4  ;;  %v3538_v36 = vpop.eup %3537 }
  0xa6   : > { %3541 = vtanh.f32 %v464_v8  ;;  %v3540_v42 = vpop.eup %3539  ;;  %v552_v54 = vmul.f32 0.5, %v3538_v36  ;;  %v3840_v8 = vmul.f32 %v3759_v18, %v3818_v53  ;;  %v3858_v36 = vadd.f32 %v657_v0, %v3770_v25 }
  0xa7   : > { %3543 = vtanh.f32 %v541_v16  ;;  %v551_v58 = vmul.f32 0.5, %v3540_v42  ;;  %v3851_v16 = vadd.f32 0.5, %v412_v57 }
  0xa8   : > { %3545 = vtanh.f32 %v538_v23  ;;  %8549 = vst [vmem:[#allocation8_spill] sm:$0xff] %v3840_v8  ;;  %v3846_v11 = vadd.f32 0.5, %v552_v54 }
  0xa9   : > { %v439_v30 = vpop.permute.xlu1 %438  ;;  %8550 = vst [vmem:[#allocation9_spill] sm:$0xff] %v3851_v16  ;;  %v3853_v17 = vadd.f32 0.5, %v551_v58  ;;  %v3876_v25 = vmul.f32 %v3741_v2, %v3851_v16 }
  0xaa   : > { %v458_v34 = vsub.f32 %v439_v30, %v3714_v20  ;;  %v516_v35 = vpop.permute.xlu2 %515  ;;  %v3886_v58 = vmul.f32 %v3798_v43, %v3846_v11  ;;  %v777_v0 = vmul.f32 %v3802_v46, %v3846_v11 }
  0xab   : > { %v573_v40 = vpop.permute.xlu0 %572  ;;  %v532_v41 = vsub.f32 %v516_v35, %v3725_v38  ;;  %8552 = vst [vmem:[#allocation11_spill] sm:$0xff] %v3876_v25  ;;  %v724_v54 = vmul.f32 %v3773_v15, %v3853_v17  ;;  %v852_v25 = vlaneseq }
  0xac   : > { %v466_v44 = vmul.f32 0.5, %v458_v34  ;;  %v601_v45 = vsub.f32 %v573_v40, %v3756_v13  ;;  %v3542_v51 = vpop.eup %3541 }
  0xad   : > { %v540_v50 = vmul.f32 0.5, %v532_v41  ;;  %v3544_v59 = vpop.eup %3543  ;;  %v480_v3 = vmul.f32 0.5, %v3542_v51  ;;  %v3867_v41 = vstv %s3814_s14  ;;  %v3872_v51 = vstv %s3820_s15 }
  0xae   : > { %v609_v55 = vmul.f32 0.5, %v601_v45  ;;  %3547 = vtanh.f32 %v466_v44  ;;  %v3546_v63 = vpop.eup %3545  ;;  %v557_v22 = vmul.f32 0.5, %v3544_v59  ;;  %v725_v44 = vmul.f32 %v3773_v15, %v3846_v11 }
  0xaf   : > { %v554_v30 = vmul.f32 0.5, %v3546_v63  ;;  %v3864_v40 = vadd.f32 0.5, %v480_v3 }
  0xb0   : > { %3549 = vtanh.f32 %v609_v55  ;;  %v3880_v55 = vadd.f32 0.5, %v557_v22  ;;  %v3898_v22 = vmul.f32 %v3802_v46, %v3853_v17 }
  0xb1   : > { %3551 = vtanh.f32 %v540_v50  ;;  %v451_v4 = vpop.permute.xlu1 %450  ;;  %8551 = vst [vmem:[#allocation10_spill] sm:$0xff] %v3864_v40  ;;  %v3882_v56 = vadd.f32 0.5, %v554_v30  ;;  %v654_v59 = vmul.f32 %v3759_v18, %v3864_v40 }
  0xb2   : > { %v461_v12 = vsub.f32 %v451_v4, %v3714_v20  ;;  %v3862_v20 = vmul.f32 %v3762_v21, %v3812_v49  ;;  %8553 = vst [vmem:[#allocation12_spill] sm:$0xff] %v3880_v55  ;;  %v730_v30 = vmul.f32 %v3773_v15, %v3880_v55 }
  0xb3   : > { %v593_v23 = vpop.permute.xlu0 %592  ;;  %v569_v29 = vpop.permute.xlu2 %568  ;;  %v3933_v6 = vmul.f32 %v3802_v46, %v3882_v56 }
  0xb4   : > { %v469_v31 = vmul.f32 0.5, %v461_v12  ;;  %v606_v33 = vsub.f32 %v593_v23, %v3756_v13  ;;  %v600_v34 = vsub.f32 %v569_v29, %v3756_v13  ;;  %v3548_v35 = vpop.eup %3547  ;;  %v3894_v12 = vmul.f32 %v3798_v43, %v3853_v17 }
  0xb5   : > { %v482_v63 = vmul.f32 0.5, %v3548_v35  ;;  %v733_v23 = vadd.f32 %v725_v44, %v715_v60  ;;  %v3902_v29 = vmul.f32 %v3762_v21, %v3864_v40  ;;  %v673_v35 = vmul.f32 %v3798_v43, %v3882_v56 }
  0xb6   : > { %v3550_v42 = vpop.eup %3549  ;;  %v614_v45 = vmul.f32 0.5, %v606_v33  ;;  %v608_v50 = vmul.f32 0.5, %v600_v34  ;;  %3553 = vtanh.f32 %v469_v31  ;;  %v3908_v34 = vadd.f32 %v724_v54, %v3792_v37 }
  0xb7   : > { %v3552_v52 = vpop.eup %3551  ;;  %v625_v57 = vmul.f32 0.5, %v3550_v42  ;;  %8554 = vst [vmem:[#allocation13_spill] sm:$0xff] %v3902_v29  ;;  %v3915_v44 = vmul.f32 %v3798_v43, %v3880_v55  ;;  %v3925_v54 = vmul.f32 %v3802_v46, %v3880_v55 }
  0xb8   : > { %3555 = vtanh.f32 %v614_v45  ;;  %v556_v3 = vmul.f32 0.5, %v3552_v52  ;;  %v3918_v52 = vadd.f32 %v654_v59, %v3806_v47 }
  0xb9   : > { %3557 = vtanh.f32 %v608_v50  ;;  %v633_v42 = vadd.f32 0.5, %v625_v57  ;;  %8555 = vst [vmem:[#allocation14_spill] sm:$0xff] %v3915_v44  ;;  %v3952_v44 = vand.u32 127, %v852_v25 }
  0xba   : > { %v504_v4 = vpop.permute.xlu1 %503  ;;  %8557 = vst [vmem:[#allocation16_spill] sm:$0xff] %v3925_v54  ;;  %v3929_v1 = vadd.f32 0.5, %v556_v3  ;;  %v681_v3 = vadd.f32 %v673_v35, %v3849_v14 }
  0xbb   : > { %v529_v31 = vsub.f32 %v504_v4, %v3725_v38  ;;  %v581_v33 = vpop.permute.xlu2 %580  ;;  %v3920_v4 = vadd.f32 0.5, %v482_v63  ;;  %v743_v55 = vmul.f32 %v3831_v62, %v633_v42  ;;  %v787_v40 = vmul.f32 %v3836_v5, %v633_v42  ;;  %8560 = vst [vmem:[#allocation19_spill] sm:$0xff] %v3952_v44 }
  0xbc   : > { %v343_v45 = vpop.permute.xlu0 %342  ;;  %v603_v60 = vsub.f32 %v581_v33, %v3756_v13  ;;  %v3554_v50 = vpop.eup %3553  ;;  %v727_v33 = vmul.f32 %v3773_v15, %v3882_v56  ;;  %8558 = vst [vmem:[#allocation17_spill] sm:$0xff] %v3929_v1  ;;  %v729_v14 = vmul.f32 %v3773_v15, %v3929_v1  ;;  %vm857_vm0 = vcmp.lt.s32.totalorder %v3952_v44, 64 }
  0xbd   : > { %8556 = vst [vmem:[#allocation15_spill] sm:$0xff] %v3920_v4  ;;  %v381_v37 = vsub.f32 %v343_v45, %v3711_v19  ;;  %v537_v59 = vmul.f32 0.5, %v529_v31  ;;  %v3936_v45 = vadd.f32 %v730_v30, %v3844_v10  ;;  %v485_v27 = vmul.f32 0.5, %v3554_v50 }
  0xbe   : > { %v3556_v57 = vpop.eup %3555  ;;  %v611_v16 = vmul.f32 0.5, %v603_v60  ;;  %v656_v60 = vmul.f32 %v3759_v18, %v3920_v4  ;;  %v3945_v31 = vmul.f32 %v3762_v21, %v3920_v4  ;;  %v675_v10 = vmul.f32 %v3798_v43, %v3929_v1 }
  0xbf   : > { %v3558_v47 = vpop.eup %3557  ;;  %v389_v63 = vmul.f32 0.5, %v381_v37  ;;  %v630_v54 = vmul.f32 0.5, %v3556_v57  ;;  %v735_v37 = vadd.f32 %v727_v33, %v3828_v61  ;;  %v821_v50 = vmul.f32 %v3867_v41, %v633_v42 }
  0xc0   : > { %3559 = vtanh.f32 %v611_v16  ;;  %8559 = vst [vmem:[#allocation18_spill] sm:$0xff] %v3945_v31  ;;  %v624_v16 = vmul.f32 0.5, %v3558_v47  ;;  %v751_v21 = vadd.f32 %v743_v55, %v733_v23  ;;  %v795_v4 = vadd.f32 %v787_v40, %v777_v0 }
  0xc1   : > { %3561 = vtanh.f32 %v389_v63  ;;  %v3958_v47 = vmul.f32 %v3802_v46, %v3929_v1  ;;  %v3961_v61 = vadd.f32 %v656_v60, %v3766_v24  ;;  %v3963_v33 = vadd.f32 0.5, %v485_v27 }
  0xc2   : > { %v512_v30 = vpop.permute.xlu1 %511  ;;  %3563 = vtanh.f32 %v537_v59  ;;  %v3965_v59 = vadd.f32 0.5, %v630_v54  ;;  %v632_v8 = vadd.f32 0.5, %v624_v16  ;;  %v3970_v55 = vmul.f32 %v3872_v51, %v633_v42 }
  0xc3   : > { %v589_v35 = vpop.permute.xlu2 %588  ;;  %8561 = vst [vmem:[#allocation20_spill] sm:$0xff] %v3961_v61  ;;  %v531_v29 = vsub.f32 %v512_v30, %v3725_v38  ;;  %v3972_v1 = vmul.f32 %v821_v50, %v633_v42  ;;  %v3975_v24 = vadd.f32 %v675_v10, %v3858_v36  ;;  %v3978_v54 = vmul.f32 %v751_v21, %v3783_v28 }
  0xc4   : > { %v348_v57 = vpop.permute.xlu0 %347  ;;  %v605_v63 = vsub.f32 %v589_v35, %v3756_v13  ;;  %8562 = vst [vmem:[#allocation21_spill] sm:$0xff] %v3963_v33  ;;  %v3981_v60 = vmul.f32 %v795_v4, %v3846_v11  ;;  %v3985_v30 = vmul.f32 %v3759_v18, %v3963_v33  ;;  %v748_v36 = vmul.f32 %v3831_v62, %v3965_v59 }
  0xc5   : > { %v382_v25 = vsub.f32 %v348_v57, %v3711_v19  ;;  %8563 = vst [vmem:[#allocation22_spill] sm:$0xff] %v3972_v1  ;;  %v539_v10 = vmul.f32 0.5, %v531_v29  ;;  %v742_v21 = vmul.f32 %v3831_v62, %v632_v8  ;;  %v786_v28 = vmul.f32 %v3836_v5, %v632_v8 }
  0xc6   : > { %v3560_v31 = vpop.eup %3559  ;;  %v613_v40 = vmul.f32 0.5, %v605_v63  ;;  %8564 = vst [vmem:[#allocation23_spill] sm:$0xff] %v3981_v60  ;;  %v3995_v11 = vmul.f32 %v3872_v51, %v3965_v59  ;;  %v737_v57 = vadd.f32 %v729_v14, %v3862_v20  ;;  %v756_v33 = vadd.f32 %v748_v36, %v3936_v45 }
  0xc7   : > { %v3562_v0 = vpop.eup %3561  ;;  %v627_v23 = vmul.f32 0.5, %v3560_v31  ;;  %v390_v35 = vmul.f32 0.5, %v382_v25  ;;  %8565 = vst [vmem:[#allocation24_spill] sm:$0xff] %v3985_v30  ;;  %v688_v25 = vmul.f32 %v3872_v51, %v632_v8  ;;  %v750_v20 = vadd.f32 %v742_v21, %v3908_v34 }
  0xc8   : > { %v405_v27 = vmul.f32 0.5, %v3562_v0  ;;  %3565 = vtanh.f32 %v613_v40  ;;  %v3564_v16 = vpop.eup %3563  ;;  %8566 = vst [vmem:[#allocation25_spill] sm:$0xff] %v3995_v11  ;;  %v820_v0 = vmul.f32 %v3867_v41, %v632_v8  ;;  %v794_v14 = vadd.f32 %v786_v28, %v3898_v22 }
  0xc9   : > { %v3987_v31 = vadd.f32 0.5, %v627_v23  ;;  %3567 = vtanh.f32 %v390_v35  ;;  %v553_v63 = vmul.f32 0.5, %v3564_v16 }
  0xca   : > { %v413_v42 = vadd.f32 0.5, %v405_v27  ;;  %v524_v50 = vpop.permute.xlu1 %523  ;;  %3569 = vtanh.f32 %v539_v10  ;;  %v828_v36 = vmul.f32 %v820_v0, %v632_v8 }
  0xcb   : > { %v691_v18 = vmul.f32 %v3872_v51, %v3987_v31  ;;  %v745_v4 = vmul.f32 %v3831_v62, %v3987_v31  ;;  %v534_v11 = vsub.f32 %v524_v50, %v3725_v38  ;;  %v758_v38 = vmul.f32 %v750_v20, %v3753_v9 }
  0xcc   : > { %v642_v29 = vmul.f32 %v3741_v2, %v413_v42  ;;  %v373_v40 = vpop.permute.xlu0 %372  ;;  %v802_v50 = vmul.f32 %v794_v14, %v3853_v17  ;;  %v4030_v9 = vmul.f32 %v756_v33, %v3818_v53 }
  0xcd   : > { %v387_v23 = vsub.f32 %v373_v40, %v3711_v19  ;;  %v699_v35 = vadd.f32 %v691_v18, %v681_v3  ;;  %v753_v27 = vadd.f32 %v745_v4, %v735_v37  ;;  %v789_v19 = vmul.f32 %v3836_v5, %v3987_v31 }
  0xce   : > { %v3566_v30 = vpop.eup %3565  ;;  %v660_v61 = vadd.f32 %v3779_v26, %v642_v29  ;;  %v4013_v3 = vadd.f32 0.5, %v553_v63  ;;  %v542_v21 = vmul.f32 0.5, %v534_v11 }
  0xcf   : > { %v3568_v16 = vpop.eup %3567  ;;  %v629_v1 = vmul.f32 0.5, %v3566_v30  ;;  %v395_v60 = vmul.f32 0.5, %v387_v23  ;;  %v707_v34 = vmul.f32 %v699_v35, %v3794_v39  ;;  %v761_v22 = vmul.f32 %v753_v27, %v3787_v32 }
  0xd0   : > { %v678_v45 = vadd.f32 %v3894_v12, %v660_v61  ;;  %v406_v37 = vmul.f32 0.5, %v3568_v16  ;;  %v797_v18 = vadd.f32 %v789_v19, %v3933_v6  ;;  %v3570_v12 = vpop.eup %3569  ;;  %v672_v17 = vmul.f32 %v3798_v43, %v4013_v3 }
  0xd1   : > { %v4016_v26 = vadd.f32 0.5, %v629_v1  ;;  %3571 = vtanh.f32 %v395_v60  ;;  %v769_v60 = vadd.f32 %v761_v22, %v707_v34  ;;  %v823_v6 = vmul.f32 %v3867_v41, %v3987_v31  ;;  %v8567_v34 = vld [vmem:[#allocation13_spill] sm:$0xff] }
  0xd2   : > { %v696_v30 = vadd.f32 %v688_v25, %v678_v45  ;;  %v414_v10 = vadd.f32 0.5, %v406_v37  ;;  %v726_v53 = vmul.f32 %v3773_v15, %v4013_v3  ;;  %v555_v33 = vmul.f32 0.5, %v3570_v12 }
  0xd3   : > { %v577_v28 = vpop.permute.xlu1 %576  ;;  %v693_v8 = vmul.f32 %v3872_v51, %v4016_v26  ;;  %v747_v1 = vmul.f32 %v3831_v62, %v4016_v26  ;;  %3573 = vtanh.f32 %v542_v21  ;;  %v805_v40 = vmul.f32 %v797_v18, %v3882_v56 }
  0xd4   : > { %v704_v39 = vmul.f32 %v696_v30, %v413_v42  ;;  %v643_v32 = vmul.f32 %v3741_v2, %v414_v10  ;;  %v602_v61 = vsub.f32 %v577_v28, %v3756_v13  ;;  %v831_v27 = vmul.f32 %v823_v6, %v3987_v31  ;;  %v8568_v28 = vld [vmem:[#allocation8_spill] sm:$0xff] }
  0xd5   : > { %v701_v11 = vadd.f32 %v693_v8, %v3975_v24  ;;  %v755_v29 = vadd.f32 %v747_v1, %v737_v57  ;;  %v813_v35 = vadd.f32 %v805_v40, %v769_v60  ;;  %v778_v57 = vmul.f32 %v3802_v46, %v4013_v3  ;;  %v8571_v60 = vld [vmem:[#allocation17_spill] sm:$0xff] }
  0xd6   : > { %v661_v4 = vadd.f32 %v3810_v48, %v643_v32  ;;  %v610_v63 = vmul.f32 0.5, %v602_v61  ;;  %v766_v42 = vadd.f32 %v758_v38, %v704_v39  ;;  %v791_v48 = vmul.f32 %v3836_v5, %v4016_v26  ;;  %v8569_v32 = vld [vmem:[#allocation14_spill] sm:$0xff]  ;;  %v8570_v61 = vld [vmem:[#allocation23_spill] sm:$0xff] }
  0xd7   : > { %v3572_v25 = vpop.eup %3571  ;;  %v709_v16 = vmul.f32 %v701_v11, %v3749_v7  ;;  %v763_v56 = vmul.f32 %v755_v29, %v3812_v49  ;;  %v680_v37 = vadd.f32 %v672_v17, %v3918_v52  ;;  %v734_v22 = vadd.f32 %v726_v53, %v8567_v34  ;;  %v8572_v29 = vld [vmem:[#allocation25_spill] sm:$0xff]  ;;  %v8573_v53 = vld [vmem:[#allocation22_spill] sm:$0xff] }
  0xd8   : > { %v679_v0 = vadd.f32 %v3886_v58, %v661_v4  ;;  %v411_v23 = vmul.f32 0.5, %v3572_v25  ;;  %3575 = vtanh.f32 %v610_v63  ;;  %v810_v24 = vadd.f32 %v802_v50, %v766_v42 }
  0xd9   : > { %v4051_v58 = vadd.f32 0.5, %v555_v33  ;;  %v3574_v50 = vpop.eup %3573  ;;  %v839_v21 = vadd.f32 %v831_v27, %v813_v35  ;;  %v825_v49 = vmul.f32 %v3867_v41, %v4016_v26  ;;  %v771_v8 = vadd.f32 %v763_v56, %v709_v16 }
  0xda   : > { %v697_v20 = vadd.f32 %v3970_v55, %v679_v0  ;;  %v419_v14 = vadd.f32 0.5, %v411_v23  ;;  %v836_v45 = vadd.f32 %v828_v36, %v810_v24  ;;  %v799_v55 = vadd.f32 %v791_v48, %v3958_v47 }
  0xdb   : > { %v585_v19 = vpop.permute.xlu1 %584  ;;  %v792_v36 = vmul.f32 %v3836_v5, %v3965_v59  ;;  %v674_v47 = vmul.f32 %v3798_v43, %v4051_v58  ;;  %v728_v1 = vmul.f32 %v3773_v15, %v4051_v58  ;;  %v558_v11 = vmul.f32 0.5, %v3574_v50 }
  0xdc   : > { %v705_v30 = vmul.f32 %v697_v20, %v414_v10  ;;  %v648_v31 = vmul.f32 %v3741_v2, %v419_v14  ;;  %v604_v38 = vsub.f32 %v585_v19, %v3756_v13  ;;  %v844_v7 = vsub.f32 0.0, %v836_v45 }
  0xdd   : > { %v807_v6 = vmul.f32 %v799_v55, %v8571_v60  ;;  %v847_v63 = vsub.f32 0.0, %v839_v21  ;;  %v833_v42 = vmul.f32 %v825_v49, %v4016_v26  ;;  %v8574_v26 = vld [vmem:[#allocation16_spill] sm:$0xff]  ;;  %v8575_v27 = vmov 0   ;;  %v8577_v21 = vld [vmem:[#allocation10_spill] sm:$0xff] }
  0xde   : > { %v3576_v52 = vpop.eup %3575  ;;  %v666_v18 = vadd.f32 %v8568_v28, %v648_v31  ;;  %v612_v10 = vmul.f32 0.5, %v604_v38  ;;  %v767_v2 = vadd.f32 %v3978_v54, %v705_v30  ;;  %v4070_v39 = vsel %vm857_vm0, %v844_v7, -1e+30  ;;  %323 = vst.msk [vmem:[%s4076_s21] sm:$0xff] %vm8313_vm1, %v8575_v27 }
  0xdf   : > { %v626_v12 = vmul.f32 0.5, %v3576_v52  ;;  %867 = vmax.xlane.f32.xlu2 %v4070_v39  ;;  %v815_v40 = vadd.f32 %v807_v6, %v771_v8  ;;  %v800_v35 = vadd.f32 %v792_v36, %v8574_v26  ;;  %324 = vst.msk [vmem:[%s4076_s21 + $0x8] sm:$0xff] %vm8313_vm1, %v8575_v27  ;;  %v4102_v19 = vadd.f32 0.5, %v558_v11  ;;  %v8578_v52 = vld [vmem:[#allocation12_spill] sm:$0xff] }
  0xe0   : > { %v684_v54 = vadd.f32 %v8569_v32, %v666_v18  ;;  %3577 = vtanh.f32 %v612_v10  ;;  %v811_v17 = vadd.f32 %v8570_v61, %v767_v2  ;;  %v3637_v31 = vmov -1e+30   ;;  %325 = vst.msk [vmem:[%s4076_s21 + $0x10] sm:$0xff] %vm8313_vm1, %v8575_v27 }
  0xe1   : > { %v634_v4 = vadd.f32 0.5, %v626_v12  ;;  %317 = vst.msk [vmem:[%s4087_s25 + $0x10] sm:$0xff] %vm8313_vm1, %v3637_v31  ;;  %v808_v28 = vmul.f32 %v800_v35, %v8578_v52  ;;  %v826_v18 = vmul.f32 %v3867_v41, %v3965_v59  ;;  %v8579_v12 = vld [vmem:[#allocation20_spill] sm:$0xff]  ;;  %v780_v60 = vmul.f32 %v3802_v46, %v4051_v58 }
  0xe2   : > { %v702_v25 = vadd.f32 %v8572_v29, %v684_v54  ;;  %v837_v33 = vadd.f32 %v8573_v53, %v811_v17  ;;  %315 = vst.msk [vmem:[%s4087_s25] sm:$0xff] %vm8313_vm1, %v3637_v31  ;;  %v682_v32 = vadd.f32 %v674_v47, %v8579_v12  ;;  %v8581_v47 = vld [vmem:[#allocation11_spill] sm:$0xff]  ;;  %v8587_v12 = vld [vmem:[#allocation9_spill] sm:$0xff] }
  0xe3   : > { %v597_v0 = vpop.permute.xlu1 %596  ;;  %v690_v23 = vmul.f32 %v3872_v51, %v634_v4  ;;  %v744_v48 = vmul.f32 %v3831_v62, %v634_v4  ;;  %v788_v24 = vmul.f32 %v3836_v5, %v634_v4  ;;  %v822_v50 = vmul.f32 %v3867_v41, %v634_v4  ;;  %316 = vst.msk [vmem:[%s4087_s25 + $0x8] sm:$0xff] %vm8313_vm1, %v3637_v31 }
  0xe4   : > { %v710_v20 = vmul.f32 %v702_v25, %v419_v14  ;;  %v607_v16 = vsub.f32 %v597_v0, %v3756_v13  ;;  %v845_v56 = vsub.f32 0.0, %v837_v33  ;;  %v841_v13 = vadd.f32 %v833_v42, %v815_v40  ;;  %318 = vst.msk [vmem:[%s4087_s25 + $0x18] sm:$0xff] %vm8313_vm1, %v3637_v31 }
  0xe5   : > { %v698_v45 = vadd.f32 %v690_v23, %v680_v37  ;;  %v752_v34 = vadd.f32 %v744_v48, %v734_v22  ;;  %v796_v30 = vadd.f32 %v788_v24, %v778_v57  ;;  %v4116_v57 = vsel %vm857_vm0, %v847_v63, -1e+30  ;;  %v8576_v37 = vld [vmem:[#allocation7_spill] sm:$0xff]  ;;  %319 = vst.msk [vmem:[%s4087_s25 + $0x20] sm:$0xff] %vm8313_vm1, %v3637_v31 }
  0xe6   : > { %v3578_v38 = vpop.eup %3577  ;;  %v615_v55 = vmul.f32 0.5, %v607_v16  ;;  %v4108_v14 = vsel %vm857_vm0, %v845_v56, -1e+30  ;;  %v772_v36 = vadd.f32 %v4030_v9, %v710_v20  ;;  %v849_v54 = vsub.f32 0.0, %v841_v13  ;;  %v8580_v9 = vld [vmem:[#allocation18_spill] sm:$0xff]  ;;  %320 = vst.msk [vmem:[%s4087_s25 + $0x28] sm:$0xff] %vm8313_vm1, %v3637_v31 }
  0xe7   : > { %v628_v7 = vmul.f32 0.5, %v3578_v38  ;;  %869 = vmax.xlane.f32.xlu0 %v4108_v14  ;;  %v706_v22 = vmul.f32 %v698_v45, %v8576_v37  ;;  %v760_v49 = vmul.f32 %v752_v34, %v8577_v21  ;;  %873 = vmax.xlane.f32.xlu2 %v4116_v57  ;;  %v804_v8 = vmul.f32 %v796_v30, %v4013_v3  ;;  %v8583_v20 = vld [vmem:[#allocation5_spill] sm:$0xff]  ;;  %v8584_v56 = vld [vmem:[#allocation15_spill] sm:$0xff] }
  0xe8   : > { %3579 = vtanh.f32 %v615_v55  ;;  %v830_v61 = vmul.f32 %v822_v50, %v634_v4  ;;  %v736_v17 = vadd.f32 %v728_v1, %v8580_v9  ;;  %321 = vst.msk [vmem:[%s4087_s25 + $0x30] sm:$0xff] %vm8313_vm1, %v3637_v31  ;;  %v8582_v4 = vld [vmem:[#allocation24_spill] sm:$0xff]  ;;  %v677_v1 = vmul.f32 %v3798_v43, %v4102_v19  ;;  %v8585_v45 = vld [vmem:[#allocation21_spill] sm:$0xff] }
  0xe9   : > { %v636_v10 = vadd.f32 0.5, %v628_v7  ;;  %v768_v2 = vadd.f32 %v760_v49, %v706_v22  ;;  %v667_v42 = vadd.f32 %v8582_v4, %v8581_v47  ;;  %v816_v29 = vadd.f32 %v808_v28, %v772_v36  ;;  %322 = vst.msk [vmem:[%s4087_s25 + $0x38] sm:$0xff] %vm8313_vm1, %v3637_v31 }
  0xea   : > { %v731_v23 = vmul.f32 %v3773_v15, %v4102_v19  ;;  %v4156_v48 = vsel %vm857_vm0, %v849_v54, -1e+30  ;;  %v834_v43 = vmul.f32 %v826_v18, %v3965_v59  ;;  %326 = vst.msk [vmem:[%s4076_s21 + $0x18] sm:$0xff] %vm8313_vm1, %v8575_v27  ;;  %v8586_v59 = vld [vmem:[#allocation6_spill] sm:$0xff]  ;;  %v783_v22 = vmul.f32 %v3802_v46, %v4102_v19 }
  0xeb   : > { %v812_v6 = vadd.f32 %v804_v8, %v768_v2  ;;  %v692_v11 = vmul.f32 %v3872_v51, %v636_v10  ;;  %v746_v3 = vmul.f32 %v3831_v62, %v636_v10  ;;  %v790_v63 = vmul.f32 %v3836_v5, %v636_v10  ;;  %327 = vst.msk [vmem:[%s4076_s21 + $0x20] sm:$0xff] %vm8313_vm1, %v8575_v27  ;;  %v4231_v47 = vld [vmem:[%s4087_s25 + $0x8] sm:$0xff]  ;;  %v4234_v4 = vld [vmem:[%s4087_s25 + $0x18] sm:$0xff] }
  0xec   : > { %v824_v24 = vmul.f32 %v3867_v41, %v636_v10  ;;  %v721_v34 = vmul.f32 %v8586_v59, %v8585_v45  ;;  %v842_v30 = vadd.f32 %v834_v43, %v816_v29  ;;  %v685_v31 = vadd.f32 %v677_v1, %v667_v42  ;;  %328 = vst.msk [vmem:[%s4076_s21 + $0x28] sm:$0xff] %vm8313_vm1, %v8575_v27 }
  0xed   : > { %v838_v25 = vadd.f32 %v830_v61, %v812_v6  ;;  %v700_v53 = vadd.f32 %v692_v11, %v682_v32  ;;  %v754_v33 = vadd.f32 %v746_v3, %v736_v17  ;;  %v798_v40 = vadd.f32 %v790_v63, %v780_v60  ;;  %329 = vst.msk [vmem:[%s4076_s21 + $0x30] sm:$0xff] %vm8313_vm1, %v8575_v27  ;;  %v4206_v6 = vld [vmem:[%s4087_s25 + $0x10] sm:$0xff]  ;;  %v4224_v63 = vld [vmem:[%s4087_s25] sm:$0xff]  ;;  %v4243_v42 = vld [vmem:[%s4087_s25 + $0x28] sm:$0xff] }
  0xee   : > { %v3580_v0 = vpop.eup %3579  ;;  %v832_v7 = vmul.f32 %v824_v24, %v636_v10  ;;  %v739_v37 = vadd.f32 %v731_v23, %v721_v34  ;;  %330 = vst.msk [vmem:[%s4076_s21 + $0x38] sm:$0xff] %vm8313_vm1, %v8575_v27  ;;  %v850_v52 = vsub.f32 0.0, %v842_v30  ;;  %v4267_v29 = vcvt.s32.f32 %v3952_v44 }
  0xef   : > { %v631_v26 = vmul.f32 0.5, %v3580_v0  ;;  %877 = vmax.xlane.f32.xlu0 %v4156_v48  ;;  %v846_v35 = vsub.f32 0.0, %v838_v25  ;;  %v708_v16 = vmul.f32 %v700_v53, %v8583_v20  ;;  %v762_v15 = vmul.f32 %v754_v33, %v8584_v56  ;;  %8590 = vst [vmem:[#allocation14_spill] sm:$0xff] %v4231_v47  ;;  %v4246_v1 = vld [vmem:[%s4087_s25 + $0x30] sm:$0xff] }
  0xf0   : > { %v806_v50 = vmul.f32 %v798_v40, %v4051_v58  ;;  %v4221_v3 = vld [vmem:[%s4087_s25 + $0x38] sm:$0xff]  ;;  %8591 = vst [vmem:[#allocation23_spill] sm:$0xff] %v4234_v4 }
  0xf1   : > { %v639_v38 = vadd.f32 0.5, %v631_v26  ;;  %v4176_v55 = vsel %vm857_vm0, %v846_v35, -1e+30  ;;  %v770_v13 = vadd.f32 %v762_v15, %v708_v16  ;;  %8589 = vst [vmem:[#allocation8_spill] sm:$0xff] %v4221_v3 }
  0xf2   : > { %871 = vmax.xlane.f32.xlu1 %v4176_v55  ;;  %8592 = vst [vmem:[#allocation17_spill] sm:$0xff] %v4243_v42 }
  0xf3   : > { %v814_v21 = vadd.f32 %v806_v50, %v770_v13  ;;  %v695_v49 = vmul.f32 %v3872_v51, %v639_v38  ;;  %v749_v36 = vmul.f32 %v3831_v62, %v639_v38  ;;  %v793_v58 = vmul.f32 %v3836_v5, %v639_v38  ;;  %8593 = vst [vmem:[#allocation25_spill] sm:$0xff] %v4246_v1 }
  0xf4   : > { %v827_v54 = vmul.f32 %v3867_v41, %v639_v38  ;;  %v4196_v51 = vsel %vm857_vm0, %v850_v52, -1e+30 }
  0xf5   : > { %v840_v28 = vadd.f32 %v832_v7, %v814_v21  ;;  %v703_v18 = vadd.f32 %v695_v49, %v685_v31  ;;  %v757_v2 = vadd.f32 %v749_v36, %v739_v37  ;;  %v801_v10 = vadd.f32 %v793_v58, %v783_v22 }
  0xf6   : > { %v835_v9 = vmul.f32 %v827_v54, %v639_v38 }
  0xf7   : > { %v848_v8 = vsub.f32 0.0, %v840_v28  ;;  %v711_v32 = vmul.f32 %v703_v18, %v8587_v12  ;;  %v765_v46 = vmul.f32 %v757_v2, %v8585_v45  ;;  %v809_v61 = vmul.f32 %v801_v10, %v4102_v19  ;;  %v4216_v19 = vld [vmem:[%s4087_s25 + $0x20] sm:$0xff] }
  0xf8   : > { %8588 = vst [vmem:[#allocation13_spill] sm:$0xff] %v4216_v19 }
  0xf9   : > { %v4200_v62 = vsel %vm857_vm0, %v848_v8, -1e+30  ;;  %v773_v5 = vadd.f32 %v765_v46, %v711_v32 }
  0xfa   : > { %879 = vmax.xlane.f32.xlu1 %v4196_v51  ;;  %875 = vmax.xlane.f32.xlu2 %v4200_v62 }
  0xfb   : > { %v817_v41 = vadd.f32 %v809_v61, %v773_v5 }
  0xfd   : > { %v843_v17 = vadd.f32 %v835_v9, %v817_v41 }
  0xff   : > { %v851_v60 = vsub.f32 0.0, %v843_v17 }
 0x101   : > { %v4210_v11 = vsel %vm857_vm0, %v851_v60, -1e+30 }
 0x102   : > { %881 = vmax.xlane.f32.xlu2 %v4210_v11 }
 0x103   : > { %1079 = vrot.lane.b32.xlu0 %v4206_v6, %s3638_s24 }
 0x10b   : > { %1083 = vrot.lane.b32.xlu0 %v4216_v19, %s3638_s24 }
 0x113   : > { %1089 = vrot.lane.b32.xlu0 %v4221_v3, %s3638_s24  ;;  %1075 = vrot.lane.b32.xlu1 %v4224_v63, %s3638_s24 }
 0x11a   : > { %1077 = vrot.lane.b32.xlu2 %v4231_v47, %s3638_s24 }
 0x11b   : > { %1111 = vrot.lane.b32.xlu0 %v4206_v6, %s3639_s26  ;;  %1081 = vrot.lane.b32.xlu1 %v4234_v4, %s3638_s24 }
 0x122   : > { %1085 = vrot.lane.b32.xlu2 %v4243_v42, %s3638_s24 }
 0x123   : > { %1117 = vrot.lane.b32.xlu0 %v4243_v42, %s3639_s26  ;;  %1087 = vrot.lane.b32.xlu1 %v4246_v1, %s3638_s24 }
 0x12a   : > { %1107 = vrot.lane.b32.xlu2 %v4224_v63, %s3639_s26 }
 0x12b   : > { %1109 = vrot.lane.b32.xlu1 %v4231_v47, %s3639_s26 }
 0x132   : > { %1113 = vrot.lane.b32.xlu2 %v4234_v4, %s3639_s26 }
 0x133   : > { %1115 = vrot.lane.b32.xlu1 %v4216_v19, %s3639_s26 }
 0x13a   : > { %1119 = vrot.lane.b32.xlu2 %v4246_v1, %s3639_s26 }
 0x13b   : > { %1121 = vrot.lane.b32.xlu1 %v4221_v3, %s3639_s26 }
 0x152   : > { %v4269_v25 = vpop.xlane.xlu2 %867 }
 0x153   : > { %vm883_vm2 = vcmp.eq.f32.partialorder %v4070_v39, %v4269_v25 }
 0x154   : > { %v891_v53 = vsel %vm883_vm2, %v4267_v29, 1e+09 }
 0x155   : > { %899 = vmin.xlane.f32.xlu0 %v891_v53 }
 0x15a   : > { %v4274_v33 = vpop.xlane.xlu2 %873  ;;  %v4279_v0 = vpop.xlane.xlu0 %869 }
 0x15b   : > { %vm886_vm3 = vcmp.eq.f32.partialorder %v4116_v57, %v4274_v33  ;;  %vm884_vm4 = vcmp.eq.f32.partialorder %v4108_v14, %v4279_v0 }
 0x15c   : > { %v894_v40 = vsel %vm886_vm3, %v4267_v29, 1e+09  ;;  %v892_v23 = vsel %vm884_vm4, %v4267_v29, 1e+09 }
 0x15d   : > { %905 = vmin.xlane.f32.xlu0 %v894_v40 }
 0x162   : > { %v4289_v26 = vpop.xlane.xlu0 %877 }
 0x163   : > { %vm888_vm6 = vcmp.eq.f32.partialorder %v4156_v48, %v4289_v26 }
 0x164   : > { %v896_v16 = vsel %vm888_vm6, %v4267_v29, 1e+09 }
 0x165   : > { %v4284_v43 = vpop.xlane.xlu1 %871  ;;  %901 = vmin.xlane.f32.xlu1 %v892_v23 }
 0x166   : > { %vm885_vm5 = vcmp.eq.f32.partialorder %v4176_v55, %v4284_v43 }
 0x167   : > { %v893_v24 = vsel %vm885_vm5, %v4267_v29, 1e+09 }
 0x168   : > { %903 = vmin.xlane.f32.xlu2 %v893_v24 }
 0x16d   : > { %v4293_v35 = vpop.xlane.xlu1 %879  ;;  %v4295_v20 = vpop.xlane.xlu2 %875 }
 0x16e   : > { %8594 = vst [vmem:[#allocation22_spill] sm:$0xff] %v4293_v35  ;;  %vm889_vm7 = vcmp.eq.f32.partialorder %v4196_v51, %v4293_v35  ;;  %vm887_vm8 = vcmp.eq.f32.partialorder %v4200_v62, %v4295_v20 }
 0x16f   : > { %8595 = vst [vmem:[#allocation16_spill] sm:$0xff] %v4295_v20  ;;  %v897_v56 = vsel %vm889_vm7, %v4267_v29, 1e+09  ;;  %v895_v15 = vsel %vm887_vm8, %v4267_v29, 1e+09 }
 0x170   : > { %909 = vmin.xlane.f32.xlu2 %v896_v16  ;;  %911 = vmin.xlane.f32.xlu0 %v897_v56 }
 0x171   : > { %907 = vmin.xlane.f32.xlu1 %v895_v15 }
 0x175   : > { %v4304_v45 = vpop.xlane.xlu2 %881  ;;  %v4309_v34 = vpop.permute.xlu0 %1079 }
 0x176   : > { %8596 = vst [vmem:[#allocation7_spill] sm:$0xff] %v4304_v45  ;;  %vm890_vm9 = vcmp.eq.f32.partialorder %v4210_v11, %v4304_v45 }
 0x177   : > { %v898_v59 = vsel %vm890_vm9, %v4267_v29, 1e+09 }
 0x179   : > { %913 = vmin.xlane.f32.xlu1 %v898_v59 }
 0x17d   : > { %v4313_v31 = vpop.permute.xlu0 %1083  ;;  %v4317_v13 = vpop.permute.xlu2 %1077 }
 0x185   : > { %v4311_v30 = vpop.permute.xlu1 %1075  ;;  %v4319_v50 = vpop.permute.xlu0 %1089 }
 0x186   : > { %v4323_v37 = vpop.permute.xlu2 %1085 }
 0x18d   : > { %v4315_v38 = vpop.permute.xlu1 %1081  ;;  %v4325_v22 = vpop.permute.xlu0 %1111 }
 0x18e   : > { %v4329_v49 = vpop.permute.xlu2 %1107 }
 0x195   : > { %v4321_v7 = vpop.permute.xlu1 %1087  ;;  %v4331_v36 = vpop.permute.xlu0 %1117 }
 0x196   : > { %v4335_v52 = vpop.permute.xlu2 %1113 }
 0x19d   : > { %v4327_v21 = vpop.permute.xlu1 %1109 }
 0x19e   : > { %v4351_v8 = vpop.permute.xlu2 %1119 }
 0x1a5   : > { %v4333_v58 = vpop.permute.xlu1 %1115 }
 0x1ad   : > { %v4345_v2 = vpop.permute.xlu1 %1121 }
 0x1c8   : > { %v4337_v28 = vpop.xlane.xlu0 %899 }
 0x1c9   : > { %8597 = vst [vmem:[#allocation10_spill] sm:$0xff] %v4337_v28  ;;  %vm915_vm10 = vcmp.eq.f32.partialorder %v4267_v29, %v4337_v28 }
 0x1ca   : > { %v4342_v18 = vsel %vm915_vm10, -1e+30, %v4070_v39 }
 0x1cb   : > { %931 = vmax.xlane.f32.xlu2 %v4342_v18 }
 0x1d0   : > { %v4347_v10 = vpop.xlane.xlu0 %905 }
 0x1d1   : > { %8598 = vst [vmem:[#allocation12_spill] sm:$0xff] %v4347_v10  ;;  %vm918_vm11 = vcmp.eq.f32.partialorder %v4267_v29, %v4347_v10 }
 0x1d2   : > { %v4354_v12 = vsel %vm918_vm11, -1e+30, %v4116_v57 }
 0x1d3   : > { %937 = vmax.xlane.f32.xlu2 %v4354_v12 }
 0x1d8   : > { %v4357_v32 = vpop.xlane.xlu1 %901 }
 0x1d9   : > { %8599 = vst [vmem:[#allocation20_spill] sm:$0xff] %v4357_v32  ;;  %vm916_vm12 = vcmp.eq.f32.partialorder %v4267_v29, %v4357_v32 }
 0x1da   : > { %v4362_v39 = vsel %vm916_vm12, -1e+30, %v4108_v14 }
 0x1db   : > { %933 = vmax.xlane.f32.xlu0 %v4362_v39  ;;  %v4365_v46 = vpop.xlane.xlu2 %903 }
 0x1dc   : > { %8600 = vst [vmem:[#allocation18_spill] sm:$0xff] %v4365_v46  ;;  %vm917_vm13 = vcmp.eq.f32.partialorder %v4267_v29, %v4365_v46 }
 0x1dd   : > { %v4370_v57 = vsel %vm917_vm13, -1e+30, %v4176_v55 }
 0x1de   : > { %935 = vmax.xlane.f32.xlu1 %v4370_v57 }
 0x1e3   : > { %v4373_v54 = vpop.xlane.xlu0 %911  ;;  %v4375_v5 = vpop.xlane.xlu2 %909 }
 0x1e4   : > { %8601 = vst [vmem:[#allocation11_spill] sm:$0xff] %v4373_v54  ;;  %v4377_v61 = vpop.xlane.xlu1 %907  ;;  %vm921_vm14 = vcmp.eq.f32.partialorder %v4267_v29, %v4373_v54  ;;  %vm920_vm15 = vcmp.eq.f32.partialorder %v4267_v29, %v4375_v5 }
 0x1e5   : > { %8602 = vst [vmem:[#allocation24_spill] sm:$0xff] %v4375_v5  ;;  %v4384_v14 = vsel %vm921_vm14, -1e+30, %v4196_v51  ;;  %vm919_vm0 = vcmp.eq.f32.partialorder %v4267_v29, %v4377_v61  ;;  %v928_v55 = vsel %vm920_vm15, -1e+30, %v4156_v48 }
 0x1e6   : > { %8603 = vst [vmem:[#allocation5_spill] sm:$0xff] %v4377_v61  ;;  %943 = vmax.xlane.f32.xlu2 %v4384_v14  ;;  %v4391_v41 = vsel %vm919_vm0, -1e+30, %v4200_v62  ;;  %941 = vmax.xlane.f32.xlu1 %v928_v55 }
 0x1e7   : > { %939 = vmax.xlane.f32.xlu0 %v4391_v41 }
 0x1ec   : > { %v4394_v9 = vpop.xlane.xlu1 %913 }
 0x1ed   : > { %8604 = vst [vmem:[#allocation15_spill] sm:$0xff] %v4394_v9  ;;  %vm922_vm2 = vcmp.eq.f32.partialorder %v4267_v29, %v4394_v9 }
 0x1ee   : > { %v4399_v51 = vsel %vm922_vm2, -1e+30, %v4210_v11 }
 0x1ef   : > { %945 = vmax.xlane.f32.xlu0 %v4399_v51 }
 0x23e   : > { %v4402_v17 = vpop.xlane.xlu2 %931 }
 0x23f   : > { %vm947_vm3 = vcmp.eq.f32.partialorder %v4342_v18, %v4402_v17 }
 0x240   : > { %v955_v48 = vsel %vm947_vm3, %v4267_v29, 1e+09 }
 0x241   : > { %963 = vmin.xlane.f32.xlu1 %v955_v48 }
 0x246   : > { %v4407_v62 = vpop.xlane.xlu2 %937 }
 0x247   : > { %8605 = vst [vmem:[#allocation21_spill] sm:$0xff] %v4407_v62  ;;  %vm950_vm4 = vcmp.eq.f32.partialorder %v4354_v12, %v4407_v62 }
 0x248   : > { %v958_v60 = vsel %vm950_vm4, %v4267_v29, 1e+09 }
 0x249   : > { %969 = vmin.xlane.f32.xlu1 %v958_v60 }
 0x24e   : > { %v4412_v11 = vpop.xlane.xlu0 %933 }
 0x24f   : > { %8606 = vst [vmem:[#allocation6_spill] sm:$0xff] %v4412_v11  ;;  %vm948_vm5 = vcmp.eq.f32.partialorder %v4362_v39, %v4412_v11 }
 0x250   : > { %v956_v53 = vsel %vm948_vm5, %v4267_v29, 1e+09 }
 0x251   : > { %965 = vmin.xlane.f32.xlu2 %v956_v53  ;;  %v4417_v40 = vpop.xlane.xlu1 %935 }
 0x252   : > { %vm949_vm6 = vcmp.eq.f32.partialorder %v4370_v57, %v4417_v40 }
 0x253   : > { %v957_v23 = vsel %vm949_vm6, %v4267_v29, 1e+09 }
 0x254   : > { %967 = vmin.xlane.f32.xlu0 %v957_v23 }
 0x259   : > { %v4422_v24 = vpop.xlane.xlu1 %941  ;;  %v4424_v16 = vpop.xlane.xlu2 %943 }
 0x25a   : > { %8607 = vst [vmem:[#allocation9_spill] sm:$0xff] %v4422_v24  ;;  %v4426_v56 = vpop.xlane.xlu0 %939  ;;  %vm952_vm7 = vcmp.eq.f32.partialorder %v928_v55, %v4422_v24  ;;  %vm953_vm8 = vcmp.eq.f32.partialorder %v4384_v14, %v4424_v16 }
 0x25b   : > { %8608 = vst [vmem:[#allocation26_spill] sm:$0xff] %v4424_v16  ;;  %vm951_vm9 = vcmp.eq.f32.partialorder %v4391_v41, %v4426_v56  ;;  %v960_v15 = vsel %vm952_vm7, %v4267_v29, 1e+09  ;;  %v961_v59 = vsel %vm953_vm8, %v4267_v29, 1e+09 }
 0x25c   : > { %8609 = vst [vmem:[#allocation27_spill] sm:$0xff] %v4426_v56  ;;  %v959_v48 = vsel %vm951_vm9, %v4267_v29, 1e+09  ;;  %973 = vmin.xlane.f32.xlu0 %v960_v15  ;;  %975 = vmin.xlane.f32.xlu1 %v961_v59 }
 0x25d   : > { %971 = vmin.xlane.f32.xlu2 %v959_v48 }
 0x262   : > { %v4436_v60 = vpop.xlane.xlu0 %945 }
 0x263   : > { %8610 = vst [vmem:[#allocation28_spill] sm:$0xff] %v4436_v60  ;;  %vm954_vm10 = vcmp.eq.f32.partialorder %v4399_v51, %v4436_v60 }
 0x264   : > { %v962_v53 = vsel %vm954_vm10, %v4267_v29, 1e+09 }
 0x265   : > { %977 = vmin.xlane.f32.xlu2 %v962_v53 }
 0x2b4   : > { %v4441_v23 = vpop.xlane.xlu1 %963 }
 0x2b5   : > { %8611 = vst [vmem:[#allocation29_spill] sm:$0xff] %v4441_v23  ;;  %vm979_vm11 = vcmp.eq.f32.partialorder %v4267_v29, %v4441_v23 }
 0x2b6   : > { %v987_v44 = vsel %vm979_vm11, -1e+30, %v4342_v18 }
 0x2b7   : > { %995 = vmax.xlane.f32.xlu0 %v987_v44 }
 0x2bc   : > { %v4446_v9 = vpop.xlane.xlu1 %969 }
 0x2bd   : > { %8612 = vst [vmem:[#allocation30_spill] sm:$0xff] %v4446_v9  ;;  %vm982_vm12 = vcmp.eq.f32.partialorder %v4267_v29, %v4446_v9 }
 0x2be   : > { %v990_v15 = vsel %vm982_vm12, -1e+30, %v4354_v12 }
 0x2bf   : > { %1001 = vmax.xlane.f32.xlu0 %v990_v15 }
 0x2c4   : > { %v4451_v59 = vpop.xlane.xlu2 %965 }
 0x2c5   : > { %8613 = vst [vmem:[#allocation31_spill] sm:$0xff] %v4451_v59  ;;  %vm980_vm13 = vcmp.eq.f32.partialorder %v4267_v29, %v4451_v59 }
 0x2c6   : > { %v988_v48 = vsel %vm980_vm13, -1e+30, %v4362_v39 }
 0x2c7   : > { %v4456_v53 = vpop.xlane.xlu0 %967  ;;  %997 = vmax.xlane.f32.xlu1 %v988_v48 }
 0x2c8   : > { %8614 = vst [vmem:[#allocation32_spill] sm:$0xff] %v4456_v53  ;;  %vm981_vm14 = vcmp.eq.f32.partialorder %v4267_v29, %v4456_v53 }
 0x2c9   : > { %v989_v18 = vsel %vm981_vm14, -1e+30, %v4370_v57 }
 0x2ca   : > { %999 = vmax.xlane.f32.xlu2 %v989_v18 }
 0x2cf   : > { %v4461_v54 = vpop.xlane.xlu0 %973  ;;  %v4463_v12 = vpop.xlane.xlu1 %975 }
 0x2d0   : > { %8615 = vst [vmem:[#allocation33_spill] sm:$0xff] %v4461_v54  ;;  %v4465_v61 = vpop.xlane.xlu2 %971  ;;  %vm984_vm15 = vcmp.eq.f32.partialorder %v4267_v29, %v4461_v54  ;;  %vm985_vm0 = vcmp.eq.f32.partialorder %v4267_v29, %v4463_v12 }
 0x2d1   : > { %8616 = vst [vmem:[#allocation34_spill] sm:$0xff] %v4463_v12  ;;  %v992_v39 = vsel %vm984_vm15, -1e+30, %v928_v55  ;;  %v993_v5 = vsel %vm985_vm0, -1e+30, %v4384_v14  ;;  %vm983_vm2 = vcmp.eq.f32.partialorder %v4267_v29, %v4465_v61 }
 0x2d2   : > { %8617 = vst [vmem:[#allocation35_spill] sm:$0xff] %v4465_v61  ;;  %1005 = vmax.xlane.f32.xlu2 %v992_v39  ;;  %1007 = vmax.xlane.f32.xlu0 %v993_v5  ;;  %v991_v57 = vsel %vm983_vm2, -1e+30, %v4391_v41 }
 0x2d3   : > { %1003 = vmax.xlane.f32.xlu1 %v991_v57 }
 0x2d8   : > { %v4475_v59 = vpop.xlane.xlu2 %977 }
 0x2d9   : > { %8618 = vst [vmem:[#allocation36_spill] sm:$0xff] %v4475_v59  ;;  %vm986_vm3 = vcmp.eq.f32.partialorder %v4267_v29, %v4475_v59 }
 0x2da   : > { %v994_v54 = vsel %vm986_vm3, -1e+30, %v4399_v51 }
 0x2db   : > { %1009 = vmax.xlane.f32.xlu1 %v994_v54 }
 0x32a   : > { %v4480_v12 = vpop.xlane.xlu0 %995 }
 0x32b   : > { %8619 = vst [vmem:[#allocation37_spill] sm:$0xff] %v4480_v12  ;;  %vm1011_vm4 = vcmp.eq.f32.partialorder %v987_v44, %v4480_v12 }
 0x32c   : > { %v1019_v14 = vsel %vm1011_vm4, %v4267_v29, 1e+09 }
 0x32d   : > { %1027 = vmin.xlane.f32.xlu2 %v1019_v14 }
 0x332   : > { %v4484_v55 = vpop.xlane.xlu0 %1001 }
 0x333   : > { %8620 = vst [vmem:[#allocation38_spill] sm:$0xff] %v4484_v55  ;;  %vm1014_vm5 = vcmp.eq.f32.partialorder %v990_v15, %v4484_v55 }
 0x334   : > { %v1022_v41 = vsel %vm1014_vm5, %v4267_v29, 1e+09  ;;  %vm8344_vm5 = vmmov 1  }
 0x335   : > { %1033 = vmin.xlane.f32.xlu2 %v1022_v41 }
 0x33a   : > { %v4488_v61 = vpop.xlane.xlu1 %997 }
 0x33b   : > { %8621 = vst [vmem:[#allocation39_spill] sm:$0xff] %v4488_v61  ;;  %vm1012_vm6 = vcmp.eq.f32.partialorder %v988_v48, %v4488_v61 }
 0x33c   : > { %v1020_v51 = vsel %vm1012_vm6, %v4267_v29, 1e+09 }
 0x33d   : > { %1029 = vmin.xlane.f32.xlu0 %v1020_v51  ;;  %v4492_v59 = vpop.xlane.xlu2 %999 }
 0x33e   : > { %8622 = vst [vmem:[#allocation40_spill] sm:$0xff] %v4492_v59  ;;  %vm1013_vm7 = vcmp.eq.f32.partialorder %v989_v18, %v4492_v59 }
 0x33f   : > { %v1021_v44 = vsel %vm1013_vm7, %v4267_v29, 1e+09 }
 0x340   : > { %1031 = vmin.xlane.f32.xlu1 %v1021_v44 }
 0x345   : > { %v4496_v14 = vpop.xlane.xlu0 %1007  ;;  %v4498_v15 = vpop.xlane.xlu2 %1005 }
 0x346   : > { %8623 = vst [vmem:[#allocation41_spill] sm:$0xff] %v4496_v14  ;;  %v4500_v9 = vpop.xlane.xlu1 %1003  ;;  %vm1017_vm8 = vcmp.eq.f32.partialorder %v993_v5, %v4496_v14  ;;  %vm1016_vm9 = vcmp.eq.f32.partialorder %v992_v39, %v4498_v15  ;;  %v1101_v5 = vmax.f32 %v4206_v6, %v4309_v34  ;;  %v1100_v39 = vmax.f32 %v4231_v47, %v4317_v13 }
 0x347   : > { %8624 = vst [vmem:[#allocation42_spill] sm:$0xff] %v4498_v15  ;;  %v1025_v48 = vsel %vm1017_vm8, %v4267_v29, 1e+09  ;;  %vm1015_vm10 = vcmp.eq.f32.partialorder %v991_v57, %v4500_v9  ;;  %v1024_v41 = vsel %vm1016_vm9, %v4267_v29, 1e+09  ;;  %v1104_v13 = vmax.f32 %v4243_v42, %v4323_v37 }
 0x348   : > { %8625 = vst [vmem:[#allocation43_spill] sm:$0xff] %v4500_v9  ;;  %1039 = vmin.xlane.f32.xlu2 %v1025_v48  ;;  %v1023_v18 = vsel %vm1015_vm10, %v4267_v29, 1e+09  ;;  %1037 = vmin.xlane.f32.xlu1 %v1024_v41  ;;  %v1132_v57 = vmax.f32 %v1100_v39, %v4327_v21  ;;  %v1099_v48 = vmax.f32 %v4224_v63, %v4311_v30 }
 0x349   : > { %1035 = vmin.xlane.f32.xlu0 %v1023_v18  ;;  %v1133_v41 = vmax.f32 %v1101_v5, %v4325_v22  ;;  %v1102_v5 = vmax.f32 %v4234_v4, %v4315_v38  ;;  %v1136_v39 = vmax.f32 %v1104_v13, %v4331_v36 }
 0x34a   : > { %v1140_v18 = vmax.f32 %v1132_v57, %v4279_v0 }
 0x34b   : > { %v1144_v38 = vmax.f32 %v1136_v39, %v4289_v26  ;;  %v1134_v57 = vmax.f32 %v1102_v5, %v4335_v52  ;;  %v1105_v52 = vmax.f32 %v4246_v1, %v4321_v7  ;;  %v1051_v39 = vld [vmem:[%s4076_s21] sm:$0xff] }
 0x34c   : > { %v1148_v34 = vmax.f32 %v1140_v18, %v4412_v11 }
 0x34d   : > { %v1152_v18 = vmax.f32 %v1144_v38, %v4422_v24  ;;  %v1137_v13 = vmax.f32 %v1105_v52, %v4351_v8  ;;  %v1055_v52 = vld [vmem:[%s4076_s21 + $0x20] sm:$0xff] }
 0x34e   : > { %v4508_v51 = vpop.xlane.xlu1 %1009  ;;  %v4531_v22 = vmax.f32 %v1148_v34, %v4488_v61 }
 0x34f   : > { %8626 = vst [vmem:[#allocation44_spill] sm:$0xff] %v4508_v51  ;;  %vm1018_vm11 = vcmp.eq.f32.partialorder %v994_v54, %v4508_v51  ;;  %v1141_v54 = vmax.f32 %v1133_v41, %v4284_v43  ;;  %v4565_v34 = vmax.f32 %v1152_v18, %v4498_v15  ;;  %v1145_v5 = vmax.f32 %v1137_v13, %v4293_v35  ;;  %v1056_v13 = vld [vmem:[%s4076_s21 + $0x28] sm:$0xff] }
 0x350   : > { %v1026_v44 = vsel %vm1018_vm11, %v4267_v29, 1e+09  ;;  %v1131_v29 = vmax.f32 %v1099_v48, %v4329_v49  ;;  %v1106_v48 = vmax.f32 %v4221_v3, %v4319_v50  ;;  %vm8341_vm13 = vcmp.eq.f32.partialorder %v4231_v47, %v4531_v22 }
 0x351   : > { %1041 = vmin.xlane.f32.xlu0 %v1026_v44  ;;  %v1103_v44 = vmax.f32 %v4216_v19, %v4313_v31  ;;  %v1149_v21 = vmax.f32 %v1141_v54, %v4417_v40  ;;  %vm8319_vm2 = vcmp.eq.f32.partialorder %v4243_v42, %v4565_v34  ;;  %vm1228_vm6 = vmxor %vm8341_vm13, %vm8344_vm5 }
 0x352   : > { %v1139_v49 = vmax.f32 %v1131_v29, %v4269_v25  ;;  %v1138_v54 = vmax.f32 %v1106_v48, %v4345_v2  ;;  %vm1232_vm10 = vmxor %vm8319_vm2, %vm8344_vm5 }
 0x353   : > { %v1135_v30 = vmax.f32 %v1103_v44, %v4333_v58  ;;  %v4538_v31 = vmax.f32 %v1149_v21, %v4492_v59  ;;  %v1142_v44 = vmax.f32 %v1134_v57, %v4274_v33  ;;  %v1053_v57 = vld [vmem:[%s4076_s21 + $0x10] sm:$0xff] }
 0x354   : > { %v1147_v37 = vmax.f32 %v1139_v49, %v4402_v17  ;;  %v1146_v2 = vmax.f32 %v1138_v54, %v4304_v45  ;;  %v1153_v49 = vmax.f32 %v1145_v5, %v4424_v16  ;;  %v4636_v18 = vcvt.s32.f32 %v1053_v57  ;;  %v1054_v54 = vld [vmem:[%s4076_s21 + $0x18] sm:$0xff] }
 0x355   : > { %v1143_v58 = vmax.f32 %v1135_v30, %v4295_v20  ;;  %v1150_v50 = vmax.f32 %v1142_v44, %v4407_v62  ;;  %vm8342_vm14 = vcmp.eq.f32.partialorder %v4206_v6, %v4538_v31  ;;  %v4643_v44 = vcvt.s32.f32 %v1054_v54  ;;  %v1058_v57 = vld [vmem:[%s4076_s21 + $0x38] sm:$0xff] }
 0x356   : > { %v4549_v36 = vmax.f32 %v1147_v37, %v4480_v12  ;;  %v1154_v7 = vmax.f32 %v1146_v2, %v4436_v60  ;;  %v4590_v8 = vmax.f32 %v1153_v49, %v4496_v14  ;;  %v1052_v37 = vld [vmem:[%s4076_s21 + $0x8] sm:$0xff]  ;;  %8629 = vst [vmem:[#allocation47_spill] sm:$0xff] %v4636_v18  ;;  %v4651_v2 = vcvt.s32.f32 %v1055_v52  ;;  %vm1229_vm7 = vmxor %vm8342_vm14, %vm8344_vm5 }
 0x357   : > { %v1151_v41 = vmax.f32 %v1143_v58, %v4426_v56  ;;  %v4575_v21 = vmax.f32 %v1150_v50, %v4484_v55  ;;  %v4617_v58 = vcvt.s32.f32 %v1051_v39  ;;  %v4621_v38 = vcvt.s32.f32 %v1052_v37  ;;  %8630 = vst [vmem:[#allocation48_spill] sm:$0xff] %v4643_v44  ;;  %v1057_v39 = vld [vmem:[%s4076_s21 + $0x30] sm:$0xff] }
 0x358   : > { %v4581_v30 = vmax.f32 %v1154_v7, %v4508_v51  ;;  %vm8318_vm12 = vcmp.eq.f32.partialorder %v4224_v63, %v4549_v36  ;;  %v1173_v50 = vsel %vm8342_vm14, %v4636_v18, -1.0  ;;  %8631 = vst [vmem:[#allocation49_spill] sm:$0xff] %v4651_v2  ;;  %v4666_v49 = vcvt.s32.f32 %v1056_v13 }
 0x359   : > { %v4559_v29 = vmax.f32 %v1151_v41, %v4500_v9  ;;  %8627 = vst [vmem:[#allocation45_spill] sm:$0xff] %v4617_v58  ;;  %v1171_v48 = vsel %vm8318_vm12, %v4617_v58, -1.0  ;;  %v1172_v41 = vsel %vm8341_vm13, %v4621_v38, -1.0  ;;  %vm8317_vm15 = vcmp.eq.f32.partialorder %v4234_v4, %v4575_v21  ;;  %vm1227_vm8 = vmxor %vm8318_vm12, %vm8344_vm5 }
 0x35a   : > { %8628 = vst [vmem:[#allocation46_spill] sm:$0xff] %v4621_v38  ;;  %v1174_v7 = vsel %vm8317_vm15, %v4643_v44, -1.0  ;;  %vm8314_vm3 = vcmp.eq.f32.partialorder %v4246_v1, %v4590_v8  ;;  %v4683_v54 = vcvt.s32.f32 %v1058_v57  ;;  %vm8320_vm4 = vcmp.eq.f32.partialorder %v4221_v3, %v4581_v30  ;;  %vm1230_vm11 = vmxor %vm8317_vm15, %vm8344_vm5 }
 0x35b   : > { %vm8321_vm0 = vcmp.eq.f32.partialorder %v4216_v19, %v4559_v29  ;;  %8632 = vst [vmem:[#allocation50_spill] sm:$0xff] %v4666_v49 }
 0x35c   : > { %v1175_v5 = vsel %vm8321_vm0, %v4651_v2, -1.0  ;;  %8635 = vst [vmem:[#allocation53_spill] sm:$0xff] %v4683_v54  ;;  %vm1231_vm9 = vmxor %vm8321_vm0, %vm8344_vm5 }
 0x360   : > { %1197 = vrot.lane.b32.xlu2 %v4531_v22, %s3640_s27 }
 0x361   : > { %1199 = vrot.lane.b32.xlu1 %v4538_v31, %s3640_s27 }
 0x365   : > { %1195 = vrot.lane.b32.xlu0 %v4549_v36, %s3640_s27 }
 0x368   : > { %1203 = vrot.lane.b32.xlu2 %v4559_v29, %s3640_s27 }
 0x369   : > { %1205 = vrot.lane.b32.xlu1 %v4565_v34, %s3640_s27 }
 0x36d   : > { %1201 = vrot.lane.b32.xlu0 %v4575_v21, %s3640_s27 }
 0x370   : > { %1209 = vrot.lane.b32.xlu2 %v4581_v30, %s3640_s27 }
 0x371   : > { %1363 = vrot.lane.b32.xlu1 %v4549_v36, %s3641_s28 }
 0x375   : > { %1207 = vrot.lane.b32.xlu0 %v4590_v8, %s3640_s27 }
 0x378   : > { %1367 = vrot.lane.b32.xlu2 %v4538_v31, %s3641_s28 }
 0x379   : > { %1369 = vrot.lane.b32.xlu1 %v4575_v21, %s3641_s28 }
 0x37d   : > { %1365 = vrot.lane.b32.xlu0 %v4531_v22, %s3641_s28 }
 0x380   : > { %1373 = vrot.lane.b32.xlu2 %v4565_v34, %s3641_s28 }
 0x381   : > { %1375 = vrot.lane.b32.xlu1 %v4590_v8, %s3641_s28 }
 0x385   : > { %1371 = vrot.lane.b32.xlu0 %v4559_v29, %s3641_s28 }
 0x388   : > { %1705 = vperm.xlu2 %3515, %v4531_v22  }
 0x389   : > { %1709 = vperm.xlu1 %3516, %v4538_v31  }
 0x38d   : > { %1377 = vrot.lane.b32.xlu0 %v4581_v30, %s3641_s28 }
 0x390   : > { %1713 = vperm.xlu2 %3515, %v4575_v21  }
 0x391   : > { %1717 = vperm.xlu1 %3516, %v4559_v29  }
 0x395   : > { %1701 = vperm.xlu0 %3514, %v4549_v36  }
 0x398   : > { %1725 = vperm.xlu2 %3515, %v4590_v8  }
 0x399   : > { %1729 = vperm.xlu1 %3516, %v4581_v30  }
 0x39d   : > { %1721 = vperm.xlu0 %3514, %v4565_v34  }
 0x3a0   : > { %1283 = vrot.lane.b32.xlu2 %v1171_v48, %s3640_s27  ;;  %v4669_v37 = vpop.xlane.xlu2 %1027  ;;  %v4675_v48 = vcvt.s32.f32 %v1057_v39  ;;  %v1235_v39 = vsel %vm1227_vm8, 1, %v8575_v27 }
 0x3a1   : > { %1285 = vrot.lane.b32.xlu1 %v1172_v41, %s3640_s27  ;;  %8633 = vst [vmem:[#allocation51_spill] sm:$0xff] %v4669_v37  ;;  %v1176_v41 = vsel %vm8319_vm2, %v4666_v49, -1.0 }
 0x3a2   : > { %8634 = vst [vmem:[#allocation52_spill] sm:$0xff] %v4675_v48  ;;  %v1177_v52 = vsel %vm8314_vm3, %v4675_v48, -1.0 }
 0x3a5   : > { %1287 = vrot.lane.b32.xlu0 %v1173_v50, %s3640_s27  ;;  %v1178_v50 = vsel %vm8320_vm4, %v4683_v54, -1.0 }
 0x3a8   : > { %1289 = vrot.lane.b32.xlu2 %v1174_v7, %s3640_s27  ;;  %v4702_v13 = vpop.xlane.xlu2 %1033  ;;  %v1236_v7 = vsel %vm1228_vm6, 1, %v8575_v27  ;;  %vm1234_vm6 = vmxor %vm8320_vm4, %vm8344_vm5 }
 0x3a9   : > { %1291 = vrot.lane.b32.xlu1 %v1175_v5, %s3640_s27  ;;  %8636 = vst [vmem:[#allocation54_spill] sm:$0xff] %v4702_v13  ;;  %v1237_v5 = vsel %vm1229_vm7, 1, %v8575_v27  ;;  %vm1233_vm7 = vmxor %vm8314_vm3, %vm8344_vm5 }
 0x3ad   : > { %1293 = vrot.lane.b32.xlu0 %v1176_v41, %s3640_s27  ;;  %v1239_v41 = vsel %vm1231_vm9, 1, %v8575_v27 }
 0x3b0   : > { %1295 = vrot.lane.b32.xlu2 %v1177_v52, %s3640_s27  ;;  %v4729_v52 = vpop.xlane.xlu0 %1029 }
 0x3b1   : > { %1297 = vrot.lane.b32.xlu1 %v1178_v50, %s3640_s27  ;;  %8638 = vst [vmem:[#allocation56_spill] sm:$0xff] %v4729_v52  ;;  %v1240_v50 = vsel %vm1232_vm10, 1, %v8575_v27 }
 0x3b5   : > { %1245 = vrot.lane.b32.xlu0 %v1236_v7, %s3640_s27  ;;  %v1238_v7 = vsel %vm1230_vm11, 1, %v8575_v27 }
 0x3b8   : > { %1247 = vrot.lane.b32.xlu2 %v1237_v5, %s3640_s27  ;;  %v4739_v5 = vpop.xlane.xlu1 %1031 }
 0x3b9   : > { %1243 = vrot.lane.b32.xlu1 %v1235_v39, %s3640_s27  ;;  %8639 = vst [vmem:[#allocation57_spill] sm:$0xff] %v4739_v5 }
 0x3bb   : > { %v4722_v57 = vpop.xlane.xlu2 %1039 }
 0x3bc   : > { %8637 = vst [vmem:[#allocation55_spill] sm:$0xff] %v4722_v57  ;;  %v4747_v51 = vpop.xlane.xlu0 %1035 }
 0x3bd   : > { %1251 = vrot.lane.b32.xlu0 %v1239_v41, %s3640_s27  ;;  %v1242_v41 = vsel %vm1234_vm6, 1, %v8575_v27  ;;  %8640 = vst [vmem:[#allocation58_spill] sm:$0xff] %v4747_v51 }
 0x3c0   : > { %1253 = vrot.lane.b32.xlu2 %v1240_v50, %s3640_s27  ;;  %v1241_v50 = vsel %vm1233_vm7, 1, %v8575_v27 }
 0x3c1   : > { %1249 = vrot.lane.b32.xlu1 %v1238_v7, %s3640_s27  ;;  %v4756_v7 = vpop.xlane.xlu1 %1037 }
 0x3c2   : > { %8641 = vst [vmem:[#allocation59_spill] sm:$0xff] %v4756_v7 }
 0x3c3   : > { %v1198_v39 = vpop.permute.xlu2 %1197 }
 0x3c4   : > { %v4758_v57 = vpop.xlane.xlu0 %1041 }
 0x3c5   : > { %1257 = vrot.lane.b32.xlu0 %v1242_v41, %s3640_s27  ;;  %8642 = vst [vmem:[#allocation60_spill] sm:$0xff] %v4758_v57 }
 0x3c9   : > { %1255 = vrot.lane.b32.xlu1 %v1241_v50, %s3640_s27 }
 0x3cb   : > { %v1204_v9 = vpop.permute.xlu2 %1203 }
 0x3d3   : > { %v1200_v15 = vpop.permute.xlu1 %1199  ;;  %v4760_v60 = vpop.permute.xlu2 %1209 }
 0x3d4   : > { %vm1221_vm8 = vcmp.eq.f32.partialorder %v4206_v6, %v1200_v15 }
 0x3d7   : > { %v1196_v51 = vpop.permute.xlu0 %1195 }
 0x3db   : > { %v1206_v14 = vpop.permute.xlu1 %1205  ;;  %v4762_v41 = vpop.permute.xlu2 %1367 }
 0x3dc   : > { %vm1224_vm11 = vcmp.eq.f32.partialorder %v4243_v42, %v1206_v14 }
 0x3df   : > { %v1202_v52 = vpop.permute.xlu0 %1201 }
 0x3e3   : > { %v4764_v5 = vpop.permute.xlu1 %1363  ;;  %v4766_v61 = vpop.permute.xlu2 %1373 }
 0x3e7   : > { %v4768_v13 = vpop.permute.xlu0 %1207 }
 0x3eb   : > { %v4770_v50 = vpop.permute.xlu1 %1369  ;;  %v4772_v7 = vpop.permute.xlu2 %1705 }
 0x3ec   : > { %8643 = vst [vmem:[#allocation61_spill] sm:$0xff] %v4772_v7 }
 0x3ef   : > { %v4774_v59 = vpop.permute.xlu0 %1365 }
 0x3f3   : > { %v4776_v57 = vpop.permute.xlu1 %1375  ;;  %v4778_v55 = vpop.permute.xlu2 %1713 }
 0x3f4   : > { %8644 = vst [vmem:[#allocation62_spill] sm:$0xff] %v4778_v55 }
 0x3f7   : > { %v4780_v53 = vpop.permute.xlu0 %1371 }
 0x3fb   : > { %v4782_v10 = vpop.permute.xlu1 %1709  ;;  %v4784_v32 = vpop.permute.xlu2 %1725 }
 0x3fc   : > { %8645 = vst [vmem:[#allocation63_spill] sm:$0xff] %v4782_v10 }
 0x3fd   : > { %8646 = vst [vmem:[#allocation64_spill] sm:$0xff] %v4784_v32 }
 0x3ff   : > { %v4786_v46 = vpop.permute.xlu0 %1377 }
 0x403   : > { %v4788_v16 = vpop.permute.xlu1 %1717  ;;  %v4790_v35 = vpop.permute.xlu2 %1283 }
 0x404   : > { %8647 = vst [vmem:[#allocation65_spill] sm:$0xff] %v4788_v16 }
 0x407   : > { %v4792_v37 = vpop.permute.xlu0 %1701 }
 0x408   : > { %8648 = vst [vmem:[#allocation66_spill] sm:$0xff] %v4792_v37 }
 0x40b   : > { %v4794_v7 = vpop.permute.xlu1 %1729  ;;  %v4796_v23 = vpop.permute.xlu2 %1289 }
 0x40c   : > { %8649 = vst [vmem:[#allocation67_spill] sm:$0xff] %v4794_v7 }
 0x40f   : > { %v4798_v12 = vpop.permute.xlu0 %1721 }
 0x410   : > { %8650 = vst [vmem:[#allocation68_spill] sm:$0xff] %v4798_v12 }
 0x413   : > { %v1286_v55 = vpop.permute.xlu1 %1285  ;;  %v4800_v28 = vpop.permute.xlu2 %1295 }
 0x417   : > { %v1288_v10 = vpop.permute.xlu0 %1287 }
 0x41b   : > { %v4802_v45 = vpop.permute.xlu1 %1291  ;;  %v1248_v32 = vpop.permute.xlu2 %1247 }
 0x41c   : > { %vm1261_vm9 = vcmp.ne.s32.totalorder %v1248_v32, 0 }
 0x41d   : > { %vm4805_vm10 = vmand %vm1221_vm8, %vm1261_vm9  ;;  %vm1220_vm8 = vcmp.eq.f32.partialorder %v4231_v47, %v1198_v39 }
 0x41e   : > { %v1325_v7 = vsel %vm4805_vm10, 1, %v8575_v27 }
 0x41f   : > { %v1294_v37 = vpop.permute.xlu0 %1293  ;;  %1335 = vrot.lane.b32.xlu1 %v1325_v7, %s3638_s24 }
 0x423   : > { %v1298_v12 = vpop.permute.xlu1 %1297  ;;  %v1254_v56 = vpop.permute.xlu2 %1253 }
 0x424   : > { %vm1264_vm6 = vcmp.ne.s32.totalorder %v1254_v56, 0 }
 0x425   : > { %vm4814_vm7 = vmand %vm1224_vm11, %vm1264_vm6  ;;  %vm1219_vm11 = vcmp.eq.f32.partialorder %v4224_v63, %v1196_v51 }
 0x426   : > { %v1328_v32 = vsel %vm4814_vm7, 1, %v8575_v27 }
 0x427   : > { %v1246_v15 = vpop.permute.xlu0 %1245  ;;  %1341 = vrot.lane.b32.xlu1 %v1328_v32, %s3638_s24  ;;  %v1309_v32 = vsel %vm4805_vm10, %v4636_v18, %v1288_v10  ;;  %v4938_v10 = vsel %vm4805_vm10, -1e+30, %v4206_v6 }
 0x428   : > { %vm1260_vm9 = vcmp.ne.s32.totalorder %v1246_v15, 0  ;;  %8670 = vst [vmem:[#allocation72_spill] sm:$0xff] %v4938_v10 }
 0x429   : > { %vm4823_vm1 = vmand %vm1220_vm8, %vm1260_vm9  ;;  %vm1223_vm8 = vcmp.eq.f32.partialorder %v4216_v19, %v1204_v9 }
 0x42a   : > { %v1324_v56 = vsel %vm4823_vm1, 1, %v8575_v27 }
 0x42b   : > { %1333 = vrot.lane.b32.xlu2 %v1324_v56, %s3638_s24  ;;  %v1244_v14 = vpop.permute.xlu1 %1243 }
 0x42c   : > { %vm1259_vm6 = vcmp.ne.s32.totalorder %v1244_v14, 0 }
 0x42d   : > { %vm4832_vm3 = vmand %vm1219_vm11, %vm1259_vm6  ;;  %vm1222_vm6 = vcmp.eq.f32.partialorder %v4234_v4, %v1202_v52 }
 0x42e   : > { %v1323_v39 = vsel %vm4832_vm3, 1, %v8575_v27 }
 0x42f   : > { %v1252_v15 = vpop.permute.xlu0 %1251  ;;  %1331 = vrot.lane.b32.xlu0 %v1323_v39, %s3638_s24  ;;  %1455 = vrot.lane.b32.xlu1 %v1309_v32, %s3640_s27  ;;  %v1312_v39 = vsel %vm4814_vm7, %v4666_v49, %v1294_v37 }
 0x430   : > { %vm1263_vm9 = vcmp.ne.s32.totalorder %v1252_v15, 0 }
 0x431   : > { %vm4845_vm11 = vmand %vm1223_vm8, %vm1263_vm9  ;;  %vm1226_vm8 = vcmp.eq.f32.partialorder %v4221_v3, %v4760_v60 }
 0x432   : > { %v1327_v56 = vsel %vm4845_vm11, 1, %v8575_v27  ;;  %v4959_v16 = vsel %vm4845_vm11, -1e+30, %v4216_v19 }
 0x433   : > { %1339 = vrot.lane.b32.xlu2 %v1327_v56, %s3638_s24  ;;  %v1250_v14 = vpop.permute.xlu1 %1249  ;;  %8673 = vst [vmem:[#allocation75_spill] sm:$0xff] %v4959_v16 }
 0x434   : > { %vm1262_vm15 = vcmp.ne.s32.totalorder %v1250_v14, 0  ;;  %v4888_v14 = vsel %vm4832_vm3, -1e+30, %v4224_v63 }
 0x435   : > { %vm4854_vm12 = vmand %vm1222_vm6, %vm1262_vm15  ;;  %vm1225_vm6 = vcmp.eq.f32.partialorder %v4246_v1, %v4768_v13  ;;  %8667 = vst [vmem:[#allocation69_spill] sm:$0xff] %v4888_v14  ;;  %v1308_v13 = vsel %vm4823_vm1, %v4621_v38, %v1286_v55  ;;  %v1311_v55 = vsel %vm4845_vm11, %v4651_v2, %v4802_v45 }
 0x436   : > { %v1326_v9 = vsel %vm4854_vm12, 1, %v8575_v27 }
 0x437   : > { %v1258_v32 = vpop.permute.xlu0 %1257  ;;  %1337 = vrot.lane.b32.xlu0 %v1326_v9, %s3638_s24  ;;  %1461 = vrot.lane.b32.xlu1 %v1312_v39, %s3640_s27  ;;  %v1307_v9 = vsel %vm4832_vm3, %v4617_v58, %v4790_v35  ;;  %v4904_v39 = vsel %vm4854_vm12, -1e+30, %v4234_v4  ;;  %v1310_v35 = vsel %vm4854_vm12, %v4643_v44, %v4796_v23 }
 0x438   : > { %vm1266_vm15 = vcmp.ne.s32.totalorder %v1258_v32, 0  ;;  %8668 = vst [vmem:[#allocation70_spill] sm:$0xff] %v4904_v39 }
 0x439   : > { %vm4868_vm9 = vmand %vm1226_vm8, %vm1266_vm15 }
 0x43a   : > { %v1330_v15 = vsel %vm4868_vm9, 1, %v8575_v27  ;;  %v1314_v45 = vsel %vm4868_vm9, %v4683_v54, %v1298_v12  ;;  %v4945_v12 = vsel %vm4823_vm1, -1e+30, %v4231_v47  ;;  %v4966_v7 = vsel %vm4868_vm9, -1e+30, %v4221_v3 }
 0x43b   : > { %1345 = vrot.lane.b32.xlu2 %v1330_v15, %s3638_s24  ;;  %v1256_v37 = vpop.permute.xlu1 %1255  ;;  %8671 = vst [vmem:[#allocation73_spill] sm:$0xff] %v4945_v12  ;;  %v8677_v15 = vmov 0  ;;  %vm8681_vm9 = vcmp.eq.f32.partialorder %v4221_v3, %v4581_v30 }
 0x43c   : > { %vm1265_vm2 = vcmp.ne.s32.totalorder %v1256_v37, 0  ;;  %8674 = vst [vmem:[#allocation76_spill] sm:$0xff] %v4966_v7 }
 0x43d   : > { %vm4878_vm4 = vmand %vm1225_vm6, %vm1265_vm2 }
 0x43e   : > { %v1329_v60 = vsel %vm4878_vm4, 1, %v8575_v27  ;;  %v4921_v20 = vsel %vm4878_vm4, -1e+30, %v4246_v1  ;;  %v1313_v23 = vsel %vm4878_vm4, %v4675_v48, %v4800_v28  ;;  %v4952_v28 = vsel %vm4814_vm7, -1e+30, %v4243_v42 }
 0x43f   : > { %1343 = vrot.lane.b32.xlu0 %v1329_v60, %s3638_s24  ;;  %1796 = vrot.lane.b32.xlu1 %v4888_v14, %s3638_s24  ;;  %8669 = vst [vmem:[#allocation71_spill] sm:$0xff] %v4921_v20  ;;  %v8734_v60 = vmov 0 }
 0x440   : > { %8672 = vst [vmem:[#allocation74_spill] sm:$0xff] %v4952_v28 }
 0x443   : > { %1453 = vrot.lane.b32.xlu2 %v1308_v13, %s3640_s27 }
 0x447   : > { %1451 = vrot.lane.b32.xlu0 %v1307_v9, %s3640_s27  ;;  %1802 = vrot.lane.b32.xlu1 %v4904_v39, %s3638_s24 }
 0x44b   : > { %1459 = vrot.lane.b32.xlu2 %v1311_v55, %s3640_s27  ;;  %v8682_v55 = vmov 0 }
 0x44f   : > { %1457 = vrot.lane.b32.xlu0 %v1310_v35, %s3640_s27  ;;  %1808 = vrot.lane.b32.xlu1 %v4921_v20, %s3638_s24 }
 0x453   : > { %1465 = vrot.lane.b32.xlu2 %v1314_v45, %s3640_s27 }
 0x457   : > { %1463 = vrot.lane.b32.xlu0 %v1313_v23, %s3640_s27 }
 0x45b   : > { %1800 = vrot.lane.b32.xlu2 %v4938_v10, %s3638_s24 }
 0x45f   : > { %1798 = vrot.lane.b32.xlu0 %v4945_v12, %s3638_s24 }
 0x463   : > { %1806 = vrot.lane.b32.xlu2 %v4952_v28, %s3638_s24 }
 0x467   : > { %1804 = vrot.lane.b32.xlu0 %v4959_v16, %s3638_s24 }
 0x46f   : > { %1810 = vrot.lane.b32.xlu0 %v4966_v7, %s3638_s24 }
 0x485   : > { %v1334_v62 = vpop.permute.xlu2 %1333 }
 0x486   : > { %vm1348_vm1 = vcmp.ne.s32.totalorder %v1334_v62, 0 }
 0x487   : > { %vm4973_vm12 = vmor %vm8341_vm13, %vm1348_vm1 }
 0x488   : > { %vm1396_vm2 = vmxor %vm4973_vm12, %vm8344_vm5 }
 0x489   : > { %v1404_v32 = vsel %vm1396_vm2, 1, %v8575_v27 }
 0x48a   : > { %1413 = vrot.lane.b32.xlu1 %v1404_v32, %s3641_s28 }
 0x48d   : > { %v1340_v52 = vpop.permute.xlu2 %1339 }
 0x48e   : > { %vm1351_vm3 = vcmp.ne.s32.totalorder %v1340_v52, 0  ;;  %v8744_v52 = vmov 0 }
 0x48f   : > { %vm4985_vm4 = vmor %vm8321_vm0, %vm1351_vm3  ;;  %vm8684_vm3 = vcmp.eq.f32.partialorder %v4243_v42, %v4565_v34 }
 0x490   : > { %v8678_v15 = vsel %vm4985_vm4, 4294967295, %v8677_v15  ;;  %vm1399_vm10 = vmxor %vm4985_vm4, %vm8344_vm5 }
 0x491   : > { %v1336_v37 = vpop.permute.xlu1 %1335  ;;  %v1407_v56 = vsel %vm1399_vm10, 1, %v8575_v27 }
 0x492   : > { %vm1349_vm7 = vcmp.ne.s32.totalorder %v1336_v37, 0  ;;  %1419 = vrot.lane.b32.xlu1 %v1407_v56, %s3641_s28 }
 0x493   : > { %vm4997_vm11 = vmor %vm8342_vm14, %vm1349_vm7 }
 0x494   : > { %vm1397_vm8 = vmxor %vm4997_vm11, %vm8344_vm5 }
 0x495   : > { %v1346_v13 = vpop.permute.xlu2 %1345  ;;  %v1405_v9 = vsel %vm1397_vm8, 1, %v8575_v27 }
 0x496   : > { %vm1354_vm15 = vcmp.ne.s32.totalorder %v1346_v13, 0  ;;  %1415 = vrot.lane.b32.xlu0 %v1405_v9, %s3641_s28  ;;  %v8691_v13 = vmov 0 }
 0x497   : > { %vm5009_vm6 = vmor %vm8681_vm9, %vm1354_vm15  ;;  %vm8687_vm15 = vcmp.eq.f32.partialorder %v4224_v63, %v4549_v36 }
 0x498   : > { %v8683_v55 = vsel %vm5009_vm6, 4294967295, %v8682_v55  ;;  %vm1402_vm1 = vmxor %vm5009_vm6, %vm8344_vm5 }
 0x499   : > { %v1342_v35 = vpop.permute.xlu1 %1341  ;;  %v1410_v45 = vsel %vm1402_vm1, 1, %v8575_v27 }
 0x49a   : > { %vm1352_vm2 = vcmp.ne.s32.totalorder %v1342_v35, 0  ;;  %1425 = vrot.lane.b32.xlu1 %v1410_v45, %s3641_s28  ;;  %v8694_v45 = vmov 0 }
 0x49b   : > { %vm5021_vm10 = vmor %vm8684_vm3, %vm1352_vm2  ;;  %vm8690_vm3 = vcmp.eq.f32.partialorder %v4234_v4, %v4575_v21 }
 0x49c   : > { %vm1400_vm7 = vmxor %vm5021_vm10, %vm8344_vm5 }
 0x49d   : > { %v1408_v62 = vsel %vm1400_vm7, 1, %v8575_v27 }
 0x49e   : > { %1421 = vrot.lane.b32.xlu0 %v1408_v62, %s3641_s28 }
 0x4a1   : > { %v1332_v32 = vpop.permute.xlu0 %1331 }
 0x4a2   : > { %vm1347_vm8 = vcmp.ne.s32.totalorder %v1332_v32, 0  ;;  %v5066_v32 = vpop.permute.xlu1 %1455 }
 0x4a3   : > { %vm5033_vm9 = vmor %vm8687_vm15, %vm1347_vm8 }
 0x4a4   : > { %vm1395_vm1 = vmxor %vm5033_vm9, %vm8344_vm5 }
 0x4a5   : > { %v1403_v37 = vsel %vm1395_vm1, 1, %v8575_v27  ;;  %vm8693_vm1 = vcmp.eq.f32.partialorder %v4246_v1, %v4590_v8 }
 0x4a6   : > { %1411 = vrot.lane.b32.xlu2 %v1403_v37, %s3641_s28 }
 0x4a9   : > { %v1338_v56 = vpop.permute.xlu0 %1337 }
 0x4aa   : > { %vm1350_vm2 = vcmp.ne.s32.totalorder %v1338_v56, 0  ;;  %v5070_v56 = vpop.permute.xlu2 %1453 }
 0x4ab   : > { %vm5045_vm7 = vmor %vm8690_vm3, %vm1350_vm2  ;;  %vm1388_vm3 = vcmp.eq.f32.partialorder %v4231_v47, %v4774_v59 }
 0x4ac   : > { %v8692_v13 = vsel %vm5045_vm7, 4294967295, %v8691_v13  ;;  %vm1398_vm8 = vmxor %vm5045_vm7, %vm8344_vm5 }
 0x4ad   : > { %v1406_v9 = vsel %vm1398_vm8, 1, %v8575_v27 }
 0x4ae   : > { %1417 = vrot.lane.b32.xlu2 %v1406_v9, %s3641_s28  ;;  %v5072_v9 = vpop.permute.xlu1 %1461 }
 0x4b1   : > { %v1344_v35 = vpop.permute.xlu0 %1343 }
 0x4b2   : > { %vm1353_vm15 = vcmp.ne.s32.totalorder %v1344_v35, 0  ;;  %v5076_v7 = vpop.permute.xlu2 %1459 }
 0x4b3   : > { %vm5057_vm0 = vmor %vm8693_vm1, %vm1353_vm15 }
 0x4b4   : > { %v8695_v45 = vsel %vm5057_vm0, 4294967295, %v8694_v45  ;;  %vm1401_vm2 = vmxor %vm5057_vm0, %vm8344_vm5 }
 0x4b5   : > { %v1409_v62 = vsel %vm1401_vm2, 1, %v8575_v27 }
 0x4b6   : > { %1423 = vrot.lane.b32.xlu2 %v1409_v62, %s3641_s28  ;;  %v5078_v20 = vpop.permute.xlu1 %1796 }
 0x4b7   : > { %8696 = vst [vmem:[#allocation77_spill] sm:$0xff] %v5078_v20 }
 0x4b9   : > { %v5068_v37 = vpop.permute.xlu0 %1451 }
 0x4ba   : > { %v5082_v39 = vpop.permute.xlu2 %1465 }
 0x4be   : > { %v5084_v62 = vpop.permute.xlu1 %1802 }
 0x4bf   : > { %8697 = vst [vmem:[#allocation78_spill] sm:$0xff] %v5084_v62 }
 0x4c1   : > { %v5074_v35 = vpop.permute.xlu0 %1457 }
 0x4c2   : > { %v5088_v28 = vpop.permute.xlu2 %1800 }
 0x4c3   : > { %8699 = vst [vmem:[#allocation80_spill] sm:$0xff] %v5088_v28  ;;  %v5174_v28 = vld [vmem:[%s4087_s25 + $0x28] sm:$0xff] }
 0x4c6   : > { %v5090_v14 = vpop.permute.xlu1 %1808 }
 0x4c7   : > { %8700 = vst [vmem:[#allocation81_spill] sm:$0xff] %v5090_v14  ;;  %v5109_v14 = vld [vmem:[%s4087_s25] sm:$0xff] }
 0x4c8   : > { %vm1387_vm1 = vcmp.eq.f32.partialorder %v5109_v14, %v4764_v5 }
 0x4c9   : > { %v5080_v16 = vpop.permute.xlu0 %1463 }
 0x4ca   : > { %v5094_v3 = vpop.permute.xlu2 %1806 }
 0x4cb   : > { %8702 = vst [vmem:[#allocation83_spill] sm:$0xff] %v5094_v3 }
 0x4d1   : > { %v5086_v12 = vpop.permute.xlu0 %1798 }
 0x4d2   : > { %8698 = vst [vmem:[#allocation79_spill] sm:$0xff] %v5086_v12 }
 0x4d9   : > { %v5092_v10 = vpop.permute.xlu0 %1804 }
 0x4da   : > { %8701 = vst [vmem:[#allocation82_spill] sm:$0xff] %v5092_v10 }
 0x4e1   : > { %v5105_v62 = vpop.permute.xlu0 %1810 }
 0x4e2   : > { %8705 = vst [vmem:[#allocation84_spill] sm:$0xff] %v5105_v62 }
 0x4fc   : > { %v1414_v19 = vpop.permute.xlu1 %1413 }
 0x4fd   : > { %vm1428_vm8 = vcmp.ne.s32.totalorder %v1414_v19, 0 }
 0x4fe   : > { %vm5098_vm15 = vmand %vm1388_vm3, %vm1428_vm8 }
 0x4ff   : > { %v1492_v12 = vsel %vm5098_vm15, 1, %v8575_v27 }
 0x500   : > { %1501 = vrot.lane.b32.xlu0 %v1492_v12, %s3639_s26  ;;  %v1412_v10 = vpop.permute.xlu2 %1411  ;;  %v5122_v12 = vld [vmem:[%s4087_s25 + $0x20] sm:$0xff] }
 0x501   : > { %vm1427_vm2 = vcmp.ne.s32.totalorder %v1412_v10, 0  ;;  %vm1391_vm8 = vcmp.eq.f32.partialorder %v5122_v12, %v4780_v53  ;;  %v5140_v53 = vld [vmem:[%s4087_s25 + $0x18] sm:$0xff] }
 0x502   : > { %vm5113_vm3 = vmand %vm1387_vm1, %vm1427_vm2 }
 0x503   : > { %v1491_v59 = vsel %vm5113_vm3, 1, %v8575_v27 }
 0x504   : > { %v1420_v62 = vpop.permute.xlu1 %1419  ;;  %1499 = vrot.lane.b32.xlu1 %v1491_v59, %s3639_s26  ;;  %v5135_v59 = vld [vmem:[%s4087_s25 + $0x10] sm:$0xff] }
 0x505   : > { %vm1431_vm13 = vcmp.ne.s32.totalorder %v1420_v62, 0  ;;  %vm1389_vm1 = vcmp.eq.f32.partialorder %v5135_v59, %v4762_v41 }
 0x506   : > { %vm5126_vm14 = vmand %vm1391_vm8, %vm1431_vm13  ;;  %vm1390_vm13 = vcmp.eq.f32.partialorder %v5140_v53, %v4770_v50  ;;  %v5160_v50 = vld [vmem:[%s4087_s25 + $0x38] sm:$0xff] }
 0x507   : > { %v1495_v10 = vsel %vm5126_vm14, 1, %v8575_v27  ;;  %8714 = vst [vmem:[#allocation85_spill] sm:$0xff] %v5160_v50  ;;  %v5278_v19 = vsel %vm5126_vm14, -1e+30, %v5122_v12 }
 0x508   : > { %1507 = vrot.lane.b32.xlu0 %v1495_v10, %s3639_s26  ;;  %v1416_v47 = vpop.permute.xlu0 %1415  ;;  %v1418_v3 = vpop.permute.xlu2 %1417  ;;  %8726 = vst [vmem:[#allocation91_spill] sm:$0xff] %v5278_v19 }
 0x509   : > { %vm1429_vm2 = vcmp.ne.s32.totalorder %v1416_v47, 0  ;;  %vm1430_vm5 = vcmp.ne.s32.totalorder %v1418_v3, 0 }
 0x50a   : > { %vm5144_vm8 = vmand %vm1389_vm1, %vm1429_vm2 }
 0x50b   : > { %vm5148_vm0 = vmand %vm1390_vm13, %vm1430_vm5  ;;  %v1493_v41 = vsel %vm5144_vm8, 1, %v8575_v27  ;;  %vm1394_vm5 = vcmp.eq.f32.partialorder %v5160_v50, %v4786_v46  ;;  %vm1392_vm13 = vcmp.eq.f32.partialorder %v5174_v28, %v4766_v61  ;;  %v5179_v46 = vld [vmem:[%s4087_s25 + $0x30] sm:$0xff]  ;;  %v1477_v61 = vsel %vm5144_vm8, %v4636_v18, %v5066_v32 }
 0x50c   : > { %v1426_v47 = vpop.permute.xlu1 %1425  ;;  %1503 = vrot.lane.b32.xlu2 %v1493_v41, %s3639_s26  ;;  %v1494_v3 = vsel %vm5148_vm0, 1, %v8575_v27 }
 0x50d   : > { %vm1434_vm1 = vcmp.ne.s32.totalorder %v1426_v47, 0  ;;  %1505 = vrot.lane.b32.xlu1 %v1494_v3, %s3639_s26  ;;  %v5273_v47 = vsel %vm5148_vm0, -1e+30, %v5140_v53 }
 0x50e   : > { %vm5165_vm2 = vmand %vm1394_vm5, %vm1434_vm1  ;;  %vm1393_vm5 = vcmp.eq.f32.partialorder %v5179_v46, %v4776_v57  ;;  %v1475_v57 = vsel %vm5113_vm3, %v4617_v58, %v5068_v37  ;;  %v1478_v37 = vsel %vm5148_vm0, %v4643_v44, %v5074_v35  ;;  %8725 = vst [vmem:[#allocation90_spill] sm:$0xff] %v5273_v47  ;;  %v8804_v58 = vmov 0  ;;  %v8968_v44 = vld [vmem:[#allocation7_spill] sm:$0xff] }
 0x50f   : > { %v1498_v41 = vsel %vm5165_vm2, 1, %v8575_v27  ;;  %v5292_v10 = vsel %vm5165_vm2, -1e+30, %v5160_v50  ;;  %v8841_v50 = vld [vmem:[#allocation20_spill] sm:$0xff] }
 0x510   : > { %1513 = vrot.lane.b32.xlu0 %v1498_v41, %s3639_s26  ;;  %v1422_v42 = vpop.permute.xlu0 %1421  ;;  %v1424_v20 = vpop.permute.xlu2 %1423  ;;  %8728 = vst [vmem:[#allocation93_spill] sm:$0xff] %v5292_v10 }
 0x511   : > { %vm1432_vm6 = vcmp.ne.s32.totalorder %v1422_v42, 0  ;;  %vm1433_vm7 = vcmp.ne.s32.totalorder %v1424_v20, 0  ;;  %v1476_v20 = vsel %vm5098_vm15, %v4621_v38, %v5070_v56  ;;  %v1479_v56 = vsel %vm5126_vm14, %v4651_v2, %v5076_v7  ;;  %v8813_v38 = vld [vmem:[#allocation37_spill] sm:$0xff] }
 0x512   : > { %vm5183_vm1 = vmand %vm1392_vm13, %vm1432_vm6  ;;  %v1482_v7 = vsel %vm5165_vm2, %v4683_v54, %v5082_v39  ;;  %v8809_v54 = vld [vmem:[#allocation10_spill] sm:$0xff] }
 0x513   : > { %vm5187_vm4 = vmand %vm1393_vm5, %vm1433_vm7  ;;  %v1496_v41 = vsel %vm5183_vm1, 1, %v8575_v27  ;;  %v1480_v32 = vsel %vm5183_vm1, %v4666_v49, %v5072_v9  ;;  %v5232_v9 = vsel %vm5144_vm8, -1e+30, %v5135_v59  ;;  %v5249_v62 = vsel %vm5183_vm1, -1e+30, %v5174_v28 }
 0x514   : > { %1509 = vrot.lane.b32.xlu2 %v1496_v41, %s3639_s26  ;;  %v1497_v42 = vsel %vm5187_vm4, 1, %v8575_v27  ;;  %8721 = vst [vmem:[#allocation86_spill] sm:$0xff] %v5232_v9  ;;  %v1481_v35 = vsel %vm5187_vm4, %v4675_v48, %v5080_v16  ;;  %v5256_v16 = vsel %vm5113_vm3, -1e+30, %v5109_v14  ;;  %v5259_v41 = vld [vmem:[%s4087_s25 + $0x8] sm:$0xff]  ;;  %vm1533_vm7 = vcmp.eq.f32.partialorder %v4284_v43, %v4538_v31  ;;  %v8803_v27 = vld [vmem:[#allocation7_spill] sm:$0xff] }
 0x515   : > { %1511 = vrot.lane.b32.xlu1 %v1497_v42, %s3639_s26  ;;  %8722 = vst [vmem:[#allocation87_spill] sm:$0xff] %v5249_v62  ;;  %v5264_v39 = vsel %vm5098_vm15, -1e+30, %v5259_v41  ;;  %v5287_v1 = vsel %vm5187_vm4, -1e+30, %v5179_v46  ;;  %v8729_v42 = vmov 0 }
 0x516   : > { %8723 = vst [vmem:[#allocation88_spill] sm:$0xff] %v5256_v16  ;;  %vm8731_vm4 = vmmov 1  }
 0x517   : > { %8724 = vst [vmem:[#allocation89_spill] sm:$0xff] %v5264_v39 }
 0x518   : > { %1567 = vrot.lane.b32.xlu0 %v1477_v61, %s3639_s26  ;;  %8727 = vst [vmem:[#allocation92_spill] sm:$0xff] %v5287_v1 }
 0x51c   : > { %1563 = vrot.lane.b32.xlu2 %v1475_v57, %s3639_s26  ;;  %v8732_v57 = vmov 0 }
 0x51d   : > { %1565 = vrot.lane.b32.xlu1 %v1476_v20, %s3639_s26  ;;  %v8786_v20 = vld [vmem:[#allocation21_spill] sm:$0xff] }
 0x520   : > { %1573 = vrot.lane.b32.xlu0 %v1480_v32, %s3639_s26  ;;  %v8754_v32 = vmov 0 }
 0x524   : > { %1569 = vrot.lane.b32.xlu2 %v1478_v37, %s3639_s26 }
 0x525   : > { %1571 = vrot.lane.b32.xlu1 %v1479_v56, %s3639_s26  ;;  %v8742_v56 = vmov 0 }
 0x528   : > { %1840 = vrot.lane.b32.xlu0 %v5232_v9, %s3639_s26 }
 0x52c   : > { %1575 = vrot.lane.b32.xlu2 %v1481_v35, %s3639_s26  ;;  %v8746_v35 = vmov 0 }
 0x52d   : > { %1577 = vrot.lane.b32.xlu1 %v1482_v7, %s3639_s26 }
 0x530   : > { %1846 = vrot.lane.b32.xlu0 %v5249_v62, %s3639_s26  ;;  %v8761_v62 = vmov 0 }
 0x534   : > { %1836 = vrot.lane.b32.xlu2 %v5256_v16, %s3639_s26  ;;  %v8796_v16 = vmov 0 }
 0x535   : > { %1838 = vrot.lane.b32.xlu1 %v5264_v39, %s3639_s26  ;;  %v8781_v39 = vmov 0 }
 0x53c   : > { %1842 = vrot.lane.b32.xlu2 %v5273_v47, %s3639_s26  ;;  %v8775_v47 = vmov 0 }
 0x53d   : > { %1844 = vrot.lane.b32.xlu1 %v5278_v19, %s3639_s26  ;;  %v8773_v19 = vmov 0 }
 0x544   : > { %1848 = vrot.lane.b32.xlu2 %v5287_v1, %s3639_s26 }
 0x545   : > { %1850 = vrot.lane.b32.xlu1 %v5292_v10, %s3639_s26  ;;  %v8766_v10 = vmov 0 }
 0x566   : > { %v1504_v5 = vpop.permute.xlu2 %1503 }
 0x567   : > { %vm1517_vm14 = vcmp.ne.s32.totalorder %v1504_v5, 0 }
 0x568   : > { %vm5300_vm0 = vmor %vm4997_vm11, %vm1517_vm14 }
 0x569   : > { %v8730_v42 = vsel %vm5300_vm0, 4294967295, %v8729_v42  ;;  %vm1541_vm6 = vmxor %vm5300_vm0, %vm8731_vm4 }
 0x56a   : > { %vm5309_vm15 = vmand %vm1533_vm7, %vm1541_vm6  ;;  %vm1531_vm6 = vcmp.eq.f32.partialorder %v4269_v25, %v4549_v36 }
 0x56b   : > { %v8733_v57 = vsel %vm5309_vm15, 4294967295, %v8732_v57  ;;  %vm8352_vm11 = vmor %vm5300_vm0, %vm5309_vm15 }
 0x56c   : > { %vm5335_vm1 = vmxor %vm8352_vm11, %vm8731_vm4 }
 0x56e   : > { %v1510_v4 = vpop.permute.xlu2 %1509 }
 0x56f   : > { %vm1520_vm3 = vcmp.ne.s32.totalorder %v1510_v4, 0  ;;  %v8748_v4 = vmov 0 }
 0x570   : > { %vm5319_vm2 = vmor %vm5021_vm10, %vm1520_vm3  ;;  %vm1536_vm3 = vcmp.eq.f32.partialorder %v4289_v26, %v4565_v34 }
 0x571   : > { %v8735_v60 = vsel %vm5319_vm2, 4294967295, %v8734_v60  ;;  %vm1544_vm10 = vmxor %vm5319_vm2, %vm8731_vm4 }
 0x572   : > { %v1502_v3 = vpop.permute.xlu0 %1501  ;;  %vm5362_vm11 = vmand %vm1536_vm3, %vm1544_vm10 }
 0x573   : > { %vm1516_vm8 = vcmp.ne.s32.totalorder %v1502_v3, 0  ;;  %v8745_v52 = vsel %vm5362_vm11, 4294967295, %v8744_v52  ;;  %vm8359_vm10 = vmor %vm5319_vm2, %vm5362_vm11  ;;  %vm1612_vm11 = vcmp.eq.f32.partialorder %v4412_v11, %v4531_v22 }
 0x574   : > { %vm5325_vm13 = vmor %vm4973_vm12, %vm1516_vm8 }
 0x575   : > { %vm1540_vm12 = vmxor %vm5325_vm13, %vm8731_vm4 }
 0x576   : > { %v1500_v61 = vpop.permute.xlu1 %1499  ;;  %v1564_v5 = vpop.permute.xlu2 %1563 }
 0x577   : > { %vm1515_vm5 = vcmp.ne.s32.totalorder %v1500_v61, 0  ;;  %v8751_v61 = vmov 0 }
 0x578   : > { %vm5347_vm14 = vmor %vm5033_vm9, %vm1515_vm5  ;;  %vm1532_vm9 = vcmp.eq.f32.partialorder %v4279_v0, %v4531_v22 }
 0x579   : > { %vm1539_vm7 = vmxor %vm5347_vm14, %vm8731_vm4 }
 0x57a   : > { %v1508_v51 = vpop.permute.xlu0 %1507  ;;  %vm5358_vm8 = vmand %vm1531_vm6, %vm1539_vm7 }
 0x57b   : > { %v8743_v56 = vsel %vm5358_vm8, 4294967295, %v8742_v56  ;;  %vm5368_vm5 = vmand %vm1532_vm9, %vm1540_vm12  ;;  %vm1613_vm12 = vcmp.eq.f32.partialorder %v4417_v40, %v4538_v31  ;;  %vm1519_vm6 = vcmp.ne.s32.totalorder %v1508_v51, 0  ;;  %v8756_v51 = vmov 0 }
 0x57c   : > { %v8747_v35 = vsel %vm5368_vm5, 4294967295, %v8746_v35  ;;  %vm8355_vm15 = vmor %vm5347_vm14, %vm5358_vm8 }
 0x57d   : > { %vm1619_vm7 = vmxor %vm8355_vm15, %vm8731_vm4 }
 0x57e   : > { %vm5394_vm3 = vmand %vm1613_vm12, %vm5335_vm1  ;;  %vm1611_vm1 = vcmp.eq.f32.partialorder %v4402_v17, %v4549_v36  ;;  %v1570_v9 = vpop.permute.xlu2 %1569 }
 0x57f   : > { %v1506_v23 = vpop.permute.xlu1 %1505  ;;  %v8749_v4 = vsel %vm5394_vm3, 4294967295, %v8748_v4  ;;  %vm1624_vm9 = vmxor %vm8359_vm10, %vm8731_vm4  ;;  %vm8753_vm10 = vnez %v8678_v15  ;;  %v8788_v15 = vmov 0 }
 0x580   : > { %vm8750_vm15 = vmor %vm5325_vm13, %vm5368_vm5 }
 0x581   : > { %vm1620_vm0 = vmxor %vm8750_vm15, %vm8731_vm4  ;;  %vm1518_vm15 = vcmp.ne.s32.totalorder %v1506_v23, 0  ;;  %v8807_v23 = vmov 0 }
 0x582   : > { %v1514_v3 = vpop.permute.xlu0 %1513  ;;  %vm5412_vm12 = vmand %vm1611_vm1, %vm1619_vm7  ;;  %vm1616_vm7 = vcmp.eq.f32.partialorder %v4422_v24, %v4565_v34  ;;  %v8851_v24 = vld [vmem:[#allocation30_spill] sm:$0xff] }
 0x583   : > { %v8752_v61 = vsel %vm5412_vm12, 4294967295, %v8751_v61  ;;  %vm5420_vm2 = vmor %vm8753_vm10, %vm1519_vm6 }
 0x584   : > { %v8755_v32 = vsel %vm5420_vm2, 4294967295, %v8754_v32  ;;  %vm5424_vm3 = vmand %vm1612_vm11, %vm1620_vm0  ;;  %vm8763_vm11 = vnez %v8692_v13  ;;  %v8768_v13 = vld [vmem:[#allocation16_spill] sm:$0xff] }
 0x585   : > { %v8757_v51 = vsel %vm5424_vm3, 4294967295, %v8756_v51  ;;  %vm8758_vm1 = vmor %vm5347_vm14, %vm5358_vm8  ;;  %vm1534_vm14 = vcmp.eq.f32.partialorder %v4274_v33, %v4575_v21  ;;  %vm8771_vm8 = vnez %v8733_v57 }
 0x586   : > { %vm5437_vm5 = vmor %vm8758_vm1, %vm5412_vm12  ;;  %vm8770_vm12 = vnez %v8730_v42  ;;  %vm8777_vm1 = vnez %v8747_v35  ;;  %v8779_v42 = vmov 0  ;;  %v5557_v48 = vpop.permute.xlu2 %1575 }
 0x587   : > { %v1512_v7 = vpop.permute.xlu1 %1511  ;;  %vm5441_vm10 = vmand %vm1616_vm7, %vm1624_vm9 }
 0x588   : > { %v8762_v62 = vsel %vm5441_vm10, 4294967295, %v8761_v62  ;;  %vm1543_vm0 = vmxor %vm5420_vm2, %vm8731_vm4 }
 0x589   : > { %vm5450_vm6 = vmor %vm8763_vm11, %vm1518_vm15  ;;  %vm1535_vm15 = vcmp.eq.f32.partialorder %v8768_v13, %v4559_v29  ;;  %vm8769_vm11 = vnez %v8749_v4  ;;  %v8843_v13 = vld [vmem:[#allocation12_spill] sm:$0xff] }
 0x58a   : > { %vm1542_vm9 = vmxor %vm5450_vm6, %vm8731_vm4  ;;  %v1568_v1 = vpop.permute.xlu0 %1567 }
 0x58b   : > { %vm5461_vm7 = vmand %vm1534_vm14, %vm1542_vm9 }
 0x58c   : > { %v8767_v10 = vsel %vm5461_vm7, 4294967295, %v8766_v10  ;;  %vm8772_vm14 = vmor %vm8770_vm12, %vm8771_vm8 }
 0x58d   : > { %vm5478_vm9 = vmor %vm8772_vm14, %vm8769_vm11 }
 0x58e   : > { %v8774_v19 = vsel %vm5478_vm9, 4294967295, %v8773_v19  ;;  %vm5482_vm10 = vmand %vm1535_vm15, %vm1543_vm0  ;;  %vm1522_vm0 = vcmp.ne.s32.totalorder %v1514_v3, 0  ;;  %vm8783_vm15 = vnez %v8767_v10  ;;  %v8790_v3 = vmov 0 }
 0x58f   : > { %v5454_v37 = vpop.permute.xlu1 %1565  ;;  %v8776_v47 = vsel %vm5482_vm10, 4294967295, %v8775_v47  ;;  %vm8778_vm2 = vmor %vm5325_vm13, %vm8777_vm1  ;;  %v1590_v11 = vsel %vm8783_vm15, %v8843_v13, %v1570_v9  ;;  %v8852_v13 = vmov 0 }
 0x590   : > { %vm5493_vm7 = vmor %vm8778_vm2, %vm5424_vm3  ;;  %vm8785_vm2 = vnez %v8755_v32  ;;  %vm1614_vm3 = vcmp.eq.f32.partialorder %v8786_v20, %v4575_v21  ;;  %v8836_v32 = vld [vmem:[#allocation26_spill] sm:$0xff] }
 0x591   : > { %v8780_v42 = vsel %vm5493_vm7, 4294967295, %v8779_v42  ;;  %vm5500_vm12 = vmxor %vm5437_vm5, %vm8731_vm4  ;;  %vm8787_vm5 = vnez %v8683_v55  ;;  %vm8794_vm7 = vnez %v8745_v52 }
 0x592   : > { %v8782_v39 = vsel %vm5500_vm12, 4294967295, %v8781_v39  ;;  %vm8784_vm14 = vmor %vm5450_vm6, %vm8783_vm15  ;;  %vm8793_vm12 = vnez %v8735_v60  ;;  %v8799_v60 = vld [vmem:[#allocation27_spill] sm:$0xff]  ;;  %v1574_v49 = vpop.permute.xlu0 %1573 }
 0x593   : > { %vm1622_vm11 = vmxor %vm8784_vm14, %vm8731_vm4  ;;  %vm8792_vm14 = vnez %v8762_v62 }
 0x594   : > { %vm5518_vm1 = vmor %vm8787_vm5, %vm1522_vm0 }
 0x595   : > { %v8789_v15 = vsel %vm5518_vm1, 4294967295, %v8788_v15  ;;  %vm5522_vm8 = vmand %vm1614_vm3, %vm1622_vm11 }
 0x596   : > { %v8791_v3 = vsel %vm5522_vm8, 4294967295, %v8790_v3  ;;  %vm8795_vm13 = vmor %vm8793_vm12, %vm8794_vm7  ;;  %vm1615_vm12 = vcmp.eq.f32.partialorder %v8799_v60, %v4559_v29  ;;  %v8839_v60 = vmov 0  ;;  %v1638_v9 = vsel %vm5522_vm8, %v8851_v24, %v1590_v11  ;;  %v8859_v11 = vld [vmem:[#allocation80_spill] sm:$0xff] }
 0x597   : > { %vm5533_vm9 = vmor %vm8795_vm13, %vm8792_vm14  ;;  %v5543_v55 = vpop.permute.xlu1 %1571  ;;  %vm1538_vm14 = vcmp.eq.f32.partialorder %v8803_v27, %v4581_v30 }
 0x598   : > { %v8797_v16 = vsel %vm5533_vm9, 4294967295, %v8796_v16  ;;  %vm8798_vm3 = vmor %vm8785_vm2, %vm5482_vm10  ;;  %vm1521_vm9 = vcmp.ne.s32.totalorder %v1512_v7, 0  ;;  %vm8806_vm10 = vnez %v8774_v19  ;;  %v8815_v19 = vmov 0  ;;  %v8817_v7 = vld [vmem:[#allocation29_spill] sm:$0xff] }
 0x599   : > { %vm1623_vm11 = vmxor %vm8798_vm3, %vm8731_vm4 }
 0x59a   : > { %vm1546_vm0 = vmxor %vm5518_vm1, %vm8731_vm4 }
 0x59b   : > { %vm8800_vm13 = vmor %vm5450_vm6, %vm8783_vm15 }
 0x59c   : > { %vm1654_vm5 = vmor %vm8800_vm13, %vm5522_vm8 }
 0x59d   : > { %vm5559_vm3 = vmand %vm1615_vm12, %vm1623_vm11  ;;  %vm8810_vm11 = vnez %v8743_v56 }
 0x59e   : > { %vm5565_vm7 = vmand %vm1538_vm14, %vm1546_vm0  ;;  %v1587_v18 = vsel %vm8810_vm11, %v8809_v54, %v1564_v5  ;;  %vm1659_vm14 = vcmp.eq.f32.partialorder %v8813_v38, %v4549_v36  ;;  %vm8814_vm0 = vnez %v8780_v42  ;;  %vm8819_vm11 = vnez %v8782_v39  ;;  %v8822_v42 = vld [vmem:[#allocation51_spill] sm:$0xff] }
 0x59f   : > { %v8805_v58 = vsel %vm5565_vm7, 4294967295, %v8804_v58  ;;  %vm5572_vm6 = vmxor %vm8806_vm10, %vm8731_vm4  ;;  %vm8818_vm10 = vnez %v8752_v61  ;;  %v8820_v5 = vmov 0  ;;  %vm8833_vm7 = vnez %v8797_v16 }
 0x5a0   : > { %v8808_v23 = vsel %vm5572_vm6, 4294967295, %v8807_v23  ;;  %vm5580_vm12 = vmxor %vm1654_vm5, %vm8731_vm4  ;;  %v1635_v27 = vsel %vm8818_vm10, %v8817_v7, %v1587_v18  ;;  %v8826_v18 = vld [vmem:[#allocation22_spill] sm:$0xff]  ;;  %vm8827_vm6 = vnez %v8776_v47  ;;  %v8834_v39 = vmov 0 }
 0x5a1   : > { %vm5589_vm13 = vmxor %vm8814_vm0, %vm8731_vm4  ;;  %vm8823_vm0 = vnez %v8695_v45  ;;  %v5639_v45 = vpop.permute.xlu1 %1577  ;;  %vm8873_vm8 = vnez %v8805_v58 }
 0x5a2   : > { %v8816_v19 = vsel %vm5589_vm13, 4294967295, %v8815_v19  ;;  %vm5598_vm5 = vmand %vm1659_vm14, %vm8819_vm11  ;;  %vm1537_vm11 = vcmp.eq.f32.partialorder %v8826_v18, %v4590_v8  ;;  %v1837_v18 = vpop.permute.xlu2 %1836 }
 0x5a3   : > { %v8821_v5 = vsel %vm5598_vm5, 4294967295, %v8820_v5  ;;  %v1683_v54 = vsel %vm5598_vm5, %v8822_v42, %v1635_v27  ;;  %vm5611_vm13 = vmor %vm8823_vm0, %vm1521_vm9  ;;  %v8837_v42 = vld [vmem:[#allocation18_spill] sm:$0xff] }
 0x5a4   : > { %1742 = vperm.xlu0 %3514, %v1683_v54   ;;  %vm1545_vm14 = vmxor %vm5611_vm13, %vm8731_vm4  ;;  %v8831_v54 = vmov 0  ;;  %v8888_v27 = vld [vmem:[#allocation34_spill] sm:$0xff] }
 0x5a5   : > { %vm8828_vm5 = vmor %vm8785_vm2, %vm8827_vm6  ;;  %vm1617_vm2 = vcmp.eq.f32.partialorder %v8836_v32, %v4590_v8  ;;  %v1841_v32 = vpop.permute.xlu0 %1840 }
 0x5a6   : > { %vm5627_vm10 = vmor %vm8828_vm5, %vm5559_vm3 }
 0x5a7   : > { %vm5631_vm9 = vmand %vm1537_vm11, %vm1545_vm14  ;;  %vm8838_vm11 = vnez %v8733_v57 }
 0x5a8   : > { %v8832_v54 = vsel %vm5631_vm9, 4294967295, %v8831_v54  ;;  %vm1609_vm0 = vmor %vm5611_vm13, %vm5631_vm9  ;;  %v1589_v7 = vsel %vm8838_vm11, %v8837_v42, %v1568_v1  ;;  %v8846_v42 = vld [vmem:[#allocation32_spill] sm:$0xff] }
 0x5a9   : > { %vm5644_vm1 = vmxor %vm8833_vm7, %vm8731_vm4  ;;  %vm8842_vm7 = vnez %v8747_v35 }
 0x5aa   : > { %v8835_v39 = vsel %vm5644_vm1, 4294967295, %v8834_v39  ;;  %vm1625_vm5 = vmxor %vm1609_vm0, %vm8731_vm4  ;;  %v1588_v16 = vsel %vm8842_vm7, %v8841_v50, %v5454_v37  ;;  %v8848_v37 = vld [vmem:[#allocation38_spill] sm:$0xff]  ;;  %vm8856_vm7 = vnez %v8757_v51 }
 0x5ab   : > { %vm5654_vm14 = vmand %vm1617_vm2, %vm1625_vm5  ;;  %vm8847_vm2 = vnez %v8749_v4  ;;  %vm1662_vm5 = vcmp.eq.f32.partialorder %v8848_v37, %v4575_v21 }
 0x5ac   : > { %v8840_v60 = vsel %vm5654_vm14, 4294967295, %v8839_v60  ;;  %vm1657_vm13 = vmor %vm1609_vm0, %vm5654_vm14  ;;  %v1637_v20 = vsel %vm8847_vm2, %v8846_v42, %v1589_v7  ;;  %vm8849_vm0 = vcmp.eq.f32.partialorder %v4206_v6, %v4538_v31  ;;  %v8854_v7 = vld [vmem:[#allocation40_spill] sm:$0xff]  ;;  %v8855_v42 = vld [vmem:[#allocation31_spill] sm:$0xff] }
 0x5ad   : > { %vm5668_vm1 = vmxor %vm1657_vm13, %vm8731_vm4  ;;  %v5681_v50 = vsel %vm8849_vm0, -1e+30, %v5135_v59  ;;  %vm1661_vm15 = vcmp.eq.f32.partialorder %v8854_v7, %v4538_v31  ;;  %v1636_v37 = vsel %vm8856_vm7, %v8855_v42, %v1588_v16  ;;  %vm8857_vm0 = vcmp.eq.f32.partialorder %v4224_v63, %v4549_v36  ;;  %v8860_v59 = vld [vmem:[#allocation54_spill] sm:$0xff]  ;;  %v8864_v16 = vld [vmem:[#allocation39_spill] sm:$0xff] }
 0x5ae   : > { %8850 = vst [vmem:[#allocation37_spill] sm:$0xff] %v5681_v50  ;;  %vm5688_vm13 = vmand %vm1662_vm5, %vm5580_vm12  ;;  %v5701_v6 = vsel %vm8857_vm0, -1e+30, %v5109_v14  ;;  %v1822_v2 = vmax.f32 %v5681_v50, %v8859_v11  ;;  %vm8861_vm12 = vnez %v8808_v23  ;;  %vm1660_vm7 = vcmp.eq.f32.partialorder %v8864_v16, %v4531_v22  ;;  %v8865_v42 = vld [vmem:[#allocation77_spill] sm:$0xff]  ;;  %v8867_v11 = vld [vmem:[#allocation24_spill] sm:$0xff] }
 0x5af   : > { %v8853_v13 = vsel %vm5688_vm13, 4294967295, %v8852_v13  ;;  %8858 = vst [vmem:[#allocation40_spill] sm:$0xff] %v5701_v6  ;;  %v1686_v24 = vsel %vm5688_vm13, %v8860_v59, %v1638_v9  ;;  %vm5710_vm5 = vmand %vm1661_vm15, %vm8861_vm12  ;;  %v1820_v63 = vmax.f32 %v5701_v6, %v8865_v42  ;;  %v8866_v36 = vld [vmem:[#allocation57_spill] sm:$0xff]  ;;  %vm8868_vm0 = vnez %v8745_v52  ;;  %v8913_v50 = vld [vmem:[#allocation79_spill] sm:$0xff] }
 0x5b0   : > { %1757 = vperm.xlu0 %3514, %v1686_v24   ;;  %v1685_v14 = vsel %vm5710_vm5, %v8866_v36, %v1637_v20  ;;  %v1592_v9 = vsel %vm8868_vm0, %v8867_v11, %v1574_v49  ;;  %vm8869_vm15 = vnez %v8816_v19  ;;  %vm8872_vm13 = vnez %v8789_v15  ;;  %v8875_v24 = vld [vmem:[#allocation56_spill] sm:$0xff]  ;;  %v8876_v49 = vld [vmem:[#allocation41_spill] sm:$0xff] }
 0x5b1   : > { %vm5726_vm12 = vmand %vm1660_vm7, %vm8869_vm15  ;;  %1752 = vperm.xlu1 %3516, %v1685_v14   ;;  %vm1665_vm0 = vcmp.eq.f32.partialorder %v8876_v49, %v4590_v8  ;;  %v8877_v19 = vld [vmem:[#allocation5_spill] sm:$0xff]  ;;  %v1862_v59 = vmax.f32 %v1822_v2, %v1841_v32  ;;  %v1860_v11 = vmax.f32 %v1820_v63, %v1837_v18  ;;  %v8882_v14 = vld [vmem:[#allocation28_spill] sm:$0xff]  ;;  %v1839_v2 = vpop.permute.xlu1 %1838 }
 0x5b2   : > { %vm8874_vm2 = vmor %vm8872_vm13, %vm8873_vm8  ;;  %v1684_v20 = vsel %vm5726_vm12, %v8875_v24, %v1636_v37  ;;  %v1591_v42 = vsel %vm8827_vm6, %v8877_v19, %v5543_v55  ;;  %vm1618_vm15 = vcmp.eq.f32.partialorder %v8882_v14, %v4581_v30  ;;  %v8883_v55 = vld [vmem:[#allocation11_spill] sm:$0xff]  ;;  %v8884_v32 = vld [vmem:[#allocation33_spill] sm:$0xff] }
 0x5b3   : > { %vm1626_vm11 = vmxor %vm8874_vm2, %vm8731_vm4  ;;  %1747 = vperm.xlu2 %3515, %v1684_v20   ;;  %v1593_v18 = vsel %vm5631_vm9, %v8883_v55, %v5557_v48  ;;  %v8889_v19 = vld [vmem:[#allocation42_spill] sm:$0xff]  ;;  %v8890_v24 = vld [vmem:[#allocation35_spill] sm:$0xff]  ;;  %vm8891_vm9 = vnez %v8733_v57 }
 0x5b4   : > { %vm5747_vm7 = vmand %vm1665_vm0, %vm5668_vm1  ;;  %vm8885_vm1 = vnez %v8762_v62  ;;  %v1641_v20 = vsel %vm5654_vm14, %v8888_v27, %v1593_v18  ;;  %v1639_v48 = vsel %vm5559_vm3, %v8890_v24, %v1591_v42  ;;  %v1843_v42 = vpop.permute.xlu2 %1842  ;;  %v8911_v37 = vld [vmem:[#allocation58_spill] sm:$0xff] }
 0x5b5   : > { %vm5754_vm2 = vmxor %vm5627_vm10, %vm8731_vm4  ;;  %v1640_v1 = vsel %vm8885_vm1, %v8884_v32, %v1592_v9  ;;  %vm1664_vm10 = vcmp.eq.f32.partialorder %v8889_v19, %v4565_v34  ;;  %v5782_v9 = vsel %vm8891_vm9, -1e+30, %v4284_v43  ;;  %v8895_v32 = vld [vmem:[#allocation55_spill] sm:$0xff] }
 0x5b6   : > { %vm5767_vm0 = vmand %vm1618_vm15, %vm1626_vm11  ;;  %8892 = vst [vmem:[#allocation80_spill] sm:$0xff] %v5782_v9  ;;  %vm8893_vm11 = vnez %v8743_v56  ;;  %v1689_v18 = vsel %vm5747_vm7, %v8895_v32, %v1641_v20  ;;  %vm8896_vm15 = vnez %v8835_v39  ;;  %v1870_v57 = vmax.f32 %v1862_v59, %v5782_v9  ;;  %v8899_v43 = vld [vmem:[#allocation43_spill] sm:$0xff]  ;;  %v8900_v56 = vld [vmem:[#allocation17_spill] sm:$0xff]  ;;  %v1847_v59 = vpop.permute.xlu0 %1846 }
 0x5b7   : > { %v5787_v55 = vsel %vm8893_vm11, -1e+30, %v4269_v25  ;;  %vm5794_vm14 = vmand %vm1664_vm10, %vm8896_vm15  ;;  %vm1663_vm9 = vcmp.eq.f32.partialorder %v8899_v43, %v4559_v29  ;;  %vm8901_vm11 = vcmp.eq.f32.partialorder %v8900_v56, %v4565_v34  ;;  %v8903_v32 = vld [vmem:[#allocation59_spill] sm:$0xff]  ;;  %v8909_v56 = vld [vmem:[#allocation14_spill] sm:$0xff]  ;;  %v6037_v58 = vsel %vm5767_vm0, -1e+30, %v8882_v14 }
 0x5b8   : > { %8894 = vst [vmem:[#allocation39_spill] sm:$0xff] %v5787_v55  ;;  %v5805_v25 = vsel %vm8901_vm11, -1e+30, %v5174_v28  ;;  %v1868_v20 = vmax.f32 %v1860_v11, %v5787_v55  ;;  %v1688_v39 = vsel %vm5794_vm14, %v8903_v32, %v1640_v1  ;;  %vm5813_vm10 = vmand %vm1663_vm9, %vm5754_vm2  ;;  %v8906_v9 = vld [vmem:[#allocation23_spill] sm:$0xff]  ;;  %vm8910_vm11 = vcmp.eq.f32.partialorder %v8909_v56, %v4531_v22  ;;  %v8912_v55 = vld [vmem:[#allocation78_spill] sm:$0xff]  ;;  %1772 = vperm.xlu0 %3514, %v1689_v18  }
 0x5b9   : > { %8902 = vst [vmem:[#allocation77_spill] sm:$0xff] %v5805_v25  ;;  %vm8907_vm15 = vcmp.eq.f32.partialorder %v8906_v9, %v4575_v21  ;;  %v8908_v28 = vld [vmem:[#allocation83_spill] sm:$0xff]  ;;  %v5829_v1 = vsel %vm8910_vm11, -1e+30, %v5259_v41  ;;  %v1687_v32 = vsel %vm5813_vm10, %v8911_v37, %v1639_v48  ;;  %vm8914_vm2 = vmor %vm8872_vm13, %vm8873_vm8  ;;  %vm8916_vm11 = vnez %v8752_v61  ;;  %1767 = vperm.xlu1 %3516, %v1688_v39   ;;  %v8921_v61 = vld [vmem:[#allocation36_spill] sm:$0xff] }
 0x5ba   : > { %v5821_v34 = vsel %vm8907_vm15, -1e+30, %v5140_v53  ;;  %v1825_v11 = vmax.f32 %v5805_v25, %v8908_v28  ;;  %v1821_v21 = vmax.f32 %v5829_v1, %v8913_v50  ;;  %vm1658_vm9 = vmor %vm8914_vm2, %vm5767_vm0  ;;  %vm8915_vm15 = vnez %v8749_v4  ;;  %v8918_v41 = vld [vmem:[#allocation15_spill] sm:$0xff]  ;;  %v8919_v4 = vld [vmem:[#allocation44_spill] sm:$0xff] }
 0x5bb   : > { %v1823_v6 = vmax.f32 %v5821_v34, %v8912_v55  ;;  %v5848_v22 = vsel %vm8915_vm15, -1e+30, %v4417_v40  ;;  %v5853_v53 = vsel %vm8916_vm11, -1e+30, %v4402_v17  ;;  %v1594_v15 = vsel %vm8873_vm8, %v8918_v41, %v5639_v45  ;;  %1762 = vperm.xlu2 %3515, %v1687_v32   ;;  %vm1674_vm13 = vmxor %vm1658_vm9, %vm8731_vm4  ;;  %v8934_v18 = vld [vmem:[#allocation13_spill] sm:$0xff]  ;;  %v8973_v14 = vld [vmem:[#allocation46_spill] sm:$0xff] }
 0x5bc   : > { %8917 = vst [vmem:[#allocation41_spill] sm:$0xff] %v5853_v53  ;;  %v1878_v50 = vmax.f32 %v1870_v57, %v5848_v22  ;;  %v1865_v55 = vmax.f32 %v1825_v11, %v1847_v59  ;;  %v1876_v48 = vmax.f32 %v1868_v20, %v5853_v53  ;;  %v1861_v40 = vmax.f32 %v1821_v21, %v1839_v2  ;;  %v1849_v57 = vpop.permute.xlu2 %1848  ;;  %v8936_v20 = vld [vmem:[#allocation60_spill] sm:$0xff]  ;;  %v8937_v59 = vld [vmem:[#allocation81_spill] sm:$0xff]  ;;  %v8938_v11 = vld [vmem:[#allocation82_spill] sm:$0xff] }
 0x5bd   : > { %v1863_v9 = vmax.f32 %v1823_v6, %v1843_v42  ;;  %vm1666_vm2 = vcmp.eq.f32.partialorder %v8919_v4, %v4581_v30  ;;  %v5867_v17 = vsel %vm5710_vm5, -1e+30, %v8854_v7  ;;  %v1642_v45 = vsel %vm5767_vm0, %v8921_v61, %v1594_v15 }
 0x5be   : > { %8920 = vst [vmem:[#allocation28_spill] sm:$0xff] %v5867_v17  ;;  %vm8922_vm15 = vnez %v8745_v52  ;;  %vm8924_vm9 = vnez %v8747_v35  ;;  %vm8925_vm11 = vnez %v8821_v5  ;;  %vm8927_vm5 = vnez %v8767_v10  ;;  %v1845_v52 = vpop.permute.xlu1 %1844 }
 0x5bf   : > { %v5875_v6 = vsel %vm8922_vm15, -1e+30, %v4289_v26  ;;  %v5880_v32 = vsel %vm8924_vm9, -1e+30, %v4279_v0  ;;  %v5885_v31 = vsel %vm8925_vm11, -1e+30, %v8813_v38  ;;  %v5893_v2 = vmax.f32 %v1878_v50, %v5867_v17  ;;  %vm5900_vm15 = vmand %vm1666_vm2, %vm1674_vm13 }
 0x5c0   : > { %8923 = vst [vmem:[#allocation42_spill] sm:$0xff] %v5875_v6  ;;  %v5890_v7 = vsel %vm8927_vm5, -1e+30, %v4274_v33  ;;  %v1873_v26 = vmax.f32 %v1865_v55, %v5875_v6  ;;  %v5897_v35 = vmax.f32 %v1876_v48, %v5885_v31  ;;  %v1869_v38 = vmax.f32 %v1861_v40, %v5880_v32  ;;  %v8931_v33 = vld [vmem:[#allocation25_spill] sm:$0xff]  ;;  %v8944_v50 = vld [vmem:[#allocation6_spill] sm:$0xff]  ;;  %v8947_v40 = vld [vmem:[#allocation16_spill] sm:$0xff] }
 0x5c1   : > { %8926 = vst [vmem:[#allocation43_spill] sm:$0xff] %v5885_v31  ;;  %v1871_v0 = vmax.f32 %v1863_v9, %v5890_v7  ;;  %vm8932_vm9 = vcmp.eq.f32.partialorder %v8931_v33, %v4590_v8  ;;  %vm8935_vm11 = vcmp.eq.f32.partialorder %v8934_v18, %v4559_v29  ;;  %v1690_v39 = vsel %vm5900_vm15, %v8936_v20, %v1642_v45  ;;  %v8939_v8 = vld [vmem:[#allocation9_spill] sm:$0xff]  ;;  %v8957_v33 = vld [vmem:[#allocation8_spill] sm:$0xff] }
 0x5c2   : > { %8928 = vst [vmem:[#allocation17_spill] sm:$0xff] %v5890_v7  ;;  %v5909_v10 = vsel %vm8932_vm9, -1e+30, %v5179_v46  ;;  %v5915_v42 = vsel %vm8935_vm11, -1e+30, %v5122_v12  ;;  %1924 = vrot.lane.b32.xlu0 %v5897_v35, %s3640_s27  ;;  %v8941_v12 = vld [vmem:[#allocation21_spill] sm:$0xff]  ;;  %vm8942_vm13 = vnez %v8791_v3  ;;  %1928 = vrot.lane.b32.xlu1 %v5893_v2, %s3640_s27  ;;  %vm8945_vm2 = vnez %v8757_v51 }
 0x5c3   : > { %8933 = vst [vmem:[#allocation23_spill] sm:$0xff] %v5909_v10  ;;  %v1826_v28 = vmax.f32 %v5909_v10, %v8937_v59  ;;  %v1824_v56 = vmax.f32 %v5915_v42, %v8938_v11  ;;  %v5929_v29 = vsel %vm8885_vm1, -1e+30, %v8939_v8  ;;  %v5934_v46 = vsel %vm8942_vm13, -1e+30, %v8941_v12  ;;  %1777 = vperm.xlu2 %3515, %v1690_v39   ;;  %v8949_v51 = vld [vmem:[#allocation38_spill] sm:$0xff] }
 0x5c4   : > { %8940 = vst [vmem:[#allocation83_spill] sm:$0xff] %v5929_v29  ;;  %v1881_v21 = vmax.f32 %v1873_v26, %v5929_v29  ;;  %v5942_v15 = vsel %vm8945_vm2, -1e+30, %v8944_v50  ;;  %v1879_v55 = vmax.f32 %v1871_v0, %v5934_v46  ;;  %v5949_v3 = vsel %vm5794_vm14, -1e+30, %v8889_v19  ;;  %v8961_v59 = vld [vmem:[#allocation26_spill] sm:$0xff] }
 0x5c5   : > { %8943 = vst [vmem:[#allocation14_spill] sm:$0xff] %v5934_v46  ;;  %v1866_v62 = vmax.f32 %v1826_v28, %v1849_v57  ;;  %v1877_v48 = vmax.f32 %v1869_v38, %v5942_v15  ;;  %v1864_v9 = vmax.f32 %v1824_v56, %v1845_v52  ;;  %v5954_v45 = vsel %vm8827_vm6, -1e+30, %v8947_v40  ;;  %v8953_v52 = vld [vmem:[#allocation22_spill] sm:$0xff]  ;;  %v8960_v57 = vld [vmem:[#allocation84_spill] sm:$0xff]  ;;  %v8964_v11 = vld [vmem:[#allocation27_spill] sm:$0xff] }
 0x5c6   : > { %8946 = vst [vmem:[#allocation78_spill] sm:$0xff] %v5949_v3  ;;  %vm8950_vm1 = vnez %v8853_v13  ;;  %v5964_v0 = vsel %vm5726_vm12, -1e+30, %v8864_v16  ;;  %vm8954_vm5 = vnez %v8832_v54  ;;  %v5972_v27 = vmax.f32 %v1881_v21, %v5949_v3  ;;  %v8956_v16 = vld [vmem:[#allocation85_spill] sm:$0xff]  ;;  %v1851_v18 = vpop.permute.xlu1 %1850  ;;  %v8977_v40 = vld [vmem:[#allocation47_spill] sm:$0xff]  ;;  %v9004_v29 = vld [vmem:[#allocation74_spill] sm:$0xff] }
 0x5c7   : > { %8948 = vst [vmem:[#allocation79_spill] sm:$0xff] %v5954_v45  ;;  %v5959_v26 = vsel %vm8950_vm1, -1e+30, %v8949_v51  ;;  %v5969_v19 = vsel %vm8954_vm5, -1e+30, %v8953_v52  ;;  %v5979_v38 = vmax.f32 %v1877_v48, %v5964_v0  ;;  %v1872_v23 = vmax.f32 %v1864_v9, %v5954_v45  ;;  %v8975_v48 = vld [vmem:[#allocation37_spill] sm:$0xff] }
 0x5c8   : > { %8951 = vst [vmem:[#allocation44_spill] sm:$0xff] %v5959_v26  ;;  %v5975_v47 = vmax.f32 %v1879_v55, %v5959_v26  ;;  %v1874_v13 = vmax.f32 %v1866_v62, %v5969_v19  ;;  %vm8958_vm6 = vcmp.eq.f32.partialorder %v8957_v33, %v4581_v30  ;;  %vm8962_vm14 = vnez %v8840_v60  ;;  %v8976_v9 = vld [vmem:[#allocation40_spill] sm:$0xff]  ;;  %v8978_v52 = vld [vmem:[#allocation53_spill] sm:$0xff] }
 0x5c9   : > { %8952 = vst [vmem:[#allocation25_spill] sm:$0xff] %v5964_v0  ;;  %v5986_v54 = vsel %vm8958_vm6, -1e+30, %v8956_v16  ;;  %v5995_v28 = vsel %vm8962_vm14, -1e+30, %v8961_v59  ;;  %vm8474_vm12 = vcmp.eq.f32.partialorder %v8975_v48, %v5893_v2  ;;  %vm8472_vm0 = vcmp.eq.f32.partialorder %v8976_v9, %v5897_v35  ;;  %v9003_v45 = vld [vmem:[#allocation69_spill] sm:$0xff] }
 0x5ca   : > { %8955 = vst [vmem:[#allocation13_spill] sm:$0xff] %v5969_v19  ;;  %v1827_v39 = vmax.f32 %v5986_v54, %v8960_v57  ;;  %1930 = vrot.lane.b32.xlu0 %v5975_v47, %s3640_s27  ;;  %1934 = vrot.lane.b32.xlu1 %v5972_v27, %s3640_s27  ;;  %v6002_v30 = vsel %vm5559_vm3, -1e+30, %v8964_v11  ;;  %v1882_v56 = vmax.f32 %v1874_v13, %v5995_v28  ;;  %v6011_v60 = vsel %vm5747_vm7, -1e+30, %v8876_v49  ;;  %v8983_v11 = vld [vmem:[#allocation48_spill] sm:$0xff]  ;;  %vm1958_vm6 = vmxor %vm8474_vm12, %vm8731_vm4 }
 0x5cb   : > { %8959 = vst [vmem:[#allocation81_spill] sm:$0xff] %v5986_v54  ;;  %v1880_v8 = vmax.f32 %v1872_v23, %v6002_v30  ;;  %1926 = vrot.lane.b32.xlu2 %v5979_v38, %s3640_s27  ;;  %v6016_v21 = vsel %vm5813_vm10, -1e+30, %v8899_v43  ;;  %v6021_v50 = vsel %vm8873_vm8, -1e+30, %v8968_v44  ;;  %vm8488_vm8 = vcmp.eq.f32.partialorder %v5829_v1, %v5979_v38  ;;  %v8979_v23 = vld [vmem:[#allocation45_spill] sm:$0xff] }
 0x5cc   : > { %8963 = vst [vmem:[#allocation82_spill] sm:$0xff] %v5995_v28  ;;  %v1867_v12 = vmax.f32 %v1827_v39, %v1851_v18  ;;  %v6024_v55 = vmax.f32 %v1882_v56, %v6011_v60  ;;  %v6045_v49 = vsel %vm5900_vm15, -1e+30, %v8919_v4  ;;  %v1901_v63 = vsel %vm8488_vm8, %v8973_v14, -1.0  ;;  %v8974_v4 = vld [vmem:[#allocation49_spill] sm:$0xff]  ;;  %vm1956_vm15 = vmxor %vm8472_vm0, %vm8731_vm4  ;;  %v8981_v18 = vld [vmem:[#allocation50_spill] sm:$0xff] }
 0x5cd   : > { %8965 = vst [vmem:[#allocation9_spill] sm:$0xff] %v6002_v30  ;;  %v6027_v62 = vmax.f32 %v1880_v8, %v6016_v21  ;;  %v1902_v51 = vsel %vm8474_vm12, %v8977_v40, -1.0  ;;  %v1900_v16 = vsel %vm8472_vm0, %v8979_v23, -1.0  ;;  %vm8471_vm10 = vcmp.eq.f32.partialorder %v5805_v25, %v5972_v27  ;;  %vm1957_vm11 = vmxor %vm8488_vm8, %vm8731_vm4  ;;  %v9000_v30 = vld [vmem:[#allocation72_spill] sm:$0xff] }
 0x5ce   : > { %8966 = vst [vmem:[#allocation21_spill] sm:$0xff] %v6011_v60  ;;  %v1875_v36 = vmax.f32 %v1867_v12, %v6021_v50  ;;  %vm8464_vm9 = vcmp.eq.f32.partialorder %v5821_v34, %v5975_v47  ;;  %v1905_v57 = vsel %vm8471_vm10, %v8981_v18, -1.0  ;;  %v8982_v39 = vmov 0  }
 0x5cf   : > { %8967 = vst [vmem:[#allocation6_spill] sm:$0xff] %v6016_v21  ;;  %vm8485_vm3 = vcmp.eq.f32.partialorder %v5915_v42, %v6027_v62  ;;  %v1964_v59 = vsel %vm1956_vm15, 1, %v8982_v39  ;;  %v1903_v56 = vsel %vm8464_vm9, %v8983_v11, -1.0  ;;  %vm1959_vm13 = vmxor %vm8464_vm9, %vm8731_vm4  ;;  %vm8463_vm2 = vcmp.eq.f32.partialorder %v5909_v10, %v6024_v55 }
 0x5d0   : > { %8969 = vst [vmem:[#allocation16_spill] sm:$0xff] %v6021_v50  ;;  %v1883_v24 = vmax.f32 %v1875_v36, %v6037_v58  ;;  %v1904_v5 = vsel %vm8485_vm3, %v8974_v4, -1.0  ;;  %v1965_v12 = vsel %vm1957_vm11, 1, %v8982_v39  ;;  %v1967_v44 = vsel %vm1959_vm13, 1, %v8982_v39  ;;  %vm1960_vm1 = vmxor %vm8485_vm3, %vm8731_vm4 }
 0x5d1   : > { %8970 = vst [vmem:[#allocation38_spill] sm:$0xff] %v6024_v55  ;;  %vm1962_vm5 = vmxor %vm8463_vm2, %vm8731_vm4  ;;  %v9103_v31 = vmov 0 }
 0x5d2   : > { %1936 = vrot.lane.b32.xlu0 %v6024_v55, %s3640_s27  ;;  %2092 = vrot.lane.b32.xlu1 %v5897_v35, %s3641_s28  ;;  %8971 = vst [vmem:[#allocation22_spill] sm:$0xff] %v6037_v58  ;;  %v6048_v43 = vmax.f32 %v1883_v24, %v6045_v49  ;;  %v8986_v24 = vld [vmem:[#allocation52_spill] sm:$0xff]  ;;  %vm1961_vm15 = vmxor %vm8471_vm10, %vm8731_vm4 }
 0x5d3   : > { %1932 = vrot.lane.b32.xlu2 %v6027_v62, %s3640_s27  ;;  %8972 = vst [vmem:[#allocation85_spill] sm:$0xff] %v6045_v49 }
 0x5d4   : > { %vm8473_vm7 = vcmp.eq.f32.partialorder %v5986_v54, %v6048_v43 }
 0x5d5   : > { %v1907_v13 = vsel %vm8473_vm7, %v8978_v52, -1.0  ;;  %vm1963_vm14 = vmxor %vm8473_vm7, %vm8731_vm4 }
 0x5da   : > { %2094 = vrot.lane.b32.xlu0 %v5979_v38, %s3641_s28  ;;  %2098 = vrot.lane.b32.xlu1 %v5975_v47, %s3641_s28 }
 0x5db   : > { %1938 = vrot.lane.b32.xlu2 %v6048_v43, %s3640_s27 }
 0x5e2   : > { %2100 = vrot.lane.b32.xlu0 %v6027_v62, %s3641_s28  ;;  %2104 = vrot.lane.b32.xlu1 %v6024_v55, %s3641_s28 }
 0x5e3   : > { %2096 = vrot.lane.b32.xlu2 %v5893_v2, %s3641_s28 }
 0x5ea   : > { %2106 = vrot.lane.b32.xlu0 %v6048_v43, %s3641_s28  ;;  %2438 = vperm.xlu1 %3516, %v5893_v2  }
 0x5eb   : > { %2102 = vrot.lane.b32.xlu2 %v5972_v27, %s3641_s28 }
 0x5f2   : > { %2430 = vperm.xlu0 %3514, %v5897_v35   ;;  %2450 = vperm.xlu1 %3516, %v5972_v27  }
 0x5f3   : > { %2434 = vperm.xlu2 %3515, %v5979_v38  }
 0x5fa   : > { %2442 = vperm.xlu0 %3514, %v5975_v47   ;;  %2014 = vrot.lane.b32.xlu1 %v1901_v63, %s3640_s27  ;;  %v1906_v63 = vsel %vm8463_vm2, %v8986_v24, -1.0 }
 0x5fb   : > { %2446 = vperm.xlu2 %3515, %v6027_v62  }
 0x602   : > { %2454 = vperm.xlu0 %3514, %v6024_v55   ;;  %2020 = vrot.lane.b32.xlu1 %v1904_v5, %s3640_s27 }
 0x603   : > { %2458 = vperm.xlu2 %3515, %v6048_v43  }
 0x60a   : > { %2016 = vrot.lane.b32.xlu0 %v1902_v51, %s3640_s27  ;;  %2026 = vrot.lane.b32.xlu1 %v1907_v13, %s3640_s27  ;;  %v1968_v51 = vsel %vm1960_vm1, 1, %v8982_v39  ;;  %v1970_v13 = vsel %vm1962_vm5, 1, %v8982_v39 }
 0x60b   : > { %2012 = vrot.lane.b32.xlu2 %v1900_v16, %s3640_s27  ;;  %v1966_v16 = vsel %vm1958_vm6, 1, %v8982_v39 }
 0x60d   : > { %v6111_v33 = vpop.permute.xlu2 %1747 }
 0x60e   : > { %8980 = vst [vmem:[#allocation8_spill] sm:$0xff] %v6111_v33 }
 0x612   : > { %2022 = vrot.lane.b32.xlu0 %v1905_v57, %s3640_s27  ;;  %1972 = vrot.lane.b32.xlu1 %v1964_v59, %s3640_s27 }
 0x613   : > { %2018 = vrot.lane.b32.xlu2 %v1903_v56, %s3640_s27 }
 0x615   : > { %v6135_v8 = vpop.permute.xlu2 %1762 }
 0x616   : > { %8984 = vst [vmem:[#allocation84_spill] sm:$0xff] %v6135_v8  ;;  %v6146_v36 = vpop.permute.xlu0 %1742 }
 0x617   : > { %8985 = vst [vmem:[#allocation26_spill] sm:$0xff] %v6146_v36 }
 0x61a   : > { %1974 = vrot.lane.b32.xlu0 %v1965_v12, %s3640_s27  ;;  %1978 = vrot.lane.b32.xlu1 %v1967_v44, %s3640_s27  ;;  %v1971_v12 = vsel %vm1963_vm14, 1, %v8982_v39  ;;  %v1969_v44 = vsel %vm1961_vm15, 1, %v8982_v39 }
 0x61b   : > { %2024 = vrot.lane.b32.xlu2 %v1906_v63, %s3640_s27 }
 0x61d   : > { %v6158_v5 = vpop.permute.xlu2 %1777 }
 0x61e   : > { %8987 = vst [vmem:[#allocation27_spill] sm:$0xff] %v6158_v5 }
 0x622   : > { %1980 = vrot.lane.b32.xlu0 %v1968_v51, %s3640_s27  ;;  %1984 = vrot.lane.b32.xlu1 %v1970_v13, %s3640_s27  ;;  %v6173_v57 = vpop.permute.xlu0 %1757 }
 0x623   : > { %8988 = vst [vmem:[#allocation7_spill] sm:$0xff] %v6173_v57  ;;  %1976 = vrot.lane.b32.xlu2 %v1966_v16, %s3640_s27  ;;  %v6176_v59 = vpop.permute.xlu1 %1752 }
 0x624   : > { %8989 = vst [vmem:[#allocation37_spill] sm:$0xff] %v6176_v59 }
 0x625   : > { %v1927_v56 = vpop.permute.xlu2 %1926 }
 0x62a   : > { %1986 = vrot.lane.b32.xlu0 %v1971_v12, %s3640_s27  ;;  %v6189_v63 = vpop.permute.xlu0 %1772 }
 0x62b   : > { %8990 = vst [vmem:[#allocation40_spill] sm:$0xff] %v6189_v63  ;;  %1982 = vrot.lane.b32.xlu2 %v1969_v44, %s3640_s27  ;;  %v6192_v51 = vpop.permute.xlu1 %1767 }
 0x62c   : > { %8991 = vst [vmem:[#allocation94_spill] sm:$0xff] %v6192_v51 }
 0x62d   : > { %v6194_v13 = vpop.permute.xlu2 %1932 }
 0x634   : > { %v1925_v16 = vpop.permute.xlu0 %1924  ;;  %v1929_v5 = vpop.permute.xlu1 %1928 }
 0x635   : > { %v6196_v59 = vpop.permute.xlu2 %1938  ;;  %vm1950_vm11 = vcmp.eq.f32.partialorder %v9000_v30, %v1929_v5  ;;  %vm1948_vm5 = vcmp.eq.f32.partialorder %v9003_v45, %v1925_v16  ;;  %v9010_v16 = vld [vmem:[#allocation70_spill] sm:$0xff] }
 0x63c   : > { %v1931_v8 = vpop.permute.xlu0 %1930  ;;  %v1935_v33 = vpop.permute.xlu1 %1934 }
 0x63d   : > { %v6198_v57 = vpop.permute.xlu2 %2096  ;;  %vm1953_vm14 = vcmp.eq.f32.partialorder %v9004_v29, %v1935_v33  ;;  %v9009_v33 = vld [vmem:[#allocation73_spill] sm:$0xff]  ;;  %vm1951_vm2 = vcmp.eq.f32.partialorder %v9010_v16, %v1931_v8 }
 0x644   : > { %v6200_v36 = vpop.permute.xlu0 %1936  ;;  %v6202_v12 = vpop.permute.xlu1 %2092 }
 0x645   : > { %v6204_v60 = vpop.permute.xlu2 %2102 }
 0x64c   : > { %v6206_v63 = vpop.permute.xlu0 %2094  ;;  %v6208_v44 = vpop.permute.xlu1 %2098 }
 0x64d   : > { %v6210_v51 = vpop.permute.xlu2 %2434 }
 0x64e   : > { %8992 = vst [vmem:[#allocation95_spill] sm:$0xff] %v6210_v51 }
 0x654   : > { %v6212_v20 = vpop.permute.xlu0 %2100  ;;  %v6214_v28 = vpop.permute.xlu1 %2104 }
 0x655   : > { %v6216_v19 = vpop.permute.xlu2 %2446 }
 0x656   : > { %8993 = vst [vmem:[#allocation96_spill] sm:$0xff] %v6216_v19 }
 0x65c   : > { %v6218_v49 = vpop.permute.xlu0 %2106  ;;  %v6220_v61 = vpop.permute.xlu1 %2438 }
 0x65d   : > { %8994 = vst [vmem:[#allocation97_spill] sm:$0xff] %v6220_v61  ;;  %v6222_v58 = vpop.permute.xlu2 %2458 }
 0x65e   : > { %8995 = vst [vmem:[#allocation98_spill] sm:$0xff] %v6222_v58 }
 0x664   : > { %v6224_v41 = vpop.permute.xlu0 %2430  ;;  %v6226_v50 = vpop.permute.xlu1 %2450 }
 0x665   : > { %8996 = vst [vmem:[#allocation99_spill] sm:$0xff] %v6224_v41  ;;  %v6228_v26 = vpop.permute.xlu2 %2012 }
 0x666   : > { %8997 = vst [vmem:[#allocation100_spill] sm:$0xff] %v6226_v50 }
 0x66c   : > { %v6230_v46 = vpop.permute.xlu0 %2442  ;;  %v6232_v51 = vpop.permute.xlu1 %2014 }
 0x66d   : > { %8998 = vst [vmem:[#allocation101_spill] sm:$0xff] %v6230_v46  ;;  %v6234_v37 = vpop.permute.xlu2 %2018 }
 0x674   : > { %v6236_v7 = vpop.permute.xlu0 %2454  ;;  %v6238_v19 = vpop.permute.xlu1 %2020 }
 0x675   : > { %8999 = vst [vmem:[#allocation102_spill] sm:$0xff] %v6236_v7  ;;  %v6240_v21 = vpop.permute.xlu2 %2024 }
 0x67c   : > { %v2017_v61 = vpop.permute.xlu0 %2016  ;;  %v6242_v58 = vpop.permute.xlu1 %2026 }
 0x67d   : > { %v1977_v41 = vpop.permute.xlu2 %1976 }
 0x67e   : > { %vm1990_vm13 = vcmp.ne.s32.totalorder %v1977_v41, 0  ;;  %v9034_v41 = vmov 0 }
 0x67f   : > { %vm6245_vm1 = vmand %vm1950_vm11, %vm1990_vm13 }
 0x680   : > { %v2054_v46 = vsel %vm6245_vm1, 1, %v8982_v39  ;;  %v2038_v8 = vsel %vm6245_vm1, %v8977_v40, %v2017_v61 }
 0x681   : > { %2064 = vrot.lane.b32.xlu1 %v2054_v46, %s3638_s24 }
 0x684   : > { %v2023_v7 = vpop.permute.xlu0 %2022  ;;  %v1973_v3 = vpop.permute.xlu1 %1972 }
 0x685   : > { %vm1988_vm6 = vcmp.ne.s32.totalorder %v1973_v3, 0  ;;  %v1983_v0 = vpop.permute.xlu2 %1982 }
 0x686   : > { %vm6255_vm15 = vmand %vm1948_vm5, %vm1988_vm6  ;;  %vm1993_vm11 = vcmp.ne.s32.totalorder %v1983_v0, 0  ;;  %vm1949_vm5 = vcmp.eq.f32.partialorder %v9009_v33, %v1927_v56 }
 0x687   : > { %v2052_v5 = vsel %vm6255_vm15, 1, %v8982_v39  ;;  %vm6262_vm13 = vmand %vm1953_vm14, %vm1993_vm11 }
 0x688   : > { %2060 = vrot.lane.b32.xlu0 %v2052_v5, %s3638_s24  ;;  %v2057_v46 = vsel %vm6262_vm13, 1, %v8982_v39 }
 0x689   : > { %2070 = vrot.lane.b32.xlu1 %v2057_v46, %s3638_s24 }
 0x68c   : > { %v1975_v3 = vpop.permute.xlu0 %1974  ;;  %v1979_v0 = vpop.permute.xlu1 %1978 }
 0x68d   : > { %vm1989_vm6 = vcmp.ne.s32.totalorder %v1975_v3, 0  ;;  %vm1991_vm14 = vcmp.ne.s32.totalorder %v1979_v0, 0  ;;  %v9015_v3 = vld [vmem:[#allocation75_spill] sm:$0xff] }
 0x68e   : > { %vm6273_vm9 = vmand %vm1949_vm5, %vm1989_vm6 }
 0x68f   : > { %v2053_v5 = vsel %vm6273_vm9, 1, %v8982_v39  ;;  %vm6280_vm11 = vmand %vm1951_vm2, %vm1991_vm14  ;;  %vm1952_vm2 = vcmp.eq.f32.partialorder %v9015_v3, %v6194_v13 }
 0x690   : > { %2062 = vrot.lane.b32.xlu2 %v2053_v5, %s3638_s24  ;;  %v2055_v56 = vsel %vm6280_vm11, 1, %v8982_v39  ;;  %v9016_v5 = vld [vmem:[#allocation71_spill] sm:$0xff] }
 0x691   : > { %2066 = vrot.lane.b32.xlu0 %v2055_v56, %s3638_s24  ;;  %2184 = vrot.lane.b32.xlu1 %v2038_v8, %s3640_s27  ;;  %vm1954_vm6 = vcmp.eq.f32.partialorder %v9016_v5, %v6200_v36  ;;  %v2041_v36 = vsel %vm6262_vm13, %v8981_v18, %v2023_v7  ;;  %v2036_v7 = vsel %vm6255_vm15, %v8979_v23, %v6228_v26 }
 0x692   : > { %v2039_v26 = vsel %vm6280_vm11, %v8983_v11, %v6234_v37 }
 0x694   : > { %v1981_v46 = vpop.permute.xlu0 %1980  ;;  %v1985_v0 = vpop.permute.xlu1 %1984 }
 0x695   : > { %vm1992_vm5 = vcmp.ne.s32.totalorder %v1981_v46, 0  ;;  %vm1994_vm10 = vcmp.ne.s32.totalorder %v1985_v0, 0  ;;  %v9021_v46 = vld [vmem:[#allocation76_spill] sm:$0xff] }
 0x696   : > { %vm6297_vm14 = vmand %vm1952_vm2, %vm1992_vm5 }
 0x697   : > { %v2056_v61 = vsel %vm6297_vm14, 1, %v8982_v39  ;;  %vm6304_vm0 = vmand %vm1954_vm6, %vm1994_vm10  ;;  %vm1955_vm10 = vcmp.eq.f32.partialorder %v9021_v46, %v6196_v59  ;;  %v6335_v59 = vsel %vm6273_vm9, -1e+30, %v9009_v33  ;;  %v6352_v33 = vsel %vm6297_vm14, -1e+30, %v9015_v3 }
 0x698   : > { %2068 = vrot.lane.b32.xlu2 %v2056_v61, %s3638_s24  ;;  %v2058_v13 = vsel %vm6304_vm0, 1, %v8982_v39  ;;  %9024 = vst [vmem:[#allocation72_spill] sm:$0xff] %v6335_v59  ;;  %v2040_v6 = vsel %vm6297_vm14, %v8974_v4, %v6238_v19  ;;  %v2042_v37 = vsel %vm6304_vm0, %v8986_v24, %v6240_v21  ;;  %v6381_v19 = vsel %vm6245_vm1, -1e+30, %v9000_v30 }
 0x699   : > { %2072 = vrot.lane.b32.xlu0 %v2058_v13, %s3638_s24  ;;  %2190 = vrot.lane.b32.xlu1 %v2041_v36, %s3640_s27  ;;  %v2037_v13 = vsel %vm6273_vm9, %v8973_v14, %v6232_v51  ;;  %9025 = vst [vmem:[#allocation69_spill] sm:$0xff] %v6352_v33  ;;  %v6388_v21 = vsel %vm6255_vm15, -1e+30, %v9003_v45  ;;  %v6402_v30 = vsel %vm6280_vm11, -1e+30, %v9010_v16 }
 0x69a   : > { %9027 = vst [vmem:[#allocation73_spill] sm:$0xff] %v6381_v19  ;;  %v6409_v45 = vsel %vm6304_vm0, -1e+30, %v9016_v5  ;;  %v9092_v5 = vmov 0 }
 0x69b   : > { %9028 = vst [vmem:[#allocation70_spill] sm:$0xff] %v6388_v21 }
 0x69c   : > { %v1987_v8 = vpop.permute.xlu0 %1986  ;;  %9030 = vst [vmem:[#allocation71_spill] sm:$0xff] %v6402_v30 }
 0x69d   : > { %vm1995_vm2 = vcmp.ne.s32.totalorder %v1987_v8, 0  ;;  %9031 = vst [vmem:[#allocation76_spill] sm:$0xff] %v6409_v45 }
 0x69e   : > { %vm6319_vm5 = vmand %vm1955_vm10, %vm1995_vm2 }
 0x69f   : > { %v2059_v61 = vsel %vm6319_vm5, 1, %v8982_v39  ;;  %v6369_v51 = vsel %vm6319_vm5, -1e+30, %v9021_v46  ;;  %v2043_v53 = vsel %vm6319_vm5, %v8978_v52, %v6242_v58  ;;  %v6395_v58 = vsel %vm6262_vm13, -1e+30, %v9004_v29 }
 0x6a0   : > { %2074 = vrot.lane.b32.xlu2 %v2059_v61, %s3638_s24  ;;  %9026 = vst [vmem:[#allocation74_spill] sm:$0xff] %v6369_v51  ;;  %v9038_v46 = vmov 0 }
 0x6a1   : > { %2180 = vrot.lane.b32.xlu0 %v2036_v7, %s3640_s27  ;;  %2527 = vrot.lane.b32.xlu1 %v6335_v59, %s3638_s24  ;;  %9029 = vst [vmem:[#allocation75_spill] sm:$0xff] %v6395_v58  ;;  %v9099_v7 = vmov 0 }
 0x6a8   : > { %2182 = vrot.lane.b32.xlu2 %v2037_v13, %s3640_s27 }
 0x6a9   : > { %2186 = vrot.lane.b32.xlu0 %v2039_v26, %s3640_s27  ;;  %2533 = vrot.lane.b32.xlu1 %v6352_v33, %s3638_s24  ;;  %v9122_v26 = vld [vmem:[#allocation51_spill] sm:$0xff] }
 0x6b0   : > { %2188 = vrot.lane.b32.xlu2 %v2040_v6, %s3640_s27 }
 0x6b1   : > { %2192 = vrot.lane.b32.xlu0 %v2042_v37, %s3640_s27  ;;  %2539 = vrot.lane.b32.xlu1 %v6369_v51, %s3638_s24 }
 0x6b8   : > { %2194 = vrot.lane.b32.xlu2 %v2043_v53, %s3640_s27  ;;  %v9047_v53 = vmov 0 }
 0x6b9   : > { %2529 = vrot.lane.b32.xlu0 %v6381_v19, %s3638_s24  ;;  %v9056_v19 = vld [vmem:[#allocation88_spill] sm:$0xff] }
 0x6c0   : > { %2525 = vrot.lane.b32.xlu2 %v6388_v21, %s3638_s24 }
 0x6c1   : > { %2535 = vrot.lane.b32.xlu0 %v6395_v58, %s3638_s24 }
 0x6c8   : > { %2531 = vrot.lane.b32.xlu2 %v6402_v30, %s3638_s24 }
 0x6d0   : > { %2537 = vrot.lane.b32.xlu2 %v6409_v45, %s3638_s24 }
 0x6ea   : > { %v2063_v17 = vpop.permute.xlu2 %2062 }
 0x6eb   : > { %vm2077_vm9 = vcmp.ne.s32.totalorder %v2063_v17, 0 }
 0x6ec   : > { %vm6416_vm1 = vmor %vm8488_vm8, %vm2077_vm9 }
 0x6ed   : > { %vm2125_vm15 = vmxor %vm6416_vm1, %vm8731_vm4 }
 0x6ee   : > { %v2133_v29 = vsel %vm2125_vm15, 1, %v8982_v39 }
 0x6ef   : > { %2142 = vrot.lane.b32.xlu1 %v2133_v29, %s3641_s28 }
 0x6f2   : > { %v2069_v50 = vpop.permute.xlu2 %2068 }
 0x6f3   : > { %vm2080_vm0 = vcmp.ne.s32.totalorder %v2069_v50, 0  ;;  %v2065_v16 = vpop.permute.xlu1 %2064  ;;  %v9050_v50 = vmov 0 }
 0x6f4   : > { %vm6428_vm13 = vmor %vm8485_vm3, %vm2080_vm0  ;;  %vm2078_vm6 = vcmp.ne.s32.totalorder %v2065_v16, 0 }
 0x6f5   : > { %v9035_v41 = vsel %vm6428_vm13, 4294967295, %v9034_v41  ;;  %vm2128_vm11 = vmxor %vm6428_vm13, %vm8731_vm4 }
 0x6f6   : > { %v2136_v3 = vsel %vm2128_vm11, 1, %v8982_v39  ;;  %vm6439_vm14 = vmor %vm8474_vm12, %vm2078_vm6  ;;  %vm9040_vm11 = vcmp.eq.f32.partialorder %v8976_v9, %v5897_v35 }
 0x6f7   : > { %2148 = vrot.lane.b32.xlu1 %v2136_v3, %s3641_s28  ;;  %vm2126_vm10 = vmxor %vm6439_vm14, %vm8731_vm4 }
 0x6f8   : > { %v2134_v56 = vsel %vm2126_vm10, 1, %v8982_v39 }
 0x6f9   : > { %2144 = vrot.lane.b32.xlu0 %v2134_v56, %s3641_s28 }
 0x6fa   : > { %v2075_v36 = vpop.permute.xlu2 %2074  ;;  %v2061_v8 = vpop.permute.xlu0 %2060 }
 0x6fb   : > { %vm2083_vm2 = vcmp.ne.s32.totalorder %v2075_v36, 0  ;;  %vm2076_vm9 = vcmp.ne.s32.totalorder %v2061_v8, 0  ;;  %v2071_v0 = vpop.permute.xlu1 %2070 }
 0x6fc   : > { %vm6452_vm5 = vmor %vm8473_vm7, %vm2083_vm2  ;;  %vm2081_vm0 = vcmp.ne.s32.totalorder %v2071_v0, 0  ;;  %vm9043_vm2 = vcmp.eq.f32.partialorder %v5805_v25, %v5972_v27 }
 0x6fd   : > { %v9039_v46 = vsel %vm6452_vm5, 4294967295, %v9038_v46  ;;  %vm2131_vm15 = vmxor %vm6452_vm5, %vm8731_vm4 }
 0x6fe   : > { %v2139_v61 = vsel %vm2131_vm15, 1, %v8982_v39  ;;  %vm6463_vm6 = vmor %vm9040_vm11, %vm2076_vm9  ;;  %vm9046_vm11 = vcmp.eq.f32.partialorder %v5821_v34, %v5975_v47 }
 0x6ff   : > { %2154 = vrot.lane.b32.xlu1 %v2139_v61, %s3641_s28  ;;  %vm2124_vm10 = vmxor %vm6463_vm6, %vm8731_vm4 }
 0x700   : > { %v2132_v13 = vsel %vm2124_vm10, 1, %v8982_v39  ;;  %vm6475_vm7 = vmor %vm9043_vm2, %vm2081_vm0 }
 0x701   : > { %2140 = vrot.lane.b32.xlu2 %v2132_v13, %s3641_s28  ;;  %vm2129_vm9 = vmxor %vm6475_vm7, %vm8731_vm4 }
 0x702   : > { %v2137_v6 = vsel %vm2129_vm9, 1, %v8982_v39  ;;  %vm9049_vm9 = vcmp.eq.f32.partialorder %v5909_v10, %v6024_v55  ;;  %v2183_v3 = vpop.permute.xlu2 %2182 }
 0x703   : > { %v2067_v37 = vpop.permute.xlu0 %2066  ;;  %2150 = vrot.lane.b32.xlu0 %v2137_v6, %s3641_s28  ;;  %v6511_v36 = vpop.permute.xlu1 %2184 }
 0x704   : > { %vm2079_vm15 = vcmp.ne.s32.totalorder %v2067_v37, 0 }
 0x705   : > { %vm6488_vm10 = vmor %vm9046_vm11, %vm2079_vm15  ;;  %vm2116_vm11 = vcmp.eq.f32.partialorder %v9056_v19, %v6202_v12  ;;  %v9090_v12 = vmov 0 }
 0x706   : > { %v9048_v53 = vsel %vm6488_vm10, 4294967295, %v9047_v53  ;;  %vm2127_vm0 = vmxor %vm6488_vm10, %vm8731_vm4 }
 0x707   : > { %v2135_v17 = vsel %vm2127_vm0, 1, %v8982_v39 }
 0x709   : > { %2146 = vrot.lane.b32.xlu2 %v2135_v17, %s3641_s28 }
 0x70a   : > { %v6509_v56 = vpop.permute.xlu2 %2188 }
 0x70b   : > { %v2073_v29 = vpop.permute.xlu0 %2072  ;;  %v6515_v0 = vpop.permute.xlu1 %2190 }
 0x70c   : > { %vm2082_vm2 = vcmp.ne.s32.totalorder %v2073_v29, 0 }
 0x70d   : > { %vm6500_vm12 = vmor %vm9049_vm9, %vm2082_vm2 }
 0x70e   : > { %v9051_v50 = vsel %vm6500_vm12, 4294967295, %v9050_v50  ;;  %vm2130_vm15 = vmxor %vm6500_vm12, %vm8731_vm4 }
 0x70f   : > { %9052 = vst [vmem:[#allocation103_spill] sm:$0xff] %v9051_v50  ;;  %v2138_v16 = vsel %vm2130_vm15, 1, %v8982_v39  ;;  %v9069_v50 = vld [vmem:[#allocation92_spill] sm:$0xff] }
 0x711   : > { %2152 = vrot.lane.b32.xlu2 %v2138_v16, %s3641_s28 }
 0x712   : > { %v6513_v8 = vpop.permute.xlu2 %2194 }
 0x713   : > { %v6517_v61 = vpop.permute.xlu0 %2180  ;;  %v6521_v6 = vpop.permute.xlu1 %2527 }
 0x71a   : > { %v6519_v13 = vpop.permute.xlu2 %2525 }
 0x71b   : > { %v6523_v37 = vpop.permute.xlu0 %2186  ;;  %v6527_v29 = vpop.permute.xlu1 %2533 }
 0x722   : > { %v6525_v17 = vpop.permute.xlu2 %2531 }
 0x723   : > { %v6529_v16 = vpop.permute.xlu0 %2192  ;;  %v6533_v33 = vpop.permute.xlu1 %2539 }
 0x724   : > { %9054 = vst [vmem:[#allocation105_spill] sm:$0xff] %v6533_v33  ;;  %v9063_v33 = vld [vmem:[#allocation90_spill] sm:$0xff] }
 0x72a   : > { %v6531_v51 = vpop.permute.xlu2 %2537 }
 0x72b   : > { %9053 = vst [vmem:[#allocation104_spill] sm:$0xff] %v6531_v51  ;;  %v6535_v58 = vpop.permute.xlu0 %2529  ;;  %v9059_v51 = vld [vmem:[#allocation89_spill] sm:$0xff] }
 0x72c   : > { %9055 = vst [vmem:[#allocation106_spill] sm:$0xff] %v6535_v58  ;;  %vm2117_vm9 = vcmp.eq.f32.partialorder %v9059_v51, %v6206_v63  ;;  %v9078_v58 = vld [vmem:[#allocation87_spill] sm:$0xff] }
 0x733   : > { %v6549_v25 = vpop.permute.xlu0 %2535 }
 0x734   : > { %9060 = vst [vmem:[#allocation88_spill] sm:$0xff] %v6549_v25  ;;  %v9089_v25 = vld [vmem:[#allocation80_spill] sm:$0xff] }
 0x75b   : > { %v2141_v59 = vpop.permute.xlu2 %2140 }
 0x75c   : > { %vm2156_vm0 = vcmp.ne.s32.totalorder %v2141_v59, 0 }
 0x75d   : > { %vm6539_vm2 = vmand %vm2116_vm11, %vm2156_vm0  ;;  %vm2119_vm11 = vcmp.eq.f32.partialorder %v9063_v33, %v6208_v44  ;;  %v9066_v44 = vld [vmem:[#allocation91_spill] sm:$0xff] }
 0x75e   : > { %v2220_v30 = vsel %vm6539_vm2, 1, %v8982_v39 }
 0x75f   : > { %2228 = vrot.lane.b32.xlu1 %v2220_v30, %s3639_s26 }
 0x761   : > { %v2143_v21 = vpop.permute.xlu1 %2142 }
 0x762   : > { %vm2157_vm15 = vcmp.ne.s32.totalorder %v2143_v21, 0 }
 0x763   : > { %vm6551_vm3 = vmand %vm2117_vm9, %vm2157_vm15  ;;  %v2147_v59 = vpop.permute.xlu2 %2146  ;;  %vm2120_vm9 = vcmp.eq.f32.partialorder %v9066_v44, %v6212_v20 }
 0x764   : > { %v2221_v54 = vsel %vm6551_vm3, 1, %v8982_v39  ;;  %vm2159_vm0 = vcmp.ne.s32.totalorder %v2147_v59, 0 }
 0x765   : > { %2230 = vrot.lane.b32.xlu0 %v2221_v54, %s3639_s26  ;;  %vm6561_vm8 = vmand %vm2119_vm11, %vm2159_vm0  ;;  %vm2122_vm11 = vcmp.eq.f32.partialorder %v9069_v50, %v6214_v28 }
 0x766   : > { %v2223_v21 = vsel %vm6561_vm8, 1, %v8982_v39 }
 0x767   : > { %2234 = vrot.lane.b32.xlu1 %v2223_v21, %s3639_s26  ;;  %v9070_v21 = vld [vmem:[#allocation86_spill] sm:$0xff] }
 0x768   : > { %vm2118_vm10 = vcmp.eq.f32.partialorder %v9070_v21, %v6198_v57 }
 0x769   : > { %v2149_v30 = vpop.permute.xlu1 %2148 }
 0x76a   : > { %vm2160_vm15 = vcmp.ne.s32.totalorder %v2149_v30, 0 }
 0x76b   : > { %vm6571_vm12 = vmand %vm2120_vm9, %vm2160_vm15  ;;  %v2153_v54 = vpop.permute.xlu2 %2152  ;;  %v2145_v59 = vpop.permute.xlu0 %2144 }
 0x76c   : > { %v2224_v10 = vsel %vm6571_vm12, 1, %v8982_v39  ;;  %vm2162_vm0 = vcmp.ne.s32.totalorder %v2153_v54, 0  ;;  %vm2158_vm5 = vcmp.ne.s32.totalorder %v2145_v59, 0  ;;  %v9075_v54 = vld [vmem:[#allocation93_spill] sm:$0xff] }
 0x76d   : > { %2236 = vrot.lane.b32.xlu0 %v2224_v10, %s3639_s26  ;;  %vm6583_vm9 = vmand %vm2122_vm11, %vm2162_vm0  ;;  %vm2123_vm11 = vcmp.eq.f32.partialorder %v9075_v54, %v6218_v49 }
 0x76e   : > { %v2226_v30 = vsel %vm6583_vm9, 1, %v8982_v39  ;;  %vm6590_vm15 = vmand %vm2118_vm10, %vm2158_vm5  ;;  %vm2121_vm5 = vcmp.eq.f32.partialorder %v9078_v58, %v6204_v60 }
 0x76f   : > { %2240 = vrot.lane.b32.xlu1 %v2226_v30, %s3639_s26  ;;  %v2222_v57 = vsel %vm6590_vm15, 1, %v8982_v39  ;;  %v2206_v60 = vsel %vm6590_vm15, %v8977_v40, %v6511_v36  ;;  %v9149_v40 = vld [vmem:[#allocation57_spill] sm:$0xff] }
 0x770   : > { %2232 = vrot.lane.b32.xlu2 %v2222_v57, %s3639_s26  ;;  %v2205_v57 = vsel %vm6551_vm3, %v8973_v14, %v2183_v3  ;;  %v2204_v3 = vsel %vm6539_vm2, %v8979_v23, %v6517_v61  ;;  %v2207_v61 = vsel %vm6561_vm8, %v8983_v11, %v6523_v37  ;;  %v2210_v37 = vsel %vm6583_vm9, %v8986_v24, %v6529_v16 }
 0x771   : > { %v2155_v10 = vpop.permute.xlu1 %2154  ;;  %v6689_v16 = vsel %vm6551_vm3, -1e+30, %v9059_v51 }
 0x772   : > { %vm2163_vm0 = vcmp.ne.s32.totalorder %v2155_v10, 0  ;;  %9085 = vst [vmem:[#allocation86_spill] sm:$0xff] %v6689_v16 }
 0x773   : > { %vm6601_vm13 = vmand %vm2123_vm11, %vm2163_vm0 }
 0x774   : > { %v2227_v55 = vsel %vm6601_vm13, 1, %v8982_v39  ;;  %v6710_v51 = vsel %vm6601_vm13, -1e+30, %v9075_v54  ;;  %v9098_v54 = vld [vmem:[#allocation39_spill] sm:$0xff] }
 0x775   : > { %2242 = vrot.lane.b32.xlu0 %v2227_v55, %s3639_s26  ;;  %v2151_v30 = vpop.permute.xlu0 %2150  ;;  %v2208_v55 = vsel %vm6571_vm12, %v8974_v4, %v6509_v56  ;;  %v2211_v56 = vsel %vm6601_vm13, %v8978_v52, %v6513_v8  ;;  %v6663_v8 = vsel %vm6590_vm15, -1e+30, %v9070_v21  ;;  %9088 = vst [vmem:[#allocation107_spill] sm:$0xff] %v6710_v51  ;;  %v9145_v52 = vld [vmem:[#allocation31_spill] sm:$0xff] }
 0x776   : > { %vm2161_vm10 = vcmp.ne.s32.totalorder %v2151_v30, 0  ;;  %9082 = vst [vmem:[#allocation90_spill] sm:$0xff] %v6663_v8  ;;  %v9164_v4 = vld [vmem:[#allocation35_spill] sm:$0xff] }
 0x777   : > { %2294 = vrot.lane.b32.xlu1 %v2205_v57, %s3639_s26  ;;  %vm6615_vm11 = vmand %vm2121_vm5, %vm2161_vm10  ;;  %vm2342_vm5 = vcmp.eq.f32.partialorder %v5848_v22, %v5893_v2 }
 0x778   : > { %v2225_v10 = vsel %vm6615_vm11, 1, %v8982_v39  ;;  %v2209_v36 = vsel %vm6615_vm11, %v8981_v18, %v6515_v0  ;;  %v6656_v0 = vsel %vm6539_vm2, -1e+30, %v9056_v19  ;;  %v6675_v19 = vsel %vm6561_vm8, -1e+30, %v9063_v33  ;;  %v9143_v18 = vld [vmem:[#allocation32_spill] sm:$0xff] }
 0x779   : > { %2238 = vrot.lane.b32.xlu2 %v2225_v10, %s3639_s26  ;;  %9081 = vst [vmem:[#allocation89_spill] sm:$0xff] %v6656_v0  ;;  %v6682_v45 = vsel %vm6615_vm11, -1e+30, %v9078_v58  ;;  %v6696_v33 = vsel %vm6583_vm9, -1e+30, %v9069_v50  ;;  %v9130_v10 = vmov 0 }
 0x77a   : > { %9083 = vst [vmem:[#allocation91_spill] sm:$0xff] %v6675_v19  ;;  %v6703_v58 = vsel %vm6571_vm12, -1e+30, %v9066_v44  ;;  %vm2262_vm12 = vcmp.eq.f32.partialorder %v9089_v25, %v5893_v2  ;;  %v9163_v39 = vld [vmem:[#allocation33_spill] sm:$0xff] }
 0x77b   : > { %9084 = vst [vmem:[#allocation92_spill] sm:$0xff] %v6682_v45 }
 0x77c   : > { %9086 = vst [vmem:[#allocation93_spill] sm:$0xff] %v6696_v33 }
 0x77d   : > { %2296 = vrot.lane.b32.xlu0 %v2206_v60, %s3639_s26  ;;  %9087 = vst [vmem:[#allocation87_spill] sm:$0xff] %v6703_v58  ;;  %v9107_v60 = vld [vmem:[#allocation41_spill] sm:$0xff] }
 0x77f   : > { %2300 = vrot.lane.b32.xlu1 %v2208_v55, %s3639_s26 }
 0x781   : > { %2292 = vrot.lane.b32.xlu2 %v2204_v3, %s3639_s26  ;;  %v9110_v3 = vmov 0 }
 0x785   : > { %2302 = vrot.lane.b32.xlu0 %v2209_v36, %s3639_s26  ;;  %v9112_v36 = vld [vmem:[#allocation10_spill] sm:$0xff] }
 0x787   : > { %2306 = vrot.lane.b32.xlu1 %v2211_v56, %s3639_s26 }
 0x789   : > { %2298 = vrot.lane.b32.xlu2 %v2207_v61, %s3639_s26  ;;  %v9113_v61 = vld [vmem:[#allocation43_spill] sm:$0xff] }
 0x78d   : > { %2565 = vrot.lane.b32.xlu0 %v6656_v0, %s3639_s26  ;;  %v9141_v0 = vmov 0 }
 0x78f   : > { %2569 = vrot.lane.b32.xlu1 %v6663_v8, %s3639_s26 }
 0x791   : > { %2304 = vrot.lane.b32.xlu2 %v2210_v37, %s3639_s26  ;;  %v9114_v37 = vmov 0 }
 0x795   : > { %2571 = vrot.lane.b32.xlu0 %v6675_v19, %s3639_s26 }
 0x797   : > { %2575 = vrot.lane.b32.xlu1 %v6682_v45, %s3639_s26 }
 0x799   : > { %2567 = vrot.lane.b32.xlu2 %v6689_v16, %s3639_s26  ;;  %v9140_v16 = vld [vmem:[#allocation20_spill] sm:$0xff] }
 0x79d   : > { %2577 = vrot.lane.b32.xlu0 %v6696_v33, %s3639_s26  ;;  %v9135_v33 = vld [vmem:[#allocation79_spill] sm:$0xff] }
 0x7a1   : > { %2573 = vrot.lane.b32.xlu2 %v6703_v58, %s3639_s26  ;;  %v9136_v58 = vld [vmem:[#allocation78_spill] sm:$0xff] }
 0x7a9   : > { %2579 = vrot.lane.b32.xlu2 %v6710_v51, %s3639_s26  ;;  %v9126_v51 = vld [vmem:[#allocation83_spill] sm:$0xff] }
 0x7ca   : > { %v2233_v50 = vpop.permute.xlu2 %2232 }
 0x7cb   : > { %vm2246_vm8 = vcmp.ne.s32.totalorder %v2233_v50, 0  ;;  %v9116_v50 = vld [vmem:[#allocation29_spill] sm:$0xff] }
 0x7cc   : > { %vm2254_vm3 = vmor %vm6439_vm14, %vm2246_vm8 }
 0x7cd   : > { %vm2270_vm2 = vmxor %vm2254_vm3, %vm8731_vm4 }
 0x7ce   : > { %vm6719_vm9 = vmand %vm2262_vm12, %vm2270_vm2 }
 0x7cf   : > { %v9091_v12 = vsel %vm6719_vm9, 4294967295, %v9090_v12  ;;  %vm2334_vm13 = vmor %vm2254_vm3, %vm6719_vm9  ;;  %vm2260_vm3 = vcmp.eq.f32.partialorder %v9098_v54, %v5897_v35 }
 0x7d0   : > { %vm2350_vm15 = vmxor %vm2334_vm13, %vm8731_vm4 }
 0x7d1   : > { %v2229_v63 = vpop.permute.xlu1 %2228  ;;  %vm6728_vm14 = vmand %vm2342_vm5, %vm2350_vm15  ;;  %vm2261_vm15 = vcmp.eq.f32.partialorder %v5880_v32, %v5979_v38 }
 0x7d2   : > { %vm2244_vm0 = vcmp.ne.s32.totalorder %v2229_v63, 0  ;;  %v9093_v5 = vsel %vm6728_vm14, 4294967295, %v9092_v5  ;;  %vm6743_vm8 = vmor %vm2334_vm13, %vm6728_vm14 }
 0x7d3   : > { %vm6734_vm10 = vmor %vm6463_vm6, %vm2244_vm0  ;;  %v2239_v21 = vpop.permute.xlu2 %2238 }
 0x7d4   : > { %vm2268_vm11 = vmxor %vm6734_vm10, %vm8731_vm4 }
 0x7d5   : > { %vm6749_vm6 = vmand %vm2260_vm3, %vm2268_vm11  ;;  %vm2341_vm11 = vcmp.eq.f32.partialorder %v5942_v15, %v5979_v38 }
 0x7d6   : > { %v9100_v7 = vsel %vm6749_vm6, 4294967295, %v9099_v7 }
 0x7d7   : > { %v2231_v28 = vpop.permute.xlu0 %2230 }
 0x7d8   : > { %vm2245_vm12 = vcmp.ne.s32.totalorder %v2231_v28, 0  ;;  %v9119_v28 = vld [vmem:[#allocation42_spill] sm:$0xff] }
 0x7d9   : > { %vm2253_vm2 = vmor %vm6416_vm1, %vm2245_vm12  ;;  %v6767_v30 = vpop.permute.xlu1 %2234 }
 0x7da   : > { %vm2269_vm13 = vmxor %vm2253_vm2, %vm8731_vm4 }
 0x7db   : > { %vm6758_vm0 = vmand %vm2261_vm15, %vm2269_vm13  ;;  %v2293_v49 = vpop.permute.xlu2 %2292  ;;  %vm2340_vm13 = vcmp.eq.f32.partialorder %v9107_v60, %v5897_v35 }
 0x7dc   : > { %vm2333_vm5 = vmor %vm2253_vm2, %vm6758_vm0  ;;  %v2316_v56 = vsel %vm6749_vm6, %v9112_v36, %v2293_v49  ;;  %v9120_v49 = vmov 0  ;;  %v9124_v36 = vmov 0 }
 0x7dd   : > { %vm2349_vm3 = vmxor %vm2333_vm5, %vm8731_vm4 }
 0x7de   : > { %vm6769_vm1 = vmand %vm2341_vm11, %vm2349_vm3 }
 0x7df   : > { %v9104_v31 = vsel %vm6769_vm1, 4294967295, %v9103_v31  ;;  %vm2332_vm12 = vmor %vm6734_vm10, %vm6749_vm6  ;;  %v2237_v57 = vpop.permute.xlu0 %2236  ;;  %vm2264_vm6 = vcmp.eq.f32.partialorder %v9135_v33, %v6027_v62 }
 0x7e0   : > { %vm2381_vm2 = vmor %vm2333_vm5, %vm6769_vm1  ;;  %vm2249_vm5 = vcmp.ne.s32.totalorder %v2239_v21, 0  ;;  %vm2388_vm1 = vcmp.eq.f32.partialorder %v9113_v61, %v5897_v35 }
 0x7e1   : > { %vm6782_vm15 = vmxor %vm6743_vm8, %vm8731_vm4  ;;  %v6821_v20 = vpop.permute.xlu1 %2240 }
 0x7e2   : > { %vm2348_vm11 = vmxor %vm2332_vm12, %vm8731_vm4 }
 0x7e3   : > { %vm6790_vm3 = vmxor %vm2381_vm2, %vm8731_vm4  ;;  %v2299_v44 = vpop.permute.xlu2 %2298 }
 0x7e4   : > { %vm6794_vm10 = vmand %vm2340_vm13, %vm2348_vm11 }
 0x7e5   : > { %v9111_v3 = vsel %vm6794_vm10, 4294967295, %v9110_v3  ;;  %vm2380_vm8 = vmor %vm2332_vm12, %vm6794_vm10  ;;  %v2364_v63 = vsel %vm6794_vm10, %v9116_v50, %v2316_v56  ;;  %v9123_v50 = vld [vmem:[#allocation28_spill] sm:$0xff]  ;;  %vm2248_vm10 = vcmp.ne.s32.totalorder %v2237_v57, 0 }
 0x7e6   : > { %vm2396_vm2 = vmxor %vm2380_vm8, %vm8731_vm4 }
 0x7e7   : > { %vm6806_vm14 = vmand %vm2388_vm1, %vm2396_vm2  ;;  %v6819_v21 = vpop.permute.xlu0 %2242  ;;  %vm2265_vm1 = vcmp.eq.f32.partialorder %v9119_v28, %v5972_v27  ;;  %vm2345_vm2 = vcmp.eq.f32.partialorder %v9126_v51, %v5972_v27 }
 0x7e8   : > { %v9115_v37 = vsel %vm6806_vm14, 4294967295, %v9114_v37  ;;  %vm6815_vm13 = vmor %vm6475_vm7, %vm2249_vm5  ;;  %v2412_v56 = vsel %vm6806_vm14, %v9122_v26, %v2364_v63  ;;  %vm2390_vm7 = vcmp.eq.f32.partialorder %v9123_v50, %v5893_v2  ;;  %v9127_v63 = vmov 0  ;;  %v9129_v26 = vld [vmem:[#allocation25_spill] sm:$0xff] }
 0x7e9   : > { %vm2273_vm12 = vmxor %vm6815_vm13, %vm8731_vm4  ;;  %2471 = vperm.xlu1 %3516, %v2412_v56   ;;  %vm2389_vm14 = vcmp.eq.f32.partialorder %v9129_v26, %v5979_v38  ;;  %v2295_v55 = vpop.permute.xlu1 %2294 }
 0x7ea   : > { %vm6828_vm11 = vmand %vm2265_vm1, %vm2273_vm12  ;;  %v2317_v8 = vsel %vm6758_vm0, %v9140_v16, %v2295_v55  ;;  %v9148_v55 = vld [vmem:[#allocation56_spill] sm:$0xff] }
 0x7eb   : > { %v9121_v49 = vsel %vm6828_vm11, 4294967295, %v9120_v49  ;;  %vm2337_vm8 = vmor %vm6815_vm13, %vm6828_vm11 }
 0x7ec   : > { %vm6843_vm5 = vmand %vm2390_vm7, %vm6782_vm15 }
 0x7ed   : > { %v9125_v36 = vsel %vm6843_vm5, 4294967295, %v9124_v36  ;;  %vm2353_vm1 = vmxor %vm2337_vm8, %vm8731_vm4 }
 0x7ee   : > { %vm6850_vm12 = vmand %vm2345_vm2, %vm2353_vm1  ;;  %vm9132_vm2 = vnez %v9035_v41  ;;  %v9139_v41 = vld [vmem:[#allocation18_spill] sm:$0xff] }
 0x7ef   : > { %v9128_v63 = vsel %vm6850_vm12, 4294967295, %v9127_v63  ;;  %vm2385_vm13 = vmor %vm2337_vm8, %vm6850_vm12  ;;  %v2297_v57 = vpop.permute.xlu0 %2296 }
 0x7f0   : > { %vm6860_vm15 = vmand %vm2389_vm14, %vm6790_vm3  ;;  %vm2393_vm14 = vcmp.eq.f32.partialorder %v9136_v58, %v5972_v27  ;;  %v2318_v19 = vsel %vm6719_vm9, %v9139_v41, %v2297_v57  ;;  %v9147_v41 = vld [vmem:[#allocation9_spill] sm:$0xff] }
 0x7f1   : > { %v9131_v10 = vsel %vm6860_vm15, 4294967295, %v9130_v10  ;;  %vm2401_vm7 = vmxor %vm2385_vm13, %vm8731_vm4  ;;  %vm9144_vm13 = vnez %v9093_v5 }
 0x7f2   : > { %vm6867_vm1 = vmor %vm9132_vm2, %vm2248_vm10  ;;  %v2366_v24 = vsel %vm9144_vm13, %v9143_v18, %v2318_v19  ;;  %vm9146_vm2 = vnez %v9104_v31  ;;  %vm2247_vm13 = vcmp.ne.s32.totalorder %v6767_v30, 0  ;;  %v9152_v19 = vld [vmem:[#allocation6_spill] sm:$0xff]  ;;  %v9158_v30 = vld [vmem:[#allocation17_spill] sm:$0xff] }
 0x7f3   : > { %vm2272_vm8 = vmxor %vm6867_vm1, %vm8731_vm4  ;;  %v2365_v57 = vsel %vm9146_vm2, %v9145_v52, %v2317_v8  ;;  %v2414_v56 = vsel %vm6843_vm5, %v9149_v40, %v2366_v24  ;;  %v6918_v8 = vpop.permute.xlu2 %2304  ;;  %vm2392_vm9 = vcmp.eq.f32.partialorder %v9152_v19, %v6027_v62  ;;  %v9159_v40 = vld [vmem:[#allocation24_spill] sm:$0xff] }
 0x7f4   : > { %vm6878_vm3 = vmand %vm2264_vm6, %vm2272_vm8  ;;  %vm2344_vm8 = vcmp.eq.f32.partialorder %v9147_v41, %v6027_v62  ;;  %v2413_v16 = vsel %vm6860_vm15, %v9148_v55, %v2365_v57  ;;  %2481 = vperm.xlu2 %3515, %v2414_v56   ;;  %v2301_v56 = vpop.permute.xlu1 %2300  ;;  %v9160_v55 = vld [vmem:[#allocation5_spill] sm:$0xff] }
 0x7f5   : > { %vm6888_vm10 = vmand %vm2393_vm14, %vm2401_vm7  ;;  %2476 = vperm.xlu0 %3514, %v2413_v16  }
 0x7f6   : > { %v9142_v0 = vsel %vm6888_vm10, 4294967295, %v9141_v0  ;;  %vm2336_vm6 = vmor %vm6867_vm1, %vm6878_vm3 }
 0x7f7   : > { %vm2352_vm7 = vmxor %vm2336_vm6, %vm8731_vm4  ;;  %v2303_v57 = vpop.permute.xlu0 %2302 }
 0x7f8   : > { %vm6911_vm1 = vmand %vm2344_vm8, %vm2352_vm7  ;;  %vm9155_vm8 = vnez %v9048_v53  ;;  %v2321_v18 = vsel %vm6828_vm11, %v9159_v40, %v2303_v57  ;;  %v2320_v53 = vsel %vm6878_vm3, %v9160_v55, %v2301_v56  ;;  %v9166_v56 = vld [vmem:[#allocation12_spill] sm:$0xff]  ;;  %vm2250_vm11 = vcmp.ne.s32.totalorder %v6821_v20, 0 }
 0x7f9   : > { %vm2384_vm14 = vmor %vm2336_vm6, %vm6911_vm1  ;;  %vm2263_vm6 = vcmp.eq.f32.partialorder %v9158_v30, %v5975_v47  ;;  %v2369_v23 = vsel %vm6850_vm12, %v9163_v39, %v2321_v18  ;;  %v2368_v14 = vsel %vm6911_vm1, %v9164_v4, %v2320_v53  ;;  %v9167_v18 = vld [vmem:[#allocation58_spill] sm:$0xff]  ;;  %v9168_v53 = vld [vmem:[#allocation59_spill] sm:$0xff] }
 0x7fa   : > { %vm2400_vm15 = vmxor %vm2384_vm14, %vm8731_vm4  ;;  %v2417_v4 = vsel %vm6888_vm10, %v9168_v53, %v2369_v23  ;;  %v9173_v23 = vld [vmem:[#allocation30_spill] sm:$0xff]  ;;  %v9174_v53 = vld [vmem:[#allocation44_spill] sm:$0xff] }
 0x7fb   : > { %vm6923_vm2 = vmand %vm2392_vm9, %vm2400_vm15  ;;  %vm9165_vm15 = vcmp.eq.f32.partialorder %v5829_v1, %v5979_v38  ;;  %v9169_v38 = vld [vmem:[#allocation14_spill] sm:$0xff]  ;;  %v2568_v16 = vpop.permute.xlu2 %2567 }
 0x7fc   : > { %vm6929_vm7 = vmor %vm9155_vm8, %vm2247_vm13  ;;  %v6958_v57 = vsel %vm9165_vm15, -1e+30, %v5829_v1  ;;  %v2416_v39 = vsel %vm6923_vm2, %v9167_v18, %v2368_v14  ;;  %vm2343_vm13 = vcmp.eq.f32.partialorder %v9169_v38, %v5975_v47  ;;  %2496 = vperm.xlu2 %3515, %v2417_v4   ;;  %vm2251_vm15 = vcmp.ne.s32.totalorder %v6819_v21, 0 }
 0x7fd   : > { %vm2271_vm5 = vmxor %vm6929_vm7, %vm8731_vm4  ;;  %v2550_v1 = vmax.f32 %v6958_v57, %v6521_v6  ;;  %2491 = vperm.xlu0 %3514, %v2416_v39  }
 0x7fe   : > { %vm6944_vm9 = vmand %vm2263_vm6, %vm2271_vm5 }
 0x7ff   : > { %vm2335_vm5 = vmor %vm6929_vm7, %vm6944_vm9  ;;  %v2319_v40 = vsel %vm6944_vm9, %v9166_v56, %v2299_v44  ;;  %vm9172_vm7 = vcmp.eq.f32.partialorder %v8976_v9, %v5897_v35  ;;  %v2590_v39 = vmax.f32 %v2550_v1, %v2568_v16  ;;  %v7002_v35 = vsel %vm6758_vm0, -1e+30, %v5880_v32  ;;  %v2566_v21 = vpop.permute.xlu0 %2565  ;;  %v2307_v1 = vpop.permute.xlu1 %2306  ;;  %v9180_v16 = vld [vmem:[#allocation54_spill] sm:$0xff] }
 0x800   : > { %vm2351_vm14 = vmxor %vm2335_vm5, %vm8731_vm4  ;;  %v6986_v14 = vsel %vm9172_vm7, -1e+30, %v8976_v9  ;;  %vm9177_vm7 = vnez %v9039_v46  ;;  %vm9181_vm0 = vnez %v9104_v31  ;;  %v7158_v11 = vsel %vm6944_vm9, -1e+30, %v9158_v30 }
 0x801   : > { %vm6978_vm8 = vmand %vm2343_vm13, %vm2351_vm14  ;;  %v2549_v6 = vmax.f32 %v6986_v14, %v6519_v13  ;;  %vm2391_vm13 = vcmp.eq.f32.partialorder %v9174_v53, %v5975_v47  ;;  %v7021_v32 = vsel %vm9181_vm0, -1e+30, %v5942_v15  ;;  %v9198_v13 = vld [vmem:[#allocation85_spill] sm:$0xff] }
 0x802   : > { %vm2383_vm6 = vmor %vm2335_vm5, %vm6978_vm8  ;;  %v2367_v4 = vsel %vm6978_vm8, %v9173_v23, %v2319_v40  ;;  %v2598_v40 = vmax.f32 %v2590_v39, %v7002_v35  ;;  %v9182_v39 = vld [vmem:[#allocation16_spill] sm:$0xff]  ;;  %v7196_v24 = vsel %vm6978_vm8, -1e+30, %v9169_v38  ;;  %vm9222_vm8 = vnez %v9125_v36 }
 0x803   : > { %vm2399_vm14 = vmxor %vm2383_vm6, %vm8731_vm4  ;;  %v2589_v23 = vmax.f32 %v2549_v6, %v2566_v21  ;;  %vm2267_vm6 = vcmp.eq.f32.partialorder %v9182_v39, %v6048_v43  ;;  %v9228_v6 = vld [vmem:[#allocation21_spill] sm:$0xff] }
 0x804   : > { %vm7004_vm5 = vmand %vm2391_vm13, %vm2399_vm14  ;;  %v2606_v46 = vmax.f32 %v2598_v40, %v7021_v32  ;;  %vm9183_vm13 = vnez %v9100_v7  ;;  %vm9184_vm14 = vcmp.eq.f32.partialorder %v5915_v42, %v6027_v62  ;;  %v9189_v7 = vld [vmem:[#allocation15_spill] sm:$0xff] }
 0x805   : > { %vm7011_vm10 = vmor %vm9177_vm7, %vm2251_vm15  ;;  %v2415_v59 = vsel %vm7004_vm5, %v9180_v16, %v2367_v4  ;;  %v7032_v4 = vsel %vm9183_vm13, -1e+30, %v9098_v54  ;;  %v7038_v15 = vsel %vm9184_vm14, -1e+30, %v5915_v42  ;;  %vm9185_vm7 = vnez %v9131_v10 }
 0x806   : > { %vm2275_vm15 = vmxor %vm7011_vm10, %vm8731_vm4  ;;  %2486 = vperm.xlu1 %3516, %v2415_v59   ;;  %v7043_v31 = vsel %vm9185_vm7, -1e+30, %v9129_v26  ;;  %v2597_v40 = vmax.f32 %v2589_v23, %v7032_v4  ;;  %v2553_v54 = vmax.f32 %v7038_v15, %v6527_v29  ;;  %vm9188_vm14 = vnez %v9111_v3  ;;  %v9192_v3 = vld [vmem:[#allocation22_spill] sm:$0xff] }
 0x807   : > { %vm7045_vm0 = vmand %vm2267_vm6, %vm2275_vm15  ;;  %v7057_v42 = vmax.f32 %v2606_v46, %v7043_v31  ;;  %v7062_v62 = vsel %vm9188_vm14, -1e+30, %v9107_v60  ;;  %vm9190_vm6 = vcmp.eq.f32.partialorder %v5821_v34, %v5975_v47  ;;  %vm9191_vm15 = vcmp.eq.f32.partialorder %v8975_v48, %v5893_v2  ;;  %v9193_v23 = vld [vmem:[#allocation106_spill] sm:$0xff] }
 0x808   : > { %vm2339_vm13 = vmor %vm7011_vm10, %vm7045_vm0  ;;  %v2323_v26 = vsel %vm7045_vm0, %v9189_v7, %v2307_v1  ;;  %v7071_v29 = vsel %vm9190_vm6, -1e+30, %v5821_v34  ;;  %v7077_v10 = vsel %vm9191_vm15, -1e+30, %v8975_v48  ;;  %vm2347_vm7 = vcmp.eq.f32.partialorder %v9192_v3, %v6048_v43  ;;  %v2574_v34 = vpop.permute.xlu2 %2573  ;;  %v9199_v46 = vld [vmem:[#allocation38_spill] sm:$0xff] }
 0x809   : > { %vm2355_vm14 = vmxor %vm2339_vm13, %vm8731_vm4  ;;  %v2605_v47 = vmax.f32 %v2597_v40, %v7062_v62  ;;  %v2552_v60 = vmax.f32 %v7071_v29, %v6525_v17  ;;  %v2551_v2 = vmax.f32 %v7077_v10, %v9193_v23  ;;  %vm9194_vm6 = vnez %v9115_v37  ;;  %v9200_v40 = vld [vmem:[#allocation13_spill] sm:$0xff]  ;;  %v9202_v23 = vld [vmem:[#allocation23_spill] sm:$0xff] }
 0x80a   : > { %v7095_v48 = vsel %vm9194_vm6, -1e+30, %v9113_v61  ;;  %vm7097_vm15 = vmand %vm2347_vm7, %vm2355_vm14  ;;  %v2593_v1 = vmax.f32 %v2553_v54, %v2574_v34  ;;  %v9197_v61 = vld [vmem:[#allocation36_spill] sm:$0xff]  ;;  %v7118_v59 = vsel %vm6878_vm3, -1e+30, %v9135_v33  ;;  %vm2395_vm7 = vcmp.eq.f32.partialorder %v9198_v13, %v6048_v43  ;;  %v9201_v54 = vld [vmem:[#allocation82_spill] sm:$0xff]  ;;  %v2572_v34 = vpop.permute.xlu0 %2571 }
 0x80b   : > { %vm2387_vm12 = vmor %vm2339_vm13, %vm7097_vm15  ;;  %v7110_v17 = vmax.f32 %v2605_v47, %v7095_v48  ;;  %v2371_v37 = vsel %vm7097_vm15, %v9197_v61, %v2323_v26  ;;  %vm2266_vm13 = vcmp.eq.f32.partialorder %v9200_v40, %v9199_v46  ;;  %v2570_v26 = vpop.permute.xlu1 %2569  ;;  %vm9203_vm3 = vcmp.eq.f32.partialorder %v9202_v23, %v9199_v46 }
 0x80c   : > { %vm2403_vm10 = vmxor %vm2387_vm12, %vm8731_vm4  ;;  %v2601_v47 = vmax.f32 %v2593_v1, %v7118_v59  ;;  %v7132_v45 = vsel %vm9203_vm3, -1e+30, %v9202_v23  ;;  %v7141_v61 = vsel %vm6911_vm1, -1e+30, %v9147_v41  ;;  %v2592_v7 = vmax.f32 %v2552_v60, %v2572_v34  ;;  %v9206_v1 = vld [vmem:[#allocation103_spill] sm:$0xff]  ;;  %v9210_v23 = vld [vmem:[#allocation60_spill] sm:$0xff] }
 0x80d   : > { %vm7134_vm6 = vmand %vm2395_vm7, %vm2403_vm10  ;;  %v2591_v16 = vmax.f32 %v2551_v2, %v2570_v26  ;;  %vm9207_vm12 = vnez %v9206_v1  ;;  %vm9211_vm1 = vnez %v9091_v12  ;;  %v9212_v41 = vld [vmem:[#allocation81_spill] sm:$0xff]  ;;  %v7174_v2 = vsel %vm6923_vm2, -1e+30, %v9152_v19  ;;  %v9223_v26 = vld [vmem:[#allocation88_spill] sm:$0xff] }
 0x80e   : > { %vm7147_vm14 = vmor %vm9207_vm12, %vm2250_vm11  ;;  %v2419_v18 = vsel %vm7134_vm6, %v9210_v23, %v2371_v37  ;;  %v2609_v55 = vmax.f32 %v2601_v47, %v7141_v61  ;;  %v7163_v20 = vsel %vm9211_vm1, -1e+30, %v9089_v25  ;;  %vm9213_vm11 = vcmp.eq.f32.partialorder %v9212_v41, %v6048_v43  ;;  %v9214_v12 = vld [vmem:[#allocation105_spill] sm:$0xff]  ;;  %v9221_v37 = vld [vmem:[#allocation104_spill] sm:$0xff] }
 0x80f   : > { %v7169_v60 = vsel %vm9213_vm11, -1e+30, %v9212_v41  ;;  %vm2274_vm9 = vmxor %vm7147_vm14, %vm8731_vm4  ;;  %2506 = vperm.xlu0 %3514, %v2419_v18   ;;  %v2600_v52 = vmax.f32 %v2592_v7, %v7158_v11  ;;  %v2599_v25 = vmax.f32 %v2591_v16, %v7163_v20  ;;  %vm9217_vm2 = vnez %v9093_v5  ;;  %v9218_v16 = vld [vmem:[#allocation77_spill] sm:$0xff]  ;;  %v9227_v41 = vld [vmem:[#allocation34_spill] sm:$0xff] }
 0x810   : > { %v2556_v30 = vmax.f32 %v7169_v60, %v9214_v12  ;;  %vm7186_vm7 = vmand %vm2266_vm13, %vm2274_vm9  ;;  %v7191_v19 = vmax.f32 %v2609_v55, %v7174_v2  ;;  %v7201_v18 = vsel %vm9217_vm2, -1e+30, %v5848_v22  ;;  %vm9219_vm10 = vcmp.eq.f32.partialorder %v9218_v16, %v5972_v27  ;;  %v9220_v55 = vld [vmem:[#allocation11_spill] sm:$0xff]  ;;  %v2580_v44 = vpop.permute.xlu2 %2579 }
 0x811   : > { %v7207_v7 = vsel %vm9219_vm10, -1e+30, %v9218_v16  ;;  %vm2338_vm13 = vmor %vm7147_vm14, %vm7186_vm7  ;;  %v2322_v38 = vsel %vm7186_vm7, %v9220_v55, %v6918_v8  ;;  %v2608_v5 = vmax.f32 %v2600_v52, %v7196_v24  ;;  %v2607_v22 = vmax.f32 %v2599_v25, %v7201_v18  ;;  %v9260_v23 = vld [vmem:[#allocation71_spill] sm:$0xff] }
 0x812   : > { %v2555_v27 = vmax.f32 %v7132_v45, %v9221_v37  ;;  %v7224_v47 = vsel %vm9222_vm8, -1e+30, %v9123_v50  ;;  %v7229_v34 = vsel %vm7004_vm5, -1e+30, %v9174_v53  ;;  %vm2354_vm3 = vmxor %vm2338_vm13, %vm8731_vm4  ;;  %v2596_v8 = vmax.f32 %v2556_v30, %v2580_v44  ;;  %v2578_v30 = vpop.permute.xlu0 %2577 }
 0x813   : > { %v2554_v1 = vmax.f32 %v7207_v7, %v9223_v26  ;;  %vm9224_vm12 = vcmp.eq.f32.partialorder %v9201_v54, %v9199_v46  ;;  %v7247_v50 = vmax.f32 %v2608_v5, %v7229_v34  ;;  %v7250_v53 = vmax.f32 %v2607_v22, %v7224_v47  ;;  %v2576_v12 = vpop.permute.xlu1 %2575  ;;  %v9235_v22 = vld [vmem:[#allocation55_spill] sm:$0xff] }
 0x814   : > { %vm7242_vm1 = vmand %vm9224_vm12, %vm2354_vm3  ;;  %v7255_v9 = vsel %vm7045_vm0, -1e+30, %v9182_v39  ;;  %vm2394_vm0 = vcmp.eq.f32.partialorder %v9228_v6, %v9199_v46  ;;  %v7274_v56 = vsel %vm7097_vm15, -1e+30, %v9192_v3  ;;  %v2595_v16 = vmax.f32 %v2555_v27, %v2578_v30 }
 0x815   : > { %vm2386_vm5 = vmor %vm2338_vm13, %vm7242_vm1  ;;  %v2370_v52 = vsel %vm7242_vm1, %v9227_v41, %v2322_v38  ;;  %v2604_v25 = vmax.f32 %v2596_v8, %v7255_v9  ;;  %9229 = vst [vmem:[#allocation80_spill] sm:$0xff] %v7274_v56  ;;  %v2594_v39 = vmax.f32 %v2554_v1, %v2576_v12  ;;  %2649 = vrot.lane.b32.xlu2 %v7250_v53, %s3640_s27  ;;  %v7291_v3 = vsel %vm7186_vm7, -1e+30, %v9200_v40  ;;  %v9241_v8 = vld [vmem:[#allocation49_spill] sm:$0xff]  ;;  %v9244_v12 = vld [vmem:[#allocation48_spill] sm:$0xff] }
 0x816   : > { %vm2402_vm11 = vmxor %vm2386_vm5, %vm8731_vm4  ;;  %vm9232_vm9 = vnez %v9121_v49  ;;  %v7296_v21 = vsel %vm7134_vm6, -1e+30, %v9198_v13  ;;  %v2603_v49 = vmax.f32 %v2595_v16, %v7291_v3  ;;  %vm9236_vm15 = vnez %v9128_v63  ;;  %v9242_v1 = vld [vmem:[#allocation45_spill] sm:$0xff] }
 0x817   : > { %vm7278_vm14 = vmand %vm2394_vm0, %vm2402_vm11  ;;  %v2612_v5 = vmax.f32 %v2604_v25, %v7274_v56  ;;  %v7286_v46 = vsel %vm9232_vm9, -1e+30, %v9119_v28  ;;  %9234 = vst [vmem:[#allocation41_spill] sm:$0xff] %v7296_v21  ;;  %2647 = vrot.lane.b32.xlu0 %v7057_v42, %s3640_s27  ;;  %v7311_v13 = vsel %vm9236_vm15, -1e+30, %v9126_v51  ;;  %vm9238_vm6 = vnez %v9142_v0  ;;  %v9240_v0 = vld [vmem:[#allocation46_spill] sm:$0xff] }
 0x818   : > { %9233 = vst [vmem:[#allocation39_spill] sm:$0xff] %v7286_v46  ;;  %v2418_v44 = vsel %vm7278_vm14, %v9235_v22, %v2370_v52  ;;  %v2602_v28 = vmax.f32 %v2594_v39, %v7286_v46  ;;  %v7316_v33 = vsel %vm7242_vm1, -1e+30, %v9201_v54  ;;  %v7323_v27 = vsel %vm9238_vm6, -1e+30, %v9136_v58  ;;  %v9257_v46 = vld [vmem:[#allocation70_spill] sm:$0xff] }
 0x819   : > { %2501 = vperm.xlu1 %3516, %v2418_v44   ;;  %v7306_v40 = vmax.f32 %v2612_v5, %v7296_v21  ;;  %9237 = vst [vmem:[#allocation43_spill] sm:$0xff] %v7311_v13  ;;  %v2611_v37 = vmax.f32 %v2603_v49, %v7316_v33  ;;  %v7328_v63 = vsel %vm7278_vm14, -1e+30, %v9228_v6  ;;  %vm8535_vm7 = vcmp.eq.f32.partialorder %v6958_v57, %v7057_v42  ;;  %v9245_v6 = vld [vmem:[#allocation47_spill] sm:$0xff]  ;;  %v9263_v22 = vld [vmem:[#allocation76_spill] sm:$0xff] }
 0x81a   : > { %v2610_v43 = vmax.f32 %v2602_v28, %v7311_v13  ;;  %9239 = vst [vmem:[#allocation42_spill] sm:$0xff] %v7323_v27  ;;  %v2630_v58 = vsel %vm8535_vm7, %v9240_v0, -1.0  ;;  %vm8533_vm2 = vcmp.eq.f32.partialorder %v7038_v15, %v7191_v19  ;;  %vm2621_vm10 = vcmp.eq.f32.partialorder %v6986_v14, %v7110_v17  ;;  %vm2678_vm5 = vmxor %vm8535_vm7, %vm8731_vm4 }
 0x81b   : > { %v7334_v54 = vmax.f32 %v2611_v37, %v7328_v63  ;;  %v2633_v26 = vsel %vm8533_vm2, %v9241_v8, -1.0  ;;  %v2629_v36 = vsel %vm2621_vm10, %v9242_v1, -1.0  ;;  %vm2677_vm13 = vmxor %vm2621_vm10, %vm8731_vm4  ;;  %vm2624_vm8 = vcmp.eq.f32.partialorder %v7071_v29, %v7247_v50 }
 0x81c   : > { %v7331_v51 = vmax.f32 %v2610_v43, %v7323_v27  ;;  %vm2623_vm3 = vcmp.eq.f32.partialorder %v7077_v10, %v7250_v53  ;;  %v9243_v52 = vmov 0   ;;  %v2632_v30 = vsel %vm2624_vm8, %v9244_v12, -1.0  ;;  %vm2680_vm12 = vmxor %vm2624_vm8, %vm8731_vm4  ;;  %v9246_v43 = vld [vmem:[#allocation53_spill] sm:$0xff] }
 0x81d   : > { %v2685_v25 = vsel %vm2677_vm13, 1, %v9243_v52  ;;  %v2631_v39 = vsel %vm2623_vm3, %v9245_v6, -1.0  ;;  %vm2679_vm1 = vmxor %vm2623_vm3, %vm8731_vm4  ;;  %v2688_v16 = vsel %vm2680_vm12, 1, %v9243_v52  ;;  %vm2627_vm0 = vcmp.eq.f32.partialorder %v7132_v45, %v7334_v54 }
 0x81e   : > { %2655 = vrot.lane.b32.xlu2 %v7331_v51, %s3640_s27  ;;  %v2687_v38 = vsel %vm2679_vm1, 1, %v9243_v52  ;;  %v2686_v5 = vsel %vm2678_vm5, 1, %v9243_v52  ;;  %vm2626_vm11 = vcmp.eq.f32.partialorder %v7207_v7, %v7331_v51  ;;  %vm2683_vm14 = vmxor %vm2627_vm0, %vm8731_vm4  ;;  %vm8532_vm6 = vcmp.eq.f32.partialorder %v7169_v60, %v7306_v40 }
 0x81f   : > { %2653 = vrot.lane.b32.xlu0 %v7191_v19, %s3640_s27  ;;  %vm2682_vm9 = vmxor %vm2626_vm11, %vm8731_vm4  ;;  %v2691_v44 = vsel %vm2683_vm14, 1, %v9243_v52  ;;  %v2636_v37 = vsel %vm8532_vm6, %v9246_v43, -1.0  ;;  %v9283_v14 = vmov 0 }
 0x820   : > { %vm2681_vm15 = vmxor %vm8533_vm2, %vm8731_vm4  ;;  %v2690_v28 = vsel %vm2682_vm9, 1, %v9243_v52 }
 0x821   : > { %2645 = vrot.lane.b32.xlu1 %v7110_v17, %s3640_s27  ;;  %v2689_v49 = vsel %vm2681_vm15, 1, %v9243_v52  ;;  %vm2684_vm13 = vmxor %vm8532_vm6, %vm8731_vm4 }
 0x826   : > { %2735 = vrot.lane.b32.xlu2 %v2630_v58, %s3640_s27  ;;  %v9247_v58 = vld [vmem:[#allocation52_spill] sm:$0xff] }
 0x827   : > { %2659 = vrot.lane.b32.xlu0 %v7306_v40, %s3640_s27 }
 0x829   : > { %2651 = vrot.lane.b32.xlu1 %v7247_v50, %s3640_s27 }
 0x82e   : > { %2741 = vrot.lane.b32.xlu2 %v2633_v26, %s3640_s27  ;;  %v2635_v26 = vsel %vm2627_vm0, %v9247_v58, -1.0 }
 0x82f   : > { %2733 = vrot.lane.b32.xlu0 %v2629_v36, %s3640_s27  ;;  %v2692_v36 = vsel %vm2684_vm13, 1, %v9243_v52 }
 0x831   : > { %2657 = vrot.lane.b32.xlu1 %v7334_v54, %s3640_s27 }
 0x836   : > { %2693 = vrot.lane.b32.xlu2 %v2685_v25, %s3640_s27  ;;  %v9248_v25 = vld [vmem:[#allocation50_spill] sm:$0xff] }
 0x837   : > { %2739 = vrot.lane.b32.xlu0 %v2632_v30, %s3640_s27  ;;  %v2634_v30 = vsel %vm2626_vm11, %v9248_v25, -1.0 }
 0x839   : > { %2737 = vrot.lane.b32.xlu1 %v2631_v39, %s3640_s27 }
 0x83e   : > { %2699 = vrot.lane.b32.xlu2 %v2688_v16, %s3640_s27 }
 0x83f   : > { %2697 = vrot.lane.b32.xlu0 %v2687_v38, %s3640_s27 }
 0x841   : > { %2695 = vrot.lane.b32.xlu1 %v2686_v5, %s3640_s27 }
 0x846   : > { %2705 = vrot.lane.b32.xlu2 %v2691_v44, %s3640_s27 }
 0x847   : > { %2703 = vrot.lane.b32.xlu0 %v2690_v28, %s3640_s27 }
 0x849   : > { %2701 = vrot.lane.b32.xlu1 %v2689_v49, %s3640_s27 }
 0x84e   : > { %2747 = vrot.lane.b32.xlu2 %v2636_v37, %s3640_s27  ;;  %v7456_v39 = vpop.permute.xlu2 %2481 }
 0x84f   : > { %2745 = vrot.lane.b32.xlu0 %v2635_v26, %s3640_s27  ;;  %9249 = vst [vmem:[#allocation28_spill] sm:$0xff] %v7456_v39 }
 0x851   : > { %2707 = vrot.lane.b32.xlu1 %v2692_v36, %s3640_s27 }
 0x856   : > { %2805 = vrot.lane.b32.xlu2 %v7110_v17, %s3641_s28  ;;  %v7462_v16 = vpop.permute.xlu2 %2496 }
 0x857   : > { %2809 = vrot.lane.b32.xlu0 %v7250_v53, %s3641_s28  ;;  %9250 = vst [vmem:[#allocation83_spill] sm:$0xff] %v7462_v16 }
 0x859   : > { %2743 = vrot.lane.b32.xlu1 %v2634_v30, %s3640_s27 }
 0x85b   : > { %v7468_v44 = vpop.permute.xlu1 %2471 }
 0x85c   : > { %9252 = vst [vmem:[#allocation79_spill] sm:$0xff] %v7468_v44 }
 0x85e   : > { %2811 = vrot.lane.b32.xlu2 %v7247_v50, %s3641_s28 }
 0x861   : > { %2807 = vrot.lane.b32.xlu1 %v7057_v42, %s3641_s28 }
 0x867   : > { %v7466_v38 = vpop.permute.xlu0 %2476 }
 0x868   : > { %9251 = vst [vmem:[#allocation25_spill] sm:$0xff] %v7466_v38 }
 0x869   : > { %2813 = vrot.lane.b32.xlu1 %v7191_v19, %s3641_s28 }
 0x86f   : > { %v2650_v5 = vpop.permute.xlu2 %2649  ;;  %v7470_v28 = vpop.permute.xlu0 %2491 }
 0x870   : > { %9253 = vst [vmem:[#allocation78_spill] sm:$0xff] %v7470_v28 }
 0x878   : > { %v2656_v49 = vpop.permute.xlu2 %2655  ;;  %v7474_v26 = vpop.permute.xlu1 %2486 }
 0x879   : > { %9254 = vst [vmem:[#allocation9_spill] sm:$0xff] %v7474_v26 }
 0x880   : > { %v7472_v37 = vpop.permute.xlu2 %2735 }
 0x881   : > { %v7476_v36 = vpop.permute.xlu0 %2506 }
 0x882   : > { %9255 = vst [vmem:[#allocation6_spill] sm:$0xff] %v7476_v36 }
 0x888   : > { %v7478_v30 = vpop.permute.xlu2 %2741 }
 0x889   : > { %v2648_v16 = vpop.permute.xlu0 %2647 }
 0x88b   : > { %v7480_v39 = vpop.permute.xlu1 %2501 }
 0x88c   : > { %9256 = vst [vmem:[#allocation17_spill] sm:$0xff] %v7480_v39 }
 0x890   : > { %v2694_v27 = vpop.permute.xlu2 %2693 }
 0x891   : > { %v2654_v13 = vpop.permute.xlu0 %2653  ;;  %vm2709_vm12 = vcmp.ne.s32.totalorder %v2694_v27, 0 }
 0x893   : > { %v2646_v38 = vpop.permute.xlu1 %2645 }
 0x894   : > { %vm2669_vm1 = vcmp.eq.f32.partialorder %v9257_v46, %v2646_v38 }
 0x895   : > { %vm7483_vm5 = vmand %vm2669_vm1, %vm2709_vm12 }
 0x896   : > { %v2765_v26 = vsel %vm7483_vm5, 1, %v9243_v52 }
 0x897   : > { %2773 = vrot.lane.b32.xlu1 %v2765_v26, %s3638_s24 }
 0x898   : > { %v2700_v36 = vpop.permute.xlu2 %2699 }
 0x899   : > { %v2660_v44 = vpop.permute.xlu0 %2659  ;;  %vm2712_vm14 = vcmp.ne.s32.totalorder %v2700_v36, 0 }
 0x89b   : > { %v2652_v39 = vpop.permute.xlu1 %2651 }
 0x89c   : > { %vm2672_vm9 = vcmp.eq.f32.partialorder %v9260_v23, %v2652_v39 }
 0x89d   : > { %vm7492_vm15 = vmand %vm2672_vm9, %vm2712_vm14 }
 0x89e   : > { %v2768_v46 = vsel %vm7492_vm15, 1, %v9243_v52 }
 0x89f   : > { %2779 = vrot.lane.b32.xlu1 %v2768_v46, %s3638_s24 }
 0x8a0   : > { %v2706_v38 = vpop.permute.xlu2 %2705 }
 0x8a1   : > { %v2734_v21 = vpop.permute.xlu0 %2733  ;;  %vm2715_vm13 = vcmp.ne.s32.totalorder %v2706_v38, 0  ;;  %v9266_v38 = vld [vmem:[#allocation73_spill] sm:$0xff] }
 0x8a2   : > { %vm2671_vm14 = vcmp.eq.f32.partialorder %v9266_v38, %v2650_v5  ;;  %v2757_v5 = vsel %vm7483_vm5, %v9242_v1, %v2734_v21 }
 0x8a3   : > { %v2658_v26 = vpop.permute.xlu1 %2657 }
 0x8a4   : > { %vm2675_vm12 = vcmp.eq.f32.partialorder %v9263_v22, %v2658_v26  ;;  %v9267_v22 = vld [vmem:[#allocation72_spill] sm:$0xff] }
 0x8a5   : > { %vm7501_vm1 = vmand %vm2675_vm12, %vm2715_vm13  ;;  %vm2670_vm13 = vcmp.eq.f32.partialorder %v9267_v22, %v2648_v16  ;;  %v9273_v22 = vld [vmem:[#allocation69_spill] sm:$0xff] }
 0x8a6   : > { %v2771_v23 = vsel %vm7501_vm1, 1, %v9243_v52 }
 0x8a7   : > { %2785 = vrot.lane.b32.xlu1 %v2771_v23, %s3638_s24 }
 0x8a9   : > { %v2740_v39 = vpop.permute.xlu0 %2739 }
 0x8ab   : > { %v2738_v41 = vpop.permute.xlu1 %2737 }
 0x8af   : > { %2819 = vrot.lane.b32.xlu1 %v7306_v40, %s3641_s28 }
 0x8b1   : > { %v2698_v46 = vpop.permute.xlu0 %2697 }
 0x8b2   : > { %vm2711_vm9 = vcmp.ne.s32.totalorder %v2698_v46, 0  ;;  %v9272_v46 = vld [vmem:[#allocation75_spill] sm:$0xff] }
 0x8b3   : > { %v2696_v55 = vpop.permute.xlu1 %2695  ;;  %vm7513_vm6 = vmand %vm2671_vm14, %vm2711_vm9  ;;  %vm2674_vm14 = vcmp.eq.f32.partialorder %v9272_v46, %v2656_v49  ;;  %v2760_v49 = vsel %vm7492_vm15, %v9244_v12, %v2740_v39 }
 0x8b4   : > { %vm2710_vm12 = vcmp.ne.s32.totalorder %v2696_v55, 0  ;;  %v2767_v23 = vsel %vm7513_vm6, 1, %v9243_v52  ;;  %v2759_v46 = vsel %vm7513_vm6, %v9245_v6, %v2738_v41 }
 0x8b5   : > { %vm7517_vm2 = vmand %vm2670_vm13, %vm2710_vm12  ;;  %2777 = vrot.lane.b32.xlu2 %v2767_v23, %s3638_s24  ;;  %vm2673_vm13 = vcmp.eq.f32.partialorder %v9273_v22, %v2654_v13  ;;  %v2748_v22 = vpop.permute.xlu2 %2747 }
 0x8b6   : > { %v2766_v55 = vsel %vm7517_vm2, 1, %v9243_v52 }
 0x8b7   : > { %2775 = vrot.lane.b32.xlu0 %v2766_v55, %s3638_s24  ;;  %2893 = vrot.lane.b32.xlu1 %v2757_v5, %s3640_s27 }
 0x8b9   : > { %v2704_v16 = vpop.permute.xlu0 %2703 }
 0x8ba   : > { %vm2714_vm9 = vcmp.ne.s32.totalorder %v2704_v16, 0  ;;  %v9278_v16 = vld [vmem:[#allocation74_spill] sm:$0xff] }
 0x8bb   : > { %v2702_v38 = vpop.permute.xlu1 %2701  ;;  %vm7535_vm7 = vmand %vm2674_vm14, %vm2714_vm9  ;;  %vm2676_vm14 = vcmp.eq.f32.partialorder %v9278_v16, %v2660_v44 }
 0x8bc   : > { %vm2713_vm12 = vcmp.ne.s32.totalorder %v2702_v38, 0  ;;  %v2770_v23 = vsel %vm7535_vm7, 1, %v9243_v52  ;;  %v2758_v38 = vsel %vm7517_vm2, %v9240_v0, %v7472_v37 }
 0x8bd   : > { %vm7539_vm5 = vmand %vm2673_vm13, %vm2713_vm12  ;;  %2783 = vrot.lane.b32.xlu2 %v2770_v23, %s3638_s24  ;;  %v7589_v23 = vpop.permute.xlu2 %2805 }
 0x8be   : > { %v2769_v13 = vsel %vm7539_vm5, 1, %v9243_v52  ;;  %v2761_v5 = vsel %vm7539_vm5, %v9241_v8, %v7478_v30 }
 0x8bf   : > { %2781 = vrot.lane.b32.xlu0 %v2769_v13, %s3638_s24  ;;  %2899 = vrot.lane.b32.xlu1 %v2760_v49, %s3640_s27 }
 0x8c3   : > { %v2708_v55 = vpop.permute.xlu1 %2707 }
 0x8c4   : > { %vm2716_vm9 = vcmp.ne.s32.totalorder %v2708_v55, 0 }
 0x8c5   : > { %vm7560_vm15 = vmand %vm2676_vm14, %vm2716_vm9  ;;  %2817 = vrot.lane.b32.xlu2 %v7334_v54, %s3641_s28  ;;  %v7593_v41 = vpop.permute.xlu2 %2811 }
 0x8c6   : > { %v2772_v39 = vsel %vm7560_vm15, 1, %v9243_v52 }
 0x8c7   : > { %2787 = vrot.lane.b32.xlu0 %v2772_v39, %s3638_s24 }
 0x8cb   : > { %v7570_v30 = vpop.permute.xlu1 %2743 }
 0x8cc   : > { %v2762_v44 = vsel %vm7535_vm7, %v9248_v25, %v7570_v30 }
 0x8cd   : > { %2897 = vrot.lane.b32.xlu2 %v2759_v46, %s3640_s27  ;;  %v2746_v46 = vpop.permute.xlu0 %2745 }
 0x8ce   : > { %v2763_v45 = vsel %vm7501_vm1, %v9247_v58, %v2746_v46 }
 0x8cf   : > { %2815 = vrot.lane.b32.xlu0 %v7331_v51, %s3641_s28 }
 0x8d3   : > { %v7587_v28 = vpop.permute.xlu1 %2807 }
 0x8d7   : > { %2895 = vrot.lane.b32.xlu0 %v2758_v38, %s3640_s27 }
 0x8db   : > { %v7591_v49 = vpop.permute.xlu1 %2813 }
 0x909   : > { %v2774_v26 = vpop.permute.xlu1 %2773 }
 0x90a   : > { %vm2789_vm6 = vcmp.ne.s32.totalorder %v2774_v26, 0  ;;  %v9287_v26 = vmov 0 }
 0x90b   : > { %vm7598_vm13 = vmor %vm2621_vm10, %vm2789_vm6 }
 0x90c   : > { %vm2837_vm2 = vmxor %vm7598_vm13, %vm8731_vm4 }
 0x90d   : > { %v2845_v56 = vsel %vm2837_vm2, 1, %v9243_v52 }
 0x90e   : > { %2853 = vrot.lane.b32.xlu0 %v2845_v56, %s3641_s28 }
 0x90f   : > { %v2778_v37 = vpop.permute.xlu2 %2777 }
 0x910   : > { %vm2791_vm12 = vcmp.ne.s32.totalorder %v2778_v37, 0 }
 0x911   : > { %v2780_v55 = vpop.permute.xlu1 %2779  ;;  %vm7610_vm5 = vmor %vm2623_vm3, %vm2791_vm12 }
 0x912   : > { %v9284_v14 = vsel %vm7610_vm5, 4294967295, %v9283_v14  ;;  %vm2792_vm10 = vcmp.ne.s32.totalorder %v2780_v55, 0  ;;  %vm2839_vm14 = vmxor %vm7610_vm5, %vm8731_vm4  ;;  %v2810_v55 = vpop.permute.xlu0 %2809 }
 0x913   : > { %vm7620_vm9 = vmor %vm2624_vm8, %vm2792_vm10  ;;  %v2847_v39 = vsel %vm2839_vm14, 1, %v9243_v52  ;;  %vm9292_vm14 = vcmp.eq.f32.partialorder %v6958_v57, %v7057_v42  ;;  %v9296_v57 = vmov 0 }
 0x914   : > { %vm2840_vm3 = vmxor %vm7620_vm9, %vm8731_vm4  ;;  %2857 = vrot.lane.b32.xlu1 %v2847_v39, %s3641_s28 }
 0x915   : > { %v2848_v10 = vsel %vm2840_vm3, 1, %v9243_v52 }
 0x916   : > { %2859 = vrot.lane.b32.xlu0 %v2848_v10, %s3641_s28  ;;  %v9293_v10 = vmov 0 }
 0x917   : > { %v2784_v38 = vpop.permute.xlu2 %2783 }
 0x918   : > { %vm2794_vm6 = vcmp.ne.s32.totalorder %v2784_v38, 0 }
 0x919   : > { %v2786_v29 = vpop.permute.xlu1 %2785  ;;  %vm7634_vm8 = vmor %vm2626_vm11, %vm2794_vm6 }
 0x91a   : > { %v9288_v26 = vsel %vm7634_vm8, 4294967295, %v9287_v26  ;;  %vm2795_vm2 = vcmp.ne.s32.totalorder %v2786_v29, 0  ;;  %vm2842_vm12 = vmxor %vm7634_vm8, %vm8731_vm4 }
 0x91b   : > { %9289 = vst [vmem:[#allocation14_spill] sm:$0xff] %v9288_v26  ;;  %vm7644_vm10 = vmor %vm2627_vm0, %vm2795_vm2  ;;  %v2850_v37 = vsel %vm2842_vm12, 1, %v9243_v52  ;;  %vm9295_vm2 = vcmp.eq.f32.partialorder %v7038_v15, %v7191_v19 }
 0x91c   : > { %vm2843_vm11 = vmxor %vm7644_vm10, %vm8731_vm4  ;;  %2863 = vrot.lane.b32.xlu1 %v2850_v37, %s3641_s28 }
 0x91d   : > { %v2851_v7 = vsel %vm2843_vm11, 1, %v9243_v52 }
 0x91e   : > { %2865 = vrot.lane.b32.xlu0 %v2851_v7, %s3641_s28 }
 0x91f   : > { %v2818_v7 = vpop.permute.xlu2 %2817 }
 0x924   : > { %2905 = vrot.lane.b32.xlu1 %v2763_v45, %s3640_s27 }
 0x926   : > { %2901 = vrot.lane.b32.xlu0 %v2761_v5, %s3640_s27  ;;  %v2764_v5 = vsel %vm7560_vm15, %v9246_v43, %v2748_v22  ;;  %v9299_v22 = vmov 0 }
 0x929   : > { %v2776_v39 = vpop.permute.xlu0 %2775 }
 0x92a   : > { %vm2790_vm0 = vcmp.ne.s32.totalorder %v2776_v39, 0 }
 0x92b   : > { %vm7663_vm3 = vmor %vm9292_vm14, %vm2790_vm0  ;;  %vm9298_vm0 = vcmp.eq.f32.partialorder %v7169_v60, %v7306_v40  ;;  %v2820_v60 = vpop.permute.xlu1 %2819 }
 0x92c   : > { %v9294_v10 = vsel %vm7663_vm3, 4294967295, %v9293_v10  ;;  %vm2838_vm6 = vmxor %vm7663_vm3, %vm8731_vm4 }
 0x92d   : > { %v2846_v36 = vsel %vm2838_vm6, 1, %v9243_v52 }
 0x92e   : > { %2855 = vrot.lane.b32.xlu2 %v2846_v36, %s3641_s28  ;;  %2907 = vrot.lane.b32.xlu0 %v2764_v5, %s3640_s27  ;;  %v2898_v36 = vpop.permute.xlu2 %2897 }
 0x931   : > { %v2782_v46 = vpop.permute.xlu0 %2781 }
 0x932   : > { %vm2793_vm1 = vcmp.ne.s32.totalorder %v2782_v46, 0  ;;  %v9301_v46 = vld [vmem:[#allocation89_spill] sm:$0xff] }
 0x933   : > { %vm7679_vm12 = vmor %vm9295_vm2, %vm2793_vm1  ;;  %v2894_v37 = vpop.permute.xlu1 %2893  ;;  %vm2829_vm1 = vcmp.eq.f32.partialorder %v9301_v46, %v7589_v23  ;;  %v9308_v46 = vld [vmem:[#allocation91_spill] sm:$0xff] }
 0x934   : > { %v9297_v57 = vsel %vm7679_vm12, 4294967295, %v9296_v57  ;;  %vm2841_vm11 = vmxor %vm7679_vm12, %vm8731_vm4  ;;  %v9389_v23 = vld [vmem:[#allocation55_spill] sm:$0xff] }
 0x935   : > { %v2849_v38 = vsel %vm2841_vm11, 1, %v9243_v52 }
 0x936   : > { %2861 = vrot.lane.b32.xlu2 %v2849_v38, %s3641_s28 }
 0x939   : > { %v2788_v27 = vpop.permute.xlu0 %2787 }
 0x93a   : > { %vm2796_vm15 = vcmp.ne.s32.totalorder %v2788_v27, 0 }
 0x93b   : > { %vm7691_vm14 = vmor %vm9298_vm0, %vm2796_vm15  ;;  %v2900_v39 = vpop.permute.xlu1 %2899 }
 0x93c   : > { %v9300_v22 = vsel %vm7691_vm14, 4294967295, %v9299_v22  ;;  %vm2844_vm6 = vmxor %vm7691_vm14, %vm8731_vm4 }
 0x93d   : > { %v2852_v15 = vsel %vm2844_vm6, 1, %v9243_v52 }
 0x93e   : > { %2867 = vrot.lane.b32.xlu2 %v2852_v15, %s3641_s28  ;;  %v9305_v15 = vld [vmem:[#allocation86_spill] sm:$0xff] }
 0x93f   : > { %vm2830_vm0 = vcmp.eq.f32.partialorder %v9305_v15, %v7587_v28  ;;  %v9314_v15 = vld [vmem:[#allocation87_spill] sm:$0xff] }
 0x941   : > { %v2816_v29 = vpop.permute.xlu0 %2815 }
 0x946   : > { %2903 = vrot.lane.b32.xlu2 %v2762_v44, %s3640_s27  ;;  %v9304_v44 = vld [vmem:[#allocation90_spill] sm:$0xff] }
 0x947   : > { %vm2831_vm7 = vcmp.eq.f32.partialorder %v9304_v44, %v2810_v55  ;;  %v9313_v44 = vld [vmem:[#allocation92_spill] sm:$0xff] }
 0x949   : > { %v2896_v45 = vpop.permute.xlu0 %2895 }
 0x980   : > { %v2854_v5 = vpop.permute.xlu0 %2853 }
 0x981   : > { %vm2869_vm2 = vcmp.ne.s32.totalorder %v2854_v5, 0 }
 0x982   : > { %vm7708_vm11 = vmand %vm2829_vm1, %vm2869_vm2  ;;  %vm2832_vm1 = vcmp.eq.f32.partialorder %v9308_v46, %v7593_v41 }
 0x983   : > { %v2925_v21 = vsel %vm7708_vm11, 1, %v9243_v52 }
 0x984   : > { %2933 = vrot.lane.b32.xlu2 %v2925_v21, %s3639_s26  ;;  %v9352_v21 = vld [vmem:[#allocation56_spill] sm:$0xff] }
 0x986   : > { %v2858_v30 = vpop.permute.xlu1 %2857 }
 0x987   : > { %vm2871_vm15 = vcmp.ne.s32.totalorder %v2858_v30, 0 }
 0x988   : > { %v2856_v27 = vpop.permute.xlu2 %2855  ;;  %vm7719_vm8 = vmand %vm2831_vm7, %vm2871_vm15  ;;  %v2860_v5 = vpop.permute.xlu0 %2859  ;;  %vm2834_vm15 = vcmp.eq.f32.partialorder %v9313_v44, %v2816_v29  ;;  %v9322_v44 = vld [vmem:[#allocation107_spill] sm:$0xff] }
 0x989   : > { %vm2870_vm6 = vcmp.ne.s32.totalorder %v2856_v27, 0  ;;  %v2927_v55 = vsel %vm7719_vm8, 1, %v9243_v52  ;;  %vm2872_vm14 = vcmp.ne.s32.totalorder %v2860_v5, 0  ;;  %v9356_v5 = vld [vmem:[#allocation19_spill] sm:$0xff] }
 0x98a   : > { %vm7725_vm2 = vmand %vm2830_vm0, %vm2870_vm6  ;;  %2937 = vrot.lane.b32.xlu0 %v2927_v55, %s3639_s26  ;;  %vm2833_vm6 = vcmp.eq.f32.partialorder %v9314_v15, %v7591_v49  ;;  %v9317_v55 = vld [vmem:[#allocation93_spill] sm:$0xff]  ;;  %v2917_v15 = vsel %vm7708_vm11, %v9242_v1, %v2894_v37  ;;  %v2919_v1 = vsel %vm7719_vm8, %v9245_v6, %v2898_v36 }
 0x98b   : > { %v2926_v28 = vsel %vm7725_vm2, 1, %v9243_v52  ;;  %vm7736_vm7 = vmand %vm2832_vm1, %vm2872_vm14  ;;  %vm2835_vm12 = vcmp.eq.f32.partialorder %v9317_v55, %v2818_v7 }
 0x98c   : > { %2935 = vrot.lane.b32.xlu1 %v2926_v28, %s3639_s26  ;;  %v2928_v41 = vsel %vm7736_vm7, 1, %v9243_v52  ;;  %v2920_v38 = vsel %vm7736_vm7, %v9244_v12, %v2900_v39  ;;  %vm3037_vm7 = vcmp.eq.f32.partialorder %v7062_v62, %v7110_v17  ;;  %v9331_v62 = vmov 0  ;;  %v9345_v39 = vld [vmem:[#allocation31_spill] sm:$0xff] }
 0x98d   : > { %2939 = vrot.lane.b32.xlu2 %v2928_v41, %s3639_s26  ;;  %v9357_v28 = vld [vmem:[#allocation63_spill] sm:$0xff]  ;;  %v9358_v41 = vld [vmem:[#allocation10_spill] sm:$0xff] }
 0x98e   : > { %v2864_v30 = vpop.permute.xlu1 %2863 }
 0x98f   : > { %vm2874_vm0 = vcmp.ne.s32.totalorder %v2864_v30, 0 }
 0x990   : > { %v2862_v27 = vpop.permute.xlu2 %2861  ;;  %vm7748_vm1 = vmand %vm2834_vm15, %vm2874_vm0  ;;  %v2866_v46 = vpop.permute.xlu0 %2865  ;;  %vm2836_vm0 = vcmp.eq.f32.partialorder %v9322_v44, %v2820_v60  ;;  %v2918_v60 = vsel %vm7725_vm2, %v9240_v0, %v2896_v45  ;;  %v9360_v44 = vld [vmem:[#allocation35_spill] sm:$0xff] }
 0x991   : > { %vm2873_vm14 = vcmp.ne.s32.totalorder %v2862_v27, 0  ;;  %v2930_v29 = vsel %vm7748_vm1, 1, %v9243_v52  ;;  %vm2875_vm3 = vcmp.ne.s32.totalorder %v2866_v46, 0 }
 0x992   : > { %vm7753_vm5 = vmand %vm2833_vm6, %vm2873_vm14  ;;  %2943 = vrot.lane.b32.xlu0 %v2930_v29, %s3639_s26 }
 0x993   : > { %v2929_v49 = vsel %vm7753_vm5, 1, %v9243_v52  ;;  %vm7764_vm15 = vmand %vm2835_vm12, %vm2875_vm3  ;;  %vm2965_vm3 = vcmp.eq.f32.partialorder %v7032_v4, %v7110_v17 }
 0x994   : > { %2941 = vrot.lane.b32.xlu1 %v2929_v49, %s3639_s26  ;;  %v2931_v7 = vsel %vm7764_vm15, 1, %v9243_v52 }
 0x995   : > { %2945 = vrot.lane.b32.xlu2 %v2931_v7, %s3639_s26 }
 0x996   : > { %v2906_v0 = vpop.permute.xlu1 %2905 }
 0x997   : > { %v2923_v12 = vsel %vm7764_vm15, %v9247_v58, %v2906_v0  ;;  %v9367_v0 = vld [vmem:[#allocation68_spill] sm:$0xff] }
 0x998   : > { %v2868_v30 = vpop.permute.xlu2 %2867  ;;  %v2902_v55 = vpop.permute.xlu0 %2901 }
 0x999   : > { %vm2876_vm6 = vcmp.ne.s32.totalorder %v2868_v30, 0  ;;  %v9359_v30 = vld [vmem:[#allocation97_spill] sm:$0xff] }
 0x99a   : > { %vm7774_vm14 = vmand %vm2836_vm0, %vm2876_vm6  ;;  %2997 = vrot.lane.b32.xlu0 %v2917_v15, %s3639_s26  ;;  %vm3077_vm0 = vcmp.eq.f32.partialorder %v7095_v48, %v7110_v17  ;;  %v9333_v48 = vmov 0  ;;  %v9361_v15 = vld [vmem:[#allocation29_spill] sm:$0xff] }
 0x99b   : > { %v2932_v46 = vsel %vm7774_vm14, 1, %v9243_v52  ;;  %v2921_v52 = vsel %vm7753_vm5, %v9241_v8, %v2902_v55  ;;  %v9362_v55 = vld [vmem:[#allocation51_spill] sm:$0xff] }
 0x99c   : > { %2947 = vrot.lane.b32.xlu1 %v2932_v46, %s3639_s26 }
 0x99d   : > { %2999 = vrot.lane.b32.xlu2 %v2918_v60, %s3639_s26 }
 0x9a0   : > { %v2904_v26 = vpop.permute.xlu2 %2903  ;;  %v2908_v37 = vpop.permute.xlu0 %2907 }
 0x9a1   : > { %v2922_v6 = vsel %vm7748_vm1, %v9248_v25, %v2904_v26  ;;  %v2924_v8 = vsel %vm7774_vm14, %v9246_v43, %v2908_v37  ;;  %v9372_v25 = vld [vmem:[#allocation30_spill] sm:$0xff] }
 0x9a2   : > { %3003 = vrot.lane.b32.xlu0 %v2920_v38, %s3639_s26 }
 0x9a4   : > { %3001 = vrot.lane.b32.xlu1 %v2919_v1, %s3639_s26 }
 0x9a5   : > { %3005 = vrot.lane.b32.xlu2 %v2921_v52, %s3639_s26 }
 0x9aa   : > { %3009 = vrot.lane.b32.xlu0 %v2923_v12, %s3639_s26  ;;  %v9368_v12 = vld [vmem:[#allocation12_spill] sm:$0xff] }
 0x9ac   : > { %3007 = vrot.lane.b32.xlu1 %v2922_v6, %s3639_s26 }
 0x9ad   : > { %3011 = vrot.lane.b32.xlu2 %v2924_v8, %s3639_s26  ;;  %v9370_v8 = vld [vmem:[#allocation100_spill] sm:$0xff] }
 0x9b2   : > { %3115 = vperm.xlu0 %3514, %v7057_v42  }
 0x9b4   : > { %3111 = vperm.xlu1 %3516, %v7110_v17  }
 0x9b5   : > { %3119 = vperm.xlu2 %3515, %v7250_v53  }
 0x9ba   : > { %3127 = vperm.xlu0 %3514, %v7191_v19  }
 0x9bc   : > { %3123 = vperm.xlu1 %3516, %v7247_v50  }
 0x9bd   : > { %3131 = vperm.xlu2 %3515, %v7331_v51  }
 0x9c2   : > { %3139 = vperm.xlu0 %3514, %v7306_v40  }
 0x9c4   : > { %3135 = vperm.xlu1 %3516, %v7334_v54  }
 0x9de   : > { %v2934_v58 = vpop.permute.xlu2 %2933 }
 0x9df   : > { %vm2949_vm5 = vcmp.ne.s32.totalorder %v2934_v58, 0 }
 0x9e0   : > { %vm2957_vm8 = vmor %vm7598_vm13, %vm2949_vm5 }
 0x9e1   : > { %vm2973_vm12 = vmxor %vm2957_vm8, %vm8731_vm4 }
 0x9e2   : > { %vm7827_vm11 = vmand %vm2965_vm3, %vm2973_vm12  ;;  %vm2968_vm3 = vcmp.eq.f32.partialorder %v7158_v11, %v7247_v50  ;;  %v9335_v11 = vmov 0 }
 0x9e3   : > { %vm3029_vm2 = vmor %vm2957_vm8, %vm7827_vm11 }
 0x9e4   : > { %vm3045_vm1 = vmxor %vm3029_vm2, %vm8731_vm4 }
 0x9e5   : > { %vm7836_vm15 = vmand %vm3037_vm7, %vm3045_vm1  ;;  %vm3040_vm1 = vcmp.eq.f32.partialorder %v7196_v24, %v7247_v50  ;;  %v9337_v24 = vmov 0 }
 0x9e6   : > { %vm3069_vm13 = vmor %vm3029_vm2, %vm7836_vm15 }
 0x9e7   : > { %vm3085_vm6 = vmxor %vm3069_vm13, %vm8731_vm4  ;;  %v2940_v4 = vpop.permute.xlu2 %2939 }
 0x9e8   : > { %vm7845_vm14 = vmand %vm3077_vm0, %vm3085_vm6  ;;  %vm2952_vm5 = vcmp.ne.s32.totalorder %v2940_v4, 0  ;;  %vm3080_vm6 = vcmp.eq.f32.partialorder %v7229_v34, %v7247_v50  ;;  %v9339_v34 = vmov 0 }
 0x9e9   : > { %vm2960_vm8 = vmor %vm7620_vm9, %vm2952_vm5 }
 0x9ea   : > { %vm2976_vm12 = vmxor %vm2960_vm8, %vm8731_vm4 }
 0x9eb   : > { %vm7854_vm2 = vmand %vm2968_vm3, %vm2976_vm12 }
 0x9ec   : > { %v9332_v62 = vsel %vm7854_vm2, 4294967295, %v9331_v62  ;;  %vm3032_vm7 = vmor %vm2960_vm8, %vm7854_vm2 }
 0x9ed   : > { %vm3048_vm13 = vmxor %vm3032_vm7, %vm8731_vm4 }
 0x9ee   : > { %vm7863_vm0 = vmand %vm3040_vm1, %vm3048_vm13  ;;  %vm2971_vm1 = vcmp.eq.f32.partialorder %v7291_v3, %v7334_v54  ;;  %v9341_v3 = vmov 0 }
 0x9ef   : > { %v9334_v48 = vsel %vm7863_vm0, 4294967295, %v9333_v48  ;;  %vm3072_vm9 = vmor %vm3032_vm7, %vm7863_vm0  ;;  %v2946_v17 = vpop.permute.xlu2 %2945 }
 0x9f0   : > { %vm3088_vm5 = vmxor %vm3072_vm9, %vm8731_vm4  ;;  %vm2955_vm3 = vcmp.ne.s32.totalorder %v2946_v17, 0 }
 0x9f1   : > { %vm7872_vm8 = vmand %vm3080_vm6, %vm3088_vm5  ;;  %vm3043_vm6 = vcmp.eq.f32.partialorder %v7316_v33, %v7334_v54 }
 0x9f2   : > { %v9336_v11 = vsel %vm7872_vm8, 4294967295, %v9335_v11  ;;  %vm2963_vm12 = vmor %vm7644_vm10, %vm2955_vm3  ;;  %vm3083_vm3 = vcmp.eq.f32.partialorder %v7328_v63, %v7334_v54  ;;  %v9344_v63 = vld [vmem:[#allocation20_spill] sm:$0xff] }
 0x9f3   : > { %vm2979_vm13 = vmxor %vm2963_vm12, %vm8731_vm4 }
 0x9f4   : > { %vm7881_vm7 = vmand %vm2971_vm1, %vm2979_vm13 }
 0x9f5   : > { %v9338_v24 = vsel %vm7881_vm7, 4294967295, %v9337_v24  ;;  %vm3035_vm9 = vmor %vm2963_vm12, %vm7881_vm7  ;;  %vm2966_vm7 = vcmp.eq.f32.partialorder %v7002_v35, %v7057_v42  ;;  %v9388_v35 = vld [vmem:[#allocation36_spill] sm:$0xff] }
 0x9f6   : > { %vm3051_vm5 = vmxor %vm3035_vm9, %vm8731_vm4 }
 0x9f7   : > { %vm7890_vm8 = vmand %vm3043_vm6, %vm3051_vm5  ;;  %v3000_v50 = vpop.permute.xlu2 %2999  ;;  %vm9343_vm6 = vnez %v9294_v10 }
 0x9f8   : > { %v9340_v34 = vsel %vm7890_vm8, 4294967295, %v9339_v34  ;;  %vm3075_vm10 = vmor %vm3035_vm9, %vm7890_vm8 }
 0x9f9   : > { %vm3091_vm1 = vmxor %vm3075_vm10, %vm8731_vm4  ;;  %vm3038_vm10 = vcmp.eq.f32.partialorder %v7021_v32, %v7057_v42 }
 0x9fa   : > { %vm7899_vm13 = vmand %vm3083_vm3, %vm3091_vm1 }
 0x9fb   : > { %v9342_v3 = vsel %vm7899_vm13, 4294967295, %v9341_v3 }
 0x9fc   : > { %v2938_v33 = vpop.permute.xlu0 %2937 }
 0x9fd   : > { %vm2951_vm1 = vcmp.ne.s32.totalorder %v2938_v33, 0 }
 0x9fe   : > { %v2936_v16 = vpop.permute.xlu1 %2935 }
 0x9ff   : > { %vm2950_vm12 = vcmp.ne.s32.totalorder %v2936_v16, 0  ;;  %v3006_v56 = vpop.permute.xlu2 %3005 }
 0xa00   : > { %vm2958_vm5 = vmor %vm9343_vm6, %vm2950_vm12  ;;  %vm3078_vm12 = vcmp.eq.f32.partialorder %v7043_v31, %v7057_v42 }
 0xa01   : > { %vm2974_vm9 = vmxor %vm2958_vm5, %vm8731_vm4 }
 0xa02   : > { %vm2982_vm8 = vmand %vm2966_vm7, %vm2974_vm9 }
 0xa03   : > { %vm3030_vm0 = vmor %vm2958_vm5, %vm2982_vm8  ;;  %v3022_v54 = vsel %vm2982_vm8, %v9344_v63, %v3000_v50  ;;  %vm9346_vm8 = vnez %v9284_v14  ;;  %v9355_v14 = vld [vmem:[#allocation5_spill] sm:$0xff]  ;;  %v9375_v50 = vld [vmem:[#allocation54_spill] sm:$0xff] }
 0xa04   : > { %vm3046_vm3 = vmxor %vm3030_vm0, %vm8731_vm4  ;;  %v7912_v45 = vpop.permute.xlu0 %2943  ;;  %v9383_v63 = vld [vmem:[#allocation80_spill] sm:$0xff] }
 0xa05   : > { %vm3054_vm13 = vmand %vm3038_vm10, %vm3046_vm3 }
 0xa06   : > { %vm3070_vm2 = vmor %vm3030_vm0, %vm3054_vm13  ;;  %v2942_v10 = vpop.permute.xlu1 %2941  ;;  %v3062_v36 = vsel %vm3054_vm13, %v9345_v39, %v3022_v54  ;;  %vm9349_vm0 = vnez %v9297_v57  ;;  %v9386_v39 = vld [vmem:[#allocation34_spill] sm:$0xff] }
 0xa07   : > { %vm3086_vm7 = vmxor %vm3070_vm2, %vm8731_vm4  ;;  %vm2953_vm6 = vcmp.ne.s32.totalorder %v2942_v10, 0  ;;  %v7924_v32 = vpop.permute.xlu2 %3011  ;;  %vm2969_vm2 = vcmp.eq.f32.partialorder %v7118_v59, %v7191_v19 }
 0xa08   : > { %vm7920_vm5 = vmor %vm9346_vm8, %vm2951_vm1  ;;  %vm3109_vm8 = vcmp.eq.s32.totalorder %v9356_v5, 2 }
 0xa09   : > { %vm3094_vm9 = vmand %vm3078_vm12, %vm3086_vm7  ;;  %vm1699_vm12 = vcmp.eq.s32.totalorder %v9356_v5, 0  ;;  %vm3041_vm7 = vcmp.eq.f32.partialorder %v7141_v61, %v7191_v19 }
 0xa0a   : > { %vm7928_vm10 = vmor %vm9349_vm0, %vm2953_vm6  ;;  %v3102_v31 = vsel %vm3094_vm9, %v9352_v21, %v3062_v36  ;;  %v1734_v29 = vsel %vm1699_vm12, %v9357_v28, -1e+30  ;;  %vm2428_vm9 = vcmp.eq.s32.totalorder %v9356_v5, 1  ;;  %v1737_v26 = vsel %vm1699_vm12, %v9367_v0, -1e+30  ;;  %v9400_v28 = vld [vmem:[#allocation95_spill] sm:$0xff] }
 0xa0b   : > { %vm2977_vm13 = vmxor %vm7928_vm10, %vm8731_vm4  ;;  %3157 = vperm.xlu1 %3516, %v3102_v31   ;;  %v2463_v61 = vsel %vm2428_vm9, %v9359_v30, %v1734_v29  ;;  %v2466_v58 = vsel %vm2428_vm9, %v9370_v8, %v1737_v26  ;;  %v9391_v31 = vld [vmem:[#allocation41_spill] sm:$0xff]  ;;  %v9402_v30 = vld [vmem:[#allocation24_spill] sm:$0xff] }
 0xa0c   : > { %vm7938_vm3 = vmand %vm2969_vm2, %vm2977_vm13  ;;  %v2998_v59 = vpop.permute.xlu0 %2997  ;;  %vm3081_vm2 = vcmp.eq.f32.partialorder %v7174_v2, %v7191_v19  ;;  %v9364_v2 = vld [vmem:[#allocation58_spill] sm:$0xff]  ;;  %v9411_v26 = vld [vmem:[#allocation96_spill] sm:$0xff] }
 0xa0d   : > { %vm3033_vm1 = vmor %vm7928_vm10, %vm7938_vm3  ;;  %v3025_v57 = vsel %vm7938_vm3, %v9355_v14, %v3006_v56  ;;  %v3021_v7 = vsel %vm7827_vm11, %v9358_v41, %v2998_v59  ;;  %vm9363_vm3 = vcmask 23552   ;;  %v9397_v14 = vld [vmem:[#allocation61_spill] sm:$0xff]  ;;  %v9401_v41 = vld [vmem:[#allocation99_spill] sm:$0xff] }
 0xa0e   : > { %vm3049_vm6 = vmxor %vm3033_vm1, %vm8731_vm4  ;;  %v2948_v49 = vpop.permute.xlu1 %2947  ;;  %v3061_v46 = vsel %vm7836_vm15, %v9361_v15, %v3021_v7  ;;  %vm2967_vm15 = vcmp.eq.f32.partialorder %v7163_v20, %v7250_v53  ;;  %v9403_v15 = vld [vmem:[#allocation43_spill] sm:$0xff] }
 0xa0f   : > { %vm3057_vm0 = vmand %vm3041_vm7, %vm3049_vm6  ;;  %v3120_v60 = vpop.permute.xlu2 %3119  ;;  %v3101_v38 = vsel %vm7845_vm14, %v9362_v55, %v3061_v46  ;;  %vm3039_vm6 = vcmp.eq.f32.partialorder %v7201_v18, %v7250_v53  ;;  %v9371_v18 = vld [vmem:[#allocation18_spill] sm:$0xff] }
 0xa10   : > { %vm3073_vm10 = vmor %vm3033_vm1, %vm3057_vm0  ;;  %v3065_v27 = vsel %vm3057_vm0, %v9360_v44, %v3025_v57  ;;  %v3144_v1 = vsel %vm3109_vm8, %v3120_v60, %v2463_v61  ;;  %3152 = vperm.xlu2 %3515, %v3101_v38   ;;  %v9398_v57 = vld [vmem:[#allocation39_spill] sm:$0xff]  ;;  %v9406_v60 = vld [vmem:[#allocation33_spill] sm:$0xff] }
 0xa11   : > { %vm3089_vm13 = vmxor %vm3073_vm10, %vm8731_vm4  ;;  %3201 = vst.msk [vmem:[%s4087_s25 + $0x10] sm:$0xff] %vm9363_vm3, %v3144_v1  ;;  %vm3079_vm3 = vcmp.eq.f32.partialorder %v7224_v47, %v7250_v53  ;;  %v9381_v47 = vld [vmem:[#allocation57_spill] sm:$0xff]  ;;  %v9407_v38 = vld [vmem:[#allocation42_spill] sm:$0xff] }
 0xa12   : > { %vm3097_vm11 = vmand %vm3081_vm2, %vm3089_vm13  ;;  %vm9369_vm2 = vnez %v9332_v62  ;;  %vm2956_vm13 = vcmp.ne.s32.totalorder %v2948_v49, 0  ;;  %v9374_v62 = vld [vmem:[#allocation32_spill] sm:$0xff]  ;;  %v9408_v1 = vld [vmem:[#allocation65_spill] sm:$0xff] }
 0xa13   : > { %vm2975_vm1 = vmxor %vm7920_vm5, %vm8731_vm4  ;;  %v3105_v19 = vsel %vm3097_vm11, %v9364_v2, %v3065_v27  ;;  %vm9373_vm11 = vnez %v9334_v48  ;;  %v1736_v2 = vsel %vm1699_vm12, %v9408_v1, -1e+30 }
 0xa14   : > { %vm7984_vm7 = vmand %vm2967_vm15, %vm2975_vm1  ;;  %3172 = vperm.xlu1 %3516, %v3105_v19   ;;  %v3004_v20 = vpop.permute.xlu0 %3003  ;;  %vm9376_vm1 = vnez %v9336_v11  ;;  %v9409_v19 = vld [vmem:[#allocation59_spill] sm:$0xff] }
 0xa15   : > { %vm3031_vm14 = vmor %vm7920_vm5, %vm7984_vm7  ;;  %v3024_v6 = vsel %vm9369_vm2, %v9368_v12, %v3004_v20  ;;  %v9410_v20 = vld [vmem:[#allocation62_spill] sm:$0xff]  ;;  %v9412_v12 = vld [vmem:[#allocation101_spill] sm:$0xff] }
 0xa16   : > { %vm3047_vm0 = vmxor %vm3031_vm14, %vm8731_vm4  ;;  %v3002_v37 = vpop.permute.xlu1 %3001  ;;  %v3064_v4 = vsel %vm9373_vm11, %v9372_v25, %v3024_v6  ;;  %v1735_v0 = vsel %vm1699_vm12, %v9410_v20, -1e+30 }
 0xa17   : > { %vm3055_vm10 = vmand %vm3039_vm6, %vm3047_vm0  ;;  %v3023_v43 = vsel %vm7984_vm7, %v9371_v18, %v3002_v37  ;;  %v3132_v13 = vpop.permute.xlu2 %3131  ;;  %v3104_v33 = vsel %vm9376_vm1, %v9375_v50, %v3064_v4  ;;  %vm9378_vm6 = vnez %v9300_v22  ;;  %v9382_v22 = vld [vmem:[#allocation15_spill] sm:$0xff]  ;;  %v2465_v37 = vsel %vm2428_vm9, %v9411_v26, %v1736_v2  ;;  %v9416_v4 = vld [vmem:[#allocation64_spill] sm:$0xff] }
 0xa18   : > { %vm3071_vm5 = vmor %vm3031_vm14, %vm3055_vm10  ;;  %v3063_v17 = vsel %vm3055_vm10, %v9374_v62, %v3023_v43  ;;  %v3147_v16 = vsel %vm3109_vm8, %v3132_v13, %v2466_v58  ;;  %3167 = vperm.xlu2 %3515, %v3104_v33   ;;  %vm9377_vm14 = vcmask 23552   ;;  %vm2972_vm10 = vcmp.eq.f32.partialorder %v7255_v9, %v7306_v40  ;;  %v9384_v9 = vld [vmem:[#allocation11_spill] sm:$0xff]  ;;  %v9417_v62 = vld [vmem:[#allocation98_spill] sm:$0xff] }
 0xa19   : > { %vm3087_vm15 = vmxor %vm3071_vm5, %vm8731_vm4  ;;  %3204 = vst.msk [vmem:[%s4087_s25 + $0x28] sm:$0xff] %vm9377_vm14, %v3147_v16  ;;  %v2464_v6 = vsel %vm2428_vm9, %v9412_v12, %v1735_v0  ;;  %v9415_v43 = vld [vmem:[#allocation67_spill] sm:$0xff]  ;;  %v1738_v13 = vsel %vm1699_vm12, %v9416_v4, -1e+30  ;;  %v9418_v33 = vld [vmem:[#allocation102_spill] sm:$0xff] }
 0xa1a   : > { %vm3095_vm7 = vmand %vm3079_vm3, %vm3087_vm15  ;;  %vm9385_vm15 = vnez %v9338_v24  ;;  %v9392_v24 = vld [vmem:[#allocation14_spill] sm:$0xff]  ;;  %v1739_v25 = vsel %vm1699_vm12, %v9415_v43, -1e+30  ;;  %v2467_v16 = vsel %vm2428_vm9, %v9418_v33, %v1738_v13 }
 0xa1b   : > { %vm8023_vm0 = vmor %vm9378_vm6, %vm2956_vm13  ;;  %v3103_v53 = vsel %vm3095_vm7, %v9381_v47, %v3063_v17  ;;  %vm3044_vm13 = vcmp.eq.f32.partialorder %v9383_v63, %v7306_v40  ;;  %vm9387_vm7 = vnez %v9340_v34  ;;  %vm2954_vm6 = vcmp.ne.s32.totalorder %v7912_v45, 0  ;;  %v9396_v45 = vld [vmem:[#allocation60_spill] sm:$0xff]  ;;  %v9434_v0 = vld [vmem:[#allocation78_spill] sm:$0xff] }
 0xa1c   : > { %vm2980_vm2 = vmxor %vm8023_vm0, %vm8731_vm4  ;;  %3162 = vperm.xlu0 %3514, %v3103_v53   ;;  %v3010_v56 = vpop.permute.xlu0 %3009  ;;  %v2468_v17 = vsel %vm2428_vm9, %v9417_v62, %v1739_v25  ;;  %v9437_v25 = vld [vmem:[#allocation28_spill] sm:$0xff] }
 0xa1d   : > { %vm2988_vm5 = vmand %vm2972_vm10, %vm2980_vm2  ;;  %v3027_v10 = vsel %vm9385_vm15, %v9384_v9, %v3010_v56  ;;  %vm3084_vm10 = vcmp.eq.f32.partialorder %v9391_v31, %v7306_v40  ;;  %v9399_v40 = vld [vmem:[#allocation66_spill] sm:$0xff]  ;;  %v9422_v56 = vld [vmem:[#allocation79_spill] sm:$0xff] }
 0xa1e   : > { %vm3036_vm11 = vmor %vm8023_vm0, %vm2988_vm5  ;;  %v3028_v11 = vsel %vm2988_vm5, %v9382_v22, %v7924_v32  ;;  %v3008_v54 = vpop.permute.xlu1 %3007  ;;  %v3067_v36 = vsel %vm9387_vm7, %v9386_v39, %v3027_v10  ;;  %vm9390_vm0 = vnez %v9342_v3  ;;  %v1733_v3 = vsel %vm1699_vm12, %v9397_v14, -1e+30  ;;  %v9421_v22 = vld [vmem:[#allocation26_spill] sm:$0xff] }
 0xa1f   : > { %vm3052_vm3 = vmxor %vm3036_vm11, %vm8731_vm4  ;;  %v3107_v21 = vsel %vm9390_vm0, %v9389_v23, %v3067_v36  ;;  %v1732_v59 = vsel %vm1699_vm12, %v9399_v40, -1e+30  ;;  %v2462_v29 = vsel %vm2428_vm9, %v9400_v28, %v1733_v3  ;;  %vm9404_vm0 = vcmask 23552  }
 0xa20   : > { %vm3060_vm1 = vmand %vm3044_vm13, %vm3052_vm3  ;;  %3182 = vperm.xlu2 %3515, %v3107_v21   ;;  %vm9393_vm13 = vnez %v9392_v24  ;;  %v2461_v7 = vsel %vm2428_vm9, %v9401_v41, %v1732_v59  ;;  %v9425_v21 = vld [vmem:[#allocation9_spill] sm:$0xff]  ;;  %v9428_v59 = vld [vmem:[#allocation8_spill] sm:$0xff] }
 0xa21   : > { %vm3076_vm14 = vmor %vm3036_vm11, %vm3060_vm1  ;;  %v3068_v32 = vsel %vm3060_vm1, %v9388_v35, %v3028_v11  ;;  %vm2970_vm11 = vcmp.eq.f32.partialorder %v9398_v57, %v7331_v51  ;;  %v1780_v11 = vsel %vm1699_vm12, %v9421_v22, -1.0  ;;  %v9426_v57 = vld [vmem:[#allocation40_spill] sm:$0xff]  ;;  %v1781_v28 = vsel %vm1699_vm12, %v9428_v59, -1.0 }
 0xa22   : > { %vm3092_vm2 = vmxor %vm3076_vm14, %vm8731_vm4  ;;  %vm3042_vm14 = vcmp.eq.f32.partialorder %v9403_v15, %v7331_v51  ;;  %v2509_v63 = vsel %vm2428_vm9, %v9422_v56, %v1780_v11  ;;  %v1786_v40 = vsel %vm1699_vm12, %v9426_v57, -1.0 }
 0xa23   : > { %vm3100_vm5 = vmand %vm3084_vm10, %vm3092_vm2 }
 0xa24   : > { %vm8056_vm3 = vmor %vm9393_vm13, %vm2954_vm6  ;;  %v3108_v42 = vsel %vm3100_vm5, %v9396_v45, %v3068_v32  ;;  %v3116_v49 = vpop.permute.xlu0 %3115  ;;  %vm3082_vm13 = vcmp.eq.f32.partialorder %v9407_v38, %v7331_v51  ;;  %v9423_v32 = vld [vmem:[#allocation7_spill] sm:$0xff] }
 0xa25   : > { %vm2978_vm15 = vmxor %vm8056_vm3, %vm8731_vm4  ;;  %3187 = vperm.xlu1 %3516, %v3108_v42   ;;  %v3143_v27 = vsel %vm3109_vm8, %v3116_v49, %v2462_v29  ;;  %v1783_v23 = vsel %vm1699_vm12, %v9423_v32, -1.0  ;;  %v9429_v29 = vld [vmem:[#allocation17_spill] sm:$0xff] }
 0xa26   : > { %vm2986_vm1 = vmand %vm2970_vm11, %vm2978_vm15  ;;  %v3112_v44 = vpop.permute.xlu1 %3111  ;;  %3200 = vst.msk [vmem:[%s4087_s25 + $0x8] sm:$0xff] %vm9404_vm0, %v3143_v27  ;;  %v2512_v31 = vsel %vm2428_vm9, %v9425_v21, %v1783_v23  ;;  %v2515_v49 = vsel %vm2428_vm9, %v9429_v29, %v1786_v40 }
 0xa27   : > { %vm3034_vm7 = vmor %vm8056_vm3, %vm2986_vm1  ;;  %v3026_v61 = vsel %vm2986_vm1, %v9402_v30, %v3008_v54  ;;  %v3142_v46 = vsel %vm3109_vm8, %v3112_v44, %v2461_v7  ;;  %v9430_v7 = vld [vmem:[#allocation25_spill] sm:$0xff] }
 0xa28   : > { %vm3050_vm6 = vmxor %vm3034_vm7, %vm8731_vm4  ;;  %v2510_v30 = vsel %vm2428_vm9, %v9430_v7, %v1781_v28 }
 0xa29   : > { %vm3058_vm10 = vmand %vm3042_vm14, %vm3050_vm6 }
 0xa2a   : > { %vm9405_vm2 = vmmov %vm9404_vm0  ;;  %v3066_v55 = vsel %vm3058_vm10, %v9406_v60, %v3026_v61 }
 0xa2b   : > { %3199 = vst.msk [vmem:[%s4087_s25] sm:$0xff] %vm9405_vm2, %v3142_v46  ;;  %vm3074_vm5 = vmor %vm3034_vm7, %vm3058_vm10 }
 0xa2c   : > { %vm3090_vm3 = vmxor %vm3074_vm5, %vm8731_vm4  ;;  %v3128_v51 = vpop.permute.xlu0 %3127 }
 0xa2d   : > { %vm3098_vm11 = vmand %vm3082_vm13, %vm3090_vm3  ;;  %v3146_v58 = vsel %vm3109_vm8, %v3128_v51, %v2465_v37 }
 0xa2e   : > { %v3106_v52 = vsel %vm3098_vm11, %v9409_v19, %v3066_v55  ;;  %v3124_v8 = vpop.permute.xlu1 %3123  ;;  %vm9413_vm4 = vmmov %vm9404_vm0 }
 0xa2f   : > { %3177 = vperm.xlu0 %3514, %v3106_v52   ;;  %v3145_v18 = vsel %vm3109_vm8, %v3124_v8, %v2464_v6  ;;  %3203 = vst.msk [vmem:[%s4087_s25 + $0x20] sm:$0xff] %vm9413_vm4, %v3146_v58  ;;  %vm9414_vm15 = vmmov %vm9404_vm0  ;;  %v9433_v52 = vld [vmem:[#allocation84_spill] sm:$0xff] }
 0xa30   : > { %3202 = vst.msk [vmem:[%s4087_s25 + $0x18] sm:$0xff] %vm9414_vm15, %v3145_v18  ;;  %vm9419_vm1 = vmmov %vm9404_vm0  ;;  %v1784_v20 = vsel %vm1699_vm12, %v9433_v52, -1.0  ;;  %v9435_v18 = vld [vmem:[#allocation37_spill] sm:$0xff] }
 0xa31   : > { %vm9420_vm7 = vmmov %vm9404_vm0  ;;  %v2513_v26 = vsel %vm2428_vm9, %v9434_v0, %v1784_v20  ;;  %v1782_v43 = vsel %vm1699_vm12, %v9435_v18, -1.0 }
 0xa32   : > { %vm9424_vm6 = vmmov %vm9404_vm0  ;;  %v2511_v4 = vsel %vm2428_vm9, %v9437_v25, %v1782_v43 }
 0xa33   : > { %vm9427_vm10 = vmmov %vm9419_vm1 }
 0xa34   : > { %v3140_v50 = vpop.permute.xlu0 %3139  ;;  %vm9431_vm13 = vmmov %vm9419_vm1 }
 0xa35   : > { %v3149_v47 = vsel %vm3109_vm8, %v3140_v50, %v2468_v17  ;;  %vm9432_vm3 = vmmov %vm9419_vm1 }
 0xa36   : > { %v3136_v48 = vpop.permute.xlu1 %3135  ;;  %3206 = vst.msk [vmem:[%s4087_s25 + $0x38] sm:$0xff] %vm9419_vm1, %v3149_v47  ;;  %vm9436_vm4 = vmmov %vm9419_vm1 }
 0xa37   : > { %v3148_v53 = vsel %vm3109_vm8, %v3136_v48, %v2467_v16  ;;  %v9438_v48 = vld [vmem:[#allocation27_spill] sm:$0xff] }
 0xa38   : > { %3205 = vst.msk [vmem:[%s4087_s25 + $0x30] sm:$0xff] %vm9420_vm7, %v3148_v53  ;;  %v1787_v47 = vsel %vm1699_vm12, %v9438_v48, -1.0  ;;  %v9439_v53 = vld [vmem:[#allocation6_spill] sm:$0xff] }
 0xa39   : > { %v2516_v22 = vsel %vm2428_vm9, %v9439_v53, %v1787_v47 }
 0xa6a   : > { %v3153_v54 = vpop.permute.xlu2 %3152 }
 0xa6b   : > { %v3190_v9 = vsel %vm3109_vm8, %v3153_v54, %v2509_v63 }
 0xa6c   : > { %vm3418_vm14 = vcmp.lt.s32.totalorder %v3190_v9, 0  ;;  %v3419_v10 = vceil.f32 %v3190_v9  ;;  %v3420_v39 = vfloor.f32 %v3190_v9 }
 0xa6e   : > { %v3421_v36 = vsel %vm3418_vm14, %v3419_v10, %v3420_v39  ;;  %vm9440_vm14 = vmmov %vm9419_vm1  ;;  %v9441_v39 = vld [vmem:[#allocation94_spill] sm:$0xff] }
 0xa6f   : > { %v3422_v35 = vcvt.f32.s32 %v3421_v36  ;;  %v1785_v36 = vsel %vm1699_vm12, %v9441_v39, -1.0 }
 0xa71   : > { %3215 = vst.msk [vmem:[%s4076_s21] sm:$0xff] %vm9424_vm6, %v3422_v35  ;;  %v9442_v35 = vld [vmem:[#allocation83_spill] sm:$0xff] }
 0xa72   : > { %v3168_v24 = vpop.permute.xlu2 %3167  ;;  %v2514_v32 = vsel %vm2428_vm9, %v9442_v35, %v1785_v36 }
 0xa73   : > { %v3193_v34 = vsel %vm3109_vm8, %v3168_v24, %v2512_v31 }
 0xa74   : > { %vm3433_vm0 = vcmp.lt.s32.totalorder %v3193_v34, 0  ;;  %v3434_v45 = vceil.f32 %v3193_v34  ;;  %v3435_v42 = vfloor.f32 %v3193_v34 }
 0xa76   : > { %v3436_v14 = vsel %vm3433_vm0, %v3434_v45, %v3435_v42  ;;  %vm9443_vm0 = vmmov %vm9419_vm1 }
 0xa77   : > { %v3437_v3 = vcvt.f32.s32 %v3436_v14 }
 0xa79   : > { %3218 = vst.msk [vmem:[%s4076_s21 + $0x18] sm:$0xff] %vm9427_vm10, %v3437_v3 }
 0xa7a   : > { %v3183_v41 = vpop.permute.xlu2 %3182 }
 0xa7b   : > { %v3196_v44 = vsel %vm3109_vm8, %v3183_v41, %v2515_v49 }
 0xa7c   : > { %vm3448_vm2 = vcmp.lt.s32.totalorder %v3196_v44, 0  ;;  %v3449_v15 = vceil.f32 %v3196_v44  ;;  %v3450_v46 = vfloor.f32 %v3196_v44 }
 0xa7d   : > { %v3158_v61 = vpop.permute.xlu1 %3157 }
 0xa7e   : > { %v3191_v27 = vsel %vm3109_vm8, %v3158_v61, %v2510_v30  ;;  %v3451_v38 = vsel %vm3448_vm2, %v3449_v15, %v3450_v46 }
 0xa7f   : > { %vm3423_vm5 = vcmp.lt.s32.totalorder %v3191_v27, 0  ;;  %v3424_v60 = vceil.f32 %v3191_v27  ;;  %v3425_v55 = vfloor.f32 %v3191_v27  ;;  %v3452_v2 = vcvt.f32.s32 %v3451_v38 }
 0xa81   : > { %v3426_v1 = vsel %vm3423_vm5, %v3424_v60, %v3425_v55  ;;  %3221 = vst.msk [vmem:[%s4076_s21 + $0x30] sm:$0xff] %vm9431_vm13, %v3452_v2 }
 0xa82   : > { %v3427_v19 = vcvt.f32.s32 %v3426_v1 }
 0xa84   : > { %3216 = vst.msk [vmem:[%s4076_s21 + $0x8] sm:$0xff] %vm9432_vm3, %v3427_v19 }
 0xa86   : > { %v3173_v37 = vpop.permute.xlu1 %3172 }
 0xa87   : > { %v3194_v51 = vsel %vm3109_vm8, %v3173_v37, %v2513_v26 }
 0xa88   : > { %vm3438_vm11 = vcmp.lt.s32.totalorder %v3194_v51, 0  ;;  %v3439_v12 = vceil.f32 %v3194_v51  ;;  %v3440_v6 = vfloor.f32 %v3194_v51 }
 0xa8a   : > { %v3441_v8 = vsel %vm3438_vm11, %v3439_v12, %v3440_v6 }
 0xa8b   : > { %v3442_v58 = vcvt.f32.s32 %v3441_v8 }
 0xa8d   : > { %3219 = vst.msk [vmem:[%s4076_s21 + $0x20] sm:$0xff] %vm9436_vm4, %v3442_v58 }
 0xa8e   : > { %v3163_v13 = vpop.permute.xlu0 %3162 }
 0xa8f   : > { %v3192_v62 = vsel %vm3109_vm8, %v3163_v13, %v2511_v4 }
 0xa90   : > { %vm3428_vm15 = vcmp.lt.s32.totalorder %v3192_v62, 0  ;;  %v3429_v17 = vceil.f32 %v3192_v62  ;;  %v3430_v50 = vfloor.f32 %v3192_v62 }
 0xa92   : > { %v3431_v33 = vsel %vm3428_vm15, %v3429_v17, %v3430_v50 }
 0xa93   : > { %v3432_v16 = vcvt.f32.s32 %v3431_v33 }
 0xa95   : > { %3217 = vst.msk [vmem:[%s4076_s21 + $0x10] sm:$0xff] %vm9419_vm1, %v3432_v16 }
 0xa97   : > { %v3188_v11 = vpop.permute.xlu1 %3187 }
 0xa98   : > { %v3197_v56 = vsel %vm3109_vm8, %v3188_v11, %v2516_v22 }
 0xa99   : > { %vm3453_vm7 = vcmp.lt.s32.totalorder %v3197_v56, 0  ;;  %v3454_v63 = vceil.f32 %v3197_v56  ;;  %v3455_v54 = vfloor.f32 %v3197_v56 }
 0xa9b   : > { %v3456_v9 = vsel %vm3453_vm7, %v3454_v63, %v3455_v54 }
 0xa9c   : > { %v3457_v10 = vcvt.f32.s32 %v3456_v9 }
 0xa9e   : > { %3222 = vst.msk [vmem:[%s4076_s21 + $0x38] sm:$0xff] %vm9440_vm14, %v3457_v10 }
 0xaa1   : > { %v3178_v23 = vpop.permute.xlu0 %3177 }
 0xaa2   : > { %v3195_v21 = vsel %vm3109_vm8, %v3178_v23, %v2514_v32 }
 0xaa3   : > { %vm3443_vm6 = vcmp.lt.s32.totalorder %v3195_v21, 0  ;;  %v3444_v31 = vceil.f32 %v3195_v21  ;;  %v3445_v24 = vfloor.f32 %v3195_v21 }
 0xaa5   : > { %v3446_v34 = vsel %vm3443_vm6, %v3444_v31, %v3445_v24 }
 0xaa6   : > { %v3447_v45 = vcvt.f32.s32 %v3446_v34 }
 0xaa8   : > { %3220 = vst.msk [vmem:[%s4076_s21 + $0x28] sm:$0xff] %vm9443_vm0, %v3447_v45 }
 0xaa9 PF: > { %s16_s17 = sadd.s32 1, %s3630_s17   ;;  %s9444_s15 = smov %s3626_s16 }
 0xaaa   : > { %p13_p8 = scmp.ge.s32.totalorder %s16_s17, 4   ;;  %s9445_s16 = smov %s9447_s19 }
 0xaac   :  { %15 = sbr.rel (!%p13_p8) target bundleno = 2 (0x2), region = 86 }
 0xab1   :  { %3278 = vsyncpa [#allocation3], 1 }
 0xab2   :  { %3280 = vsyncpa [#allocation3 + $0x1], 1 }

</bundles_post_ra>
